<compile_context>
chip_gen: v6e
topology: v6e:2x2x1
jax: 0.10.0
libtpu: 0.0.40
codegen_flags: <defaults>
</compile_context>

<pallas_src>
import functools

import jax
import jax.numpy as jnp
from jax.experimental import pallas as pl
from jax.experimental.pallas import tpu as pltpu


def _round_up(x, m):
    return (x + m - 1) // m * m


def _res2d_kernel(xee_ref, xeo_ref, xoe_ref, xoo_ref,
                  w13_ref, w2_ref, b1_ref, b23_ref, mask_ref,
                  y_ref, hpad_ref, *, Ho, Wf, Cout):
    """Fused residual block for one batch item (channels-last, flat spatial).

    Parity planes are flattened with row pitch Wf (a multiple of 8); every conv
    tap — stride-2 and stride-1 — is a contiguous 2-D slice of length
    NP = Ho * Wf, and each tap is one bf16 MXU matmul accumulated in f32.
    """
    NP = Ho * Wf

    par = {(0, 0): xee_ref, (0, 1): xeo_ref,
           (1, 0): xoe_ref, (1, 1): xoo_ref}
    # stride-2 tap k -> (input parity, plane offset): k=0 even/0, 1 odd/0, 2 even/+1
    tap_map = {0: (0, 0), 1: (1, 0), 2: (0, 1)}

    # ---- conv1 || conv3 (stride 2): ONE matmul per shared tap into 2*Cout ----
    acc13 = jnp.zeros((NP, 2 * Cout), jnp.float32)
    for ky in range(3):
        rp, r0 = tap_map[ky]
        for kx in range(3):
            cp, c0 = tap_map[kx]
            off = r0 * Wf + c0
            tap = par[(rp, cp)][0, off:off + NP, :]            # bf16 (NP, Cin)
            acc13 += jnp.dot(tap, w13_ref[ky * 3 + kx],
                             preferred_element_type=jnp.float32)

    # main path: relu(bn1(conv1(x)))          (bn folded into w13 / b1)
    h1 = jnp.maximum(acc13[:, :Cout] + b1_ref[...], 0.0)
    # shortcut path (+ conv2/bn2 bias) becomes the conv2 accumulator init value,
    # so acc3 never stays live through the conv2 loop.
    acc2 = acc13[:, Cout:] + b23_ref[...]

    # ---- zero-padded copy of h1 (same pitch Wf) for the stride-1 conv2 ------
    # One masked multiply + one contiguous store; the mask zeroes the Wf - Wo
    # scratch columns of every flat row (those same zeros land on the left-pad
    # column of the next padded row).  Only the top / bottom border rows need
    # explicit zeroing.
    h1m = (h1 * mask_ref[...]).astype(hpad_ref.dtype)
    zero_rows = jnp.zeros((Wf + 8, hpad_ref.shape[-1]), hpad_ref.dtype)
    hpad_ref[0:Wf + 8, :] = zero_rows                          # top pad row (+ row-1 left pad)
    hpad_ref[(Ho + 1) * Wf:(Ho + 2) * Wf + 8, :] = zero_rows   # bottom pad row (+ slack)
    hpad_ref[Wf + 1:Wf + 1 + NP, :] = h1m                      # bulk of padded h1

    # ---- conv2 (stride 1), accumulated on top of the shortcut ---------------
    for ky in range(3):
        for kx in range(3):
            off = ky * Wf + kx
            tap = hpad_ref[off:off + NP, :]                    # bf16 (NP, Cout)
            acc2 += jnp.dot(tap, w2_ref[ky * 3 + kx],
                            preferred_element_type=jnp.float32)

    # residual add is already folded into acc2's init; final relu.
    y_ref[0] = jnp.maximum(acc2, 0.0).astype(y_ref.dtype)


def _fold_bn(w, b, gamma, beta, mean, var, eps, cin_pad, cout_pad):
    """Fold eval-mode BatchNorm into the preceding conv and pad channels.

    w: (Cout, Cin, 3, 3) (PyTorch layout).
    Returns ((9, cin_pad, cout_pad) bf16, (1, cout_pad) f32).
    """
    s = gamma / jnp.sqrt(var + eps)
    w_f = jnp.transpose(w, (2, 3, 1, 0)) * s                   # (3, 3, Cin, Cout)
    b_f = (b - mean) * s + beta
    cin, cout = w_f.shape[2], w_f.shape[3]
    w_f = jnp.pad(w_f, ((0, 0), (0, 0), (0, cin_pad - cin), (0, cout_pad - cout)))
    b_f = jnp.pad(b_f, ((0, cout_pad - cout),))
    return (w_f.reshape(9, cin_pad, cout_pad).astype(jnp.bfloat16),
            b_f.reshape(1, cout_pad).astype(jnp.float32))


def res2d_forward(x_nchw, params, *, eps=1e-5):
    """Pallas Res_2d forward (stride=2, 3x3, pad=1, eval-mode BN).

    Args:
        x_nchw: (N, Cin, H, W) float32, NCHW like the PyTorch module.
        params: dict with conv weights/biases (w1,b1,w2,b2,w3,b3, torch layout)
                and BN params (g*, be*, m*, v*).
    Returns:
        (N, Cout, H//2, W//2) float32.
    """
    N, Cin, H, W = x_nchw.shape
    assert H % 2 == 0 and W % 2 == 0, "kernel assumes even H, W (stride=2)"
    Ho, Wo = H // 2, W // 2
    Wf = _round_up(Wo + 2, 8)            # flat row pitch (sublane aligned)
    NP = Ho * Wf                         # flat output rows per batch item
    Lp = (Ho + 1) * Wf + 8               # flat parity-plane length (+slack)
    Lh = (Ho + 2) * Wf + 8               # flat padded-h1 scratch length (+slack)

    Cout = params["w1"].shape[0]
    Cin_p = _round_up(Cin, 8)            # contraction dim (cheap to pad)
    Cout_p = _round_up(Cout, 128)        # lane-dense stores / VPU slabs

    # Fold BN into conv weights/biases (tiny wrapper-side math), pad channels,
    # and concatenate conv1/conv3 along Cout so stage 1 is one matmul per tap.
    w1, b1 = _fold_bn(params["w1"], params["b1"], params["g1"], params["be1"],
                      params["m1"], params["v1"], eps, Cin_p, Cout_p)
    w2, b2 = _fold_bn(params["w2"], params["b2"], params["g2"], params["be2"],
                      params["m2"], params["v2"], eps, Cout_p, Cout_p)
    w3, b3 = _fold_bn(params["w3"], params["b3"], params["g3"], params["be3"],
                      params["m3"], params["v3"], eps, Cin_p, Cout_p)
    w13 = jnp.concatenate([w1, w3], axis=-1)                   # (9, Cin_p, 2*Cout_p)
    b23 = b2 + b3                                              # (1, Cout_p)

    # NHWC + zero padding (pad=1 spatial, channel pad), bf16, split into
    # row/col parity planes, pad width to Wf and flatten, so every stride-2
    # tap is an unstrided contiguous 2-D slice inside the kernel.
    x = jnp.transpose(x_nchw, (0, 2, 3, 1))
    xp = jnp.pad(x, ((0, 0), (1, 1), (1, 1), (0, Cin_p - Cin))).astype(jnp.bfloat16)

    def parity_plane(r, c):
        p = xp[:, r::2, c::2, :]                               # (N, Ho+1, Wo+1, Cin_p)
        p = jnp.pad(p, ((0, 0), (0, 0), (0, Wf - (Wo + 1)), (0, 0)))
        p = p.reshape(N, (Ho + 1) * Wf, Cin_p)
        return jnp.pad(p, ((0, 0), (0, Lp - p.shape[1]), (0, 0)))

    xee = parity_plane(0, 0)
    xeo = parity_plane(0, 1)
    xoe = parity_plane(1, 0)
    xoo = parity_plane(1, 1)

    # (NP, 1) column-validity mask: 1 for the Wo real columns of each flat row.
    mask = (jnp.arange(NP) % Wf < Wo).astype(jnp.float32).reshape(NP, 1)

    kernel = functools.partial(_res2d_kernel, Ho=Ho, Wf=Wf, Cout=Cout_p)

    flops = 2 * N * NP * 9 * (Cin_p * 2 * Cout_p + Cout_p * Cout_p)
    bytes_acc = (2 * 4 * N * Lp * Cin_p + 4 * N * NP * Cout_p
                 + 2 * 9 * (Cin_p * 2 * Cout_p + Cout_p * Cout_p)
                 + 4 * 2 * Cout_p + 4 * NP)

    # VMEM budget: double-buffered inputs/weights + output + scratch + live f32
    # slabs (acc13, h1/acc2).  v5e's default scoped limit is only 16 MiB.
    vmem_need = (2 * 4 * Lp * Cin_p * 2                                  # parity planes
                 + 2 * 2 * 9 * (Cin_p * 2 * Cout_p + Cout_p * Cout_p)    # weights
                 + 2 * (2 * 4 * Cout_p + 4 * NP)                         # biases + mask
                 + 2 * 4 * NP * Cout_p                                   # output
                 + 2 * Lh * Cout_p                                       # hpad scratch
                 + 4 * NP * 4 * Cout_p)                                  # live accumulators
    vmem_limit = int(min(max(2 * vmem_need + (4 << 20), 32 << 20), 64 << 20))

    y_flat = pl.pallas_call(
        kernel,
        out_shape=jax.ShapeDtypeStruct((N, NP, Cout_p), jnp.float32),
        grid_spec=pltpu.PrefetchScalarGridSpec(
            num_scalar_prefetch=0,
            grid=(N,),
            in_specs=[
                pl.BlockSpec((1, Lp, Cin_p), lambda b: (b, 0, 0)),
                pl.BlockSpec((1, Lp, Cin_p), lambda b: (b, 0, 0)),
                pl.BlockSpec((1, Lp, Cin_p), lambda b: (b, 0, 0)),
                pl.BlockSpec((1, Lp, Cin_p), lambda b: (b, 0, 0)),
                pl.BlockSpec((9, Cin_p, 2 * Cout_p), lambda b: (0, 0, 0)),
                pl.BlockSpec((9, Cout_p, Cout_p), lambda b: (0, 0, 0)),
                pl.BlockSpec((1, Cout_p), lambda b: (0, 0)),
                pl.BlockSpec((1, Cout_p), lambda b: (0, 0)),
                pl.BlockSpec((NP, 1), lambda b: (0, 0)),
            ],
            out_specs=pl.BlockSpec((1, NP, Cout_p), lambda b: (b, 0, 0)),
            scratch_shapes=[pltpu.VMEM((Lh, Cout_p), jnp.bfloat16)],
        ),
        compiler_params=pltpu.CompilerParams(
            dimension_semantics=("parallel",),
            vmem_limit_bytes=vmem_limit),
        cost_estimate=pl.CostEstimate(flops=flops, transcendentals=0,
                                      bytes_accessed=bytes_acc),
    )(xee, xeo, xoe, xoo, w13, w2, b1, b23, mask)

    # Drop flat-layout scratch columns / padded channels; return NCHW.
    y = y_flat.reshape(N, Ho, Wf, Cout_p)[:, :, :Wo, :Cout]
    return jnp.transpose(y, (0, 3, 1, 2))


def res2d_reference(x_nchw, params, *, eps=1e-5):
    """Pure-JAX f32 reference (eval-mode BN), NCHW."""
    def conv(x, w, b, stride):
        y = jax.lax.conv_general_dilated(
            x, w, window_strides=(stride, stride), padding=((1, 1), (1, 1)),
            dimension_numbers=("NCHW", "OIHW", "NCHW"),
            precision=jax.lax.Precision.HIGHEST)
        return y + b[None, :, None, None]

    def bn(x, g, beta, mean, var):
        inv = g / jnp.sqrt(var + eps)
        return (x - mean[None, :, None, None]) * inv[None, :, None, None] \
            + beta[None, :, None, None]

    h = jax.nn.relu(bn(conv(x_nchw, params["w1"], params["b1"], 2),
                       params["g1"], params["be1"], params["m1"], params["v1"]))
    out = bn(conv(h, params["w2"], params["b2"], 1),
             params["g2"], params["be2"], params["m2"], params["v2"])
    sc = bn(conv(x_nchw, params["w3"], params["b3"], 2),
            params["g3"], params["be3"], params["m3"], params["v3"])
    return jax.nn.relu(out + sc)


if __name__ == "__main__":
    key = jax.random.PRNGKey(0)
    keys = jax.random.split(key, 8)

    N, Cin, Cout, H, W = 2, 4, 8, 16, 16
    x = jax.random.normal(keys[0], (N, Cin, H, W), dtype=jnp.float32)

    def conv_init(k, cout, cin):
        kw, kb = jax.random.split(k)
        w = jax.random.normal(kw, (cout, cin, 3, 3), jnp.float32) * 0.2
        b = jax.random.normal(kb, (cout,), jnp.float32) * 0.1
        return w, b

    def bn_init(k, c):
        k1, k2, k3, k4 = jax.random.split(k, 4)
        g = 1.0 + 0.2 * jax.random.normal(k1, (c,), jnp.float32)
        beta = 0.1 * jax.random.normal(k2, (c,), jnp.float32)
        mean = 0.1 * jax.random.normal(k3, (c,), jnp.float32)
        var = 0.5 + jax.random.uniform(k4, (c,), jnp.float32)
        return g, beta, mean, var

    w1, b1 = conv_init(keys[1], Cout, Cin)
    g1, be1, m1, v1 = bn_init(keys[2], Cout)
    w2, b2 = conv_init(keys[3], Cout, Cout)
    g2, be2, m2, v2 = bn_init(keys[4], Cout)
    w3, b3 = conv_init(keys[5], Cout, Cin)
    g3, be3, m3, v3 = bn_init(keys[6], Cout)

    params = dict(w1=w1, b1=b1, g1=g1, be1=be1, m1=m1, v1=v1,
                  w2=w2, b2=b2, g2=g2, be2=be2, m2=m2, v2=v2,
                  w3=w3, b3=b3, g3=g3, be3=be3, m3=m3, v3=v3)

    y = res2d_forward(x, params)
    jax.block_until_ready(y)

    y_ref = res2d_reference(x, params)
    assert y.shape == (N, Cout, H // 2, W // 2), y.shape
    max_err = float(jnp.max(jnp.abs(y - y_ref)))
    # bf16 MXU operands with f32 accumulation: tolerance loosened vs. pure f32.
    assert jnp.allclose(y, y_ref, rtol=1e-1, atol=1e-1), max_err

    print("KERNEL_OK")
</pallas_src>

<mosaic_0001>
module attributes {stable_mosaic.version = 11 : i64} {
  func.func @_res2d_kernel(%arg0: i32, %arg1: memref<1x152x8xbf16, #tpu.memory_space<vmem>>, %arg2: memref<1x152x8xbf16, #tpu.memory_space<vmem>>, %arg3: memref<1x152x8xbf16, #tpu.memory_space<vmem>>, %arg4: memref<1x152x8xbf16, #tpu.memory_space<vmem>>, %arg5: memref<9x8x256xbf16, #tpu.memory_space<vmem>>, %arg6: memref<9x128x128xbf16, #tpu.memory_space<vmem>>, %arg7: memref<1x128xf32, #tpu.memory_space<vmem>>, %arg8: memref<1x128xf32, #tpu.memory_space<vmem>>, %arg9: memref<128x1xf32, #tpu.memory_space<vmem>>, %arg10: memref<1x128x128xf32, #tpu.memory_space<vmem>>, %arg11: memref<168x128xbf16, #tpu.memory_space<vmem>>) attributes {dimension_semantics = [#tpu.dimension_semantics<parallel>], iteration_bounds = array<i64: 2>, scalar_prefetch = 0 : i64, scratch_operands = 1 : i64, tpu.core_type = #tpu.core_type<tc>, window_params = [{transform_indices = @transform_0, window_bounds = array<i64: 1, 152, 8>}, {transform_indices = @transform_1, window_bounds = array<i64: 1, 152, 8>}, {transform_indices = @transform_2, window_bounds = array<i64: 1, 152, 8>}, {transform_indices = @transform_3, window_bounds = array<i64: 1, 152, 8>}, {pipeline_mode = #tpu.pipeline_mode<synchronous>, transform_indices = @transform_4, window_bounds = array<i64: 9, 8, 256>}, {pipeline_mode = #tpu.pipeline_mode<synchronous>, transform_indices = @transform_5, window_bounds = array<i64: 9, 128, 128>}, {pipeline_mode = #tpu.pipeline_mode<synchronous>, transform_indices = @transform_6, window_bounds = array<i64: 1, 128>}, {pipeline_mode = #tpu.pipeline_mode<synchronous>, transform_indices = @transform_7, window_bounds = array<i64: 1, 128>}, {pipeline_mode = #tpu.pipeline_mode<synchronous>, transform_indices = @transform_8, window_bounds = array<i64: 128, 1>}, {transform_indices = @transform_9, window_bounds = array<i64: 1, 128, 128>}]} {
    %cst = arith.constant 0.000000e+00 : f32
    %0 = vector.broadcast %cst : f32 to vector<128x256xf32>
    %c0 = arith.constant 0 : index
    %c0_0 = arith.constant 0 : index
    %c0_1 = arith.constant 0 : index
    %1 = vector.load %arg1[%c0, %c0_0, %c0_1] : memref<1x152x8xbf16, #tpu.memory_space<vmem>>, vector<1x128x8xbf16>
    %2 = vector.shape_cast %1 : vector<1x128x8xbf16> to vector<128x8xbf16>
    %c0_2 = arith.constant 0 : index
    %c0_3 = arith.constant 0 : index
    %c0_4 = arith.constant 0 : index
    %3 = vector.load %arg5[%c0_2, %c0_3, %c0_4] : memref<9x8x256xbf16, #tpu.memory_space<vmem>>, vector<1x8x256xbf16>
    %4 = vector.shape_cast %3 : vector<1x8x256xbf16> to vector<8x256xbf16>
    %cst_5 = arith.constant dense<0.000000e+00> : vector<128x256xf32>
    %5 = tpu.matmul %2, %4, %cst_5 {dimension_numbers = #tpu.dot_dimension_numbers<[1], [0], [0], [1], [0, 0, 1, 1], [], []>} : vector<128x8xbf16>, vector<8x256xbf16>, vector<128x256xf32> -> vector<128x256xf32>
    %6 = arith.addf %0, %5 : vector<128x256xf32>
    %c0_6 = arith.constant 0 : index
    %c0_7 = arith.constant 0 : index
    %c0_8 = arith.constant 0 : index
    %7 = vector.load %arg2[%c0_6, %c0_7, %c0_8] : memref<1x152x8xbf16, #tpu.memory_space<vmem>>, vector<1x128x8xbf16>
    %8 = vector.shape_cast %7 : vector<1x128x8xbf16> to vector<128x8xbf16>
    %c1 = arith.constant 1 : index
    %c0_9 = arith.constant 0 : index
    %c0_10 = arith.constant 0 : index
    %9 = vector.load %arg5[%c1, %c0_9, %c0_10] : memref<9x8x256xbf16, #tpu.memory_space<vmem>>, vector<1x8x256xbf16>
    %10 = vector.shape_cast %9 : vector<1x8x256xbf16> to vector<8x256xbf16>
    %cst_11 = arith.constant dense<0.000000e+00> : vector<128x256xf32>
    %11 = tpu.matmul %8, %10, %cst_11 {dimension_numbers = #tpu.dot_dimension_numbers<[1], [0], [0], [1], [0, 0, 1, 1], [], []>} : vector<128x8xbf16>, vector<8x256xbf16>, vector<128x256xf32> -> vector<128x256xf32>
    %12 = arith.addf %6, %11 : vector<128x256xf32>
    %c0_12 = arith.constant 0 : index
    %c1_13 = arith.constant 1 : index
    %c0_14 = arith.constant 0 : index
    %13 = vector.load %arg1[%c0_12, %c1_13, %c0_14] : memref<1x152x8xbf16, #tpu.memory_space<vmem>>, vector<1x128x8xbf16>
    %14 = vector.shape_cast %13 : vector<1x128x8xbf16> to vector<128x8xbf16>
    %c2 = arith.constant 2 : index
    %c0_15 = arith.constant 0 : index
    %c0_16 = arith.constant 0 : index
    %15 = vector.load %arg5[%c2, %c0_15, %c0_16] : memref<9x8x256xbf16, #tpu.memory_space<vmem>>, vector<1x8x256xbf16>
    %16 = vector.shape_cast %15 : vector<1x8x256xbf16> to vector<8x256xbf16>
    %cst_17 = arith.constant dense<0.000000e+00> : vector<128x256xf32>
    %17 = tpu.matmul %14, %16, %cst_17 {dimension_numbers = #tpu.dot_dimension_numbers<[1], [0], [0], [1], [0, 0, 1, 1], [], []>} : vector<128x8xbf16>, vector<8x256xbf16>, vector<128x256xf32> -> vector<128x256xf32>
    %18 = arith.addf %12, %17 : vector<128x256xf32>
    %c0_18 = arith.constant 0 : index
    %c0_19 = arith.constant 0 : index
    %c0_20 = arith.constant 0 : index
    %19 = vector.load %arg3[%c0_18, %c0_19, %c0_20] : memref<1x152x8xbf16, #tpu.memory_space<vmem>>, vector<1x128x8xbf16>
    %20 = vector.shape_cast %19 : vector<1x128x8xbf16> to vector<128x8xbf16>
    %c3 = arith.constant 3 : index
    %c0_21 = arith.constant 0 : index
    %c0_22 = arith.constant 0 : index
    %21 = vector.load %arg5[%c3, %c0_21, %c0_22] : memref<9x8x256xbf16, #tpu.memory_space<vmem>>, vector<1x8x256xbf16>
    %22 = vector.shape_cast %21 : vector<1x8x256xbf16> to vector<8x256xbf16>
    %cst_23 = arith.constant dense<0.000000e+00> : vector<128x256xf32>
    %23 = tpu.matmul %20, %22, %cst_23 {dimension_numbers = #tpu.dot_dimension_numbers<[1], [0], [0], [1], [0, 0, 1, 1], [], []>} : vector<128x8xbf16>, vector<8x256xbf16>, vector<128x256xf32> -> vector<128x256xf32>
    %24 = arith.addf %18, %23 : vector<128x256xf32>
    %c0_24 = arith.constant 0 : index
    %c0_25 = arith.constant 0 : index
    %c0_26 = arith.constant 0 : index
    %25 = vector.load %arg4[%c0_24, %c0_25, %c0_26] : memref<1x152x8xbf16, #tpu.memory_space<vmem>>, vector<1x128x8xbf16>
    %26 = vector.shape_cast %25 : vector<1x128x8xbf16> to vector<128x8xbf16>
    %c4 = arith.constant 4 : index
    %c0_27 = arith.constant 0 : index
    %c0_28 = arith.constant 0 : index
    %27 = vector.load %arg5[%c4, %c0_27, %c0_28] : memref<9x8x256xbf16, #tpu.memory_space<vmem>>, vector<1x8x256xbf16>
    %28 = vector.shape_cast %27 : vector<1x8x256xbf16> to vector<8x256xbf16>
    %cst_29 = arith.constant dense<0.000000e+00> : vector<128x256xf32>
    %29 = tpu.matmul %26, %28, %cst_29 {dimension_numbers = #tpu.dot_dimension_numbers<[1], [0], [0], [1], [0, 0, 1, 1], [], []>} : vector<128x8xbf16>, vector<8x256xbf16>, vector<128x256xf32> -> vector<128x256xf32>
    %30 = arith.addf %24, %29 : vector<128x256xf32>
    %c0_30 = arith.constant 0 : index
    %c1_31 = arith.constant 1 : index
    %c0_32 = arith.constant 0 : index
    %31 = vector.load %arg3[%c0_30, %c1_31, %c0_32] : memref<1x152x8xbf16, #tpu.memory_space<vmem>>, vector<1x128x8xbf16>
    %32 = vector.shape_cast %31 : vector<1x128x8xbf16> to vector<128x8xbf16>
    %c5 = arith.constant 5 : index
    %c0_33 = arith.constant 0 : index
    %c0_34 = arith.constant 0 : index
    %33 = vector.load %arg5[%c5, %c0_33, %c0_34] : memref<9x8x256xbf16, #tpu.memory_space<vmem>>, vector<1x8x256xbf16>
    %34 = vector.shape_cast %33 : vector<1x8x256xbf16> to vector<8x256xbf16>
    %cst_35 = arith.constant dense<0.000000e+00> : vector<128x256xf32>
    %35 = tpu.matmul %32, %34, %cst_35 {dimension_numbers = #tpu.dot_dimension_numbers<[1], [0], [0], [1], [0, 0, 1, 1], [], []>} : vector<128x8xbf16>, vector<8x256xbf16>, vector<128x256xf32> -> vector<128x256xf32>
    %36 = arith.addf %30, %35 : vector<128x256xf32>
    %c0_36 = arith.constant 0 : index
    %c16 = arith.constant 16 : index
    %c0_37 = arith.constant 0 : index
    %37 = vector.load %arg1[%c0_36, %c16, %c0_37] : memref<1x152x8xbf16, #tpu.memory_space<vmem>>, vector<1x128x8xbf16>
    %38 = vector.shape_cast %37 : vector<1x128x8xbf16> to vector<128x8xbf16>
    %c6 = arith.constant 6 : index
    %c0_38 = arith.constant 0 : index
    %c0_39 = arith.constant 0 : index
    %39 = vector.load %arg5[%c6, %c0_38, %c0_39] : memref<9x8x256xbf16, #tpu.memory_space<vmem>>, vector<1x8x256xbf16>
    %40 = vector.shape_cast %39 : vector<1x8x256xbf16> to vector<8x256xbf16>
    %cst_40 = arith.constant dense<0.000000e+00> : vector<128x256xf32>
    %41 = tpu.matmul %38, %40, %cst_40 {dimension_numbers = #tpu.dot_dimension_numbers<[1], [0], [0], [1], [0, 0, 1, 1], [], []>} : vector<128x8xbf16>, vector<8x256xbf16>, vector<128x256xf32> -> vector<128x256xf32>
    %42 = arith.addf %36, %41 : vector<128x256xf32>
    %c0_41 = arith.constant 0 : index
    %c16_42 = arith.constant 16 : index
    %c0_43 = arith.constant 0 : index
    %43 = vector.load %arg2[%c0_41, %c16_42, %c0_43] : memref<1x152x8xbf16, #tpu.memory_space<vmem>>, vector<1x128x8xbf16>
    %44 = vector.shape_cast %43 : vector<1x128x8xbf16> to vector<128x8xbf16>
    %c7 = arith.constant 7 : index
    %c0_44 = arith.constant 0 : index
    %c0_45 = arith.constant 0 : index
    %45 = vector.load %arg5[%c7, %c0_44, %c0_45] : memref<9x8x256xbf16, #tpu.memory_space<vmem>>, vector<1x8x256xbf16>
    %46 = vector.shape_cast %45 : vector<1x8x256xbf16> to vector<8x256xbf16>
    %cst_46 = arith.constant dense<0.000000e+00> : vector<128x256xf32>
    %47 = tpu.matmul %44, %46, %cst_46 {dimension_numbers = #tpu.dot_dimension_numbers<[1], [0], [0], [1], [0, 0, 1, 1], [], []>} : vector<128x8xbf16>, vector<8x256xbf16>, vector<128x256xf32> -> vector<128x256xf32>
    %48 = arith.addf %42, %47 : vector<128x256xf32>
    %c0_47 = arith.constant 0 : index
    %c17 = arith.constant 17 : index
    %c0_48 = arith.constant 0 : index
    %49 = vector.load %arg1[%c0_47, %c17, %c0_48] : memref<1x152x8xbf16, #tpu.memory_space<vmem>>, vector<1x128x8xbf16>
    %50 = vector.shape_cast %49 : vector<1x128x8xbf16> to vector<128x8xbf16>
    %c8 = arith.constant 8 : index
    %c0_49 = arith.constant 0 : index
    %c0_50 = arith.constant 0 : index
    %51 = vector.load %arg5[%c8, %c0_49, %c0_50] : memref<9x8x256xbf16, #tpu.memory_space<vmem>>, vector<1x8x256xbf16>
    %52 = vector.shape_cast %51 : vector<1x8x256xbf16> to vector<8x256xbf16>
    %cst_51 = arith.constant dense<0.000000e+00> : vector<128x256xf32>
    %53 = tpu.matmul %50, %52, %cst_51 {dimension_numbers = #tpu.dot_dimension_numbers<[1], [0], [0], [1], [0, 0, 1, 1], [], []>} : vector<128x8xbf16>, vector<8x256xbf16>, vector<128x256xf32> -> vector<128x256xf32>
    %54 = arith.addf %48, %53 : vector<128x256xf32>
    %55 = vector.extract_strided_slice %54 {offsets = [0, 0], sizes = [128, 128], strides = [1, 1]} : vector<128x256xf32> to vector<128x128xf32>
    %c0_52 = arith.constant 0 : index
    %c0_53 = arith.constant 0 : index
    %56 = vector.load %arg7[%c0_52, %c0_53] : memref<1x128xf32, #tpu.memory_space<vmem>>, vector<1x128xf32>
    %57 = vector.broadcast %56 : vector<1x128xf32> to vector<128x128xf32>
    %58 = arith.addf %55, %57 : vector<128x128xf32>
    %cst_54 = arith.constant 0.000000e+00 : f32
    %59 = vector.broadcast %cst_54 : f32 to vector<128x128xf32>
    %60 = arith.maximumf %58, %59 : vector<128x128xf32>
    %61 = vector.extract_strided_slice %54 {offsets = [0, 128], sizes = [128, 128], strides = [1, 1]} : vector<128x256xf32> to vector<128x128xf32>
    %c0_55 = arith.constant 0 : index
    %c0_56 = arith.constant 0 : index
    %62 = vector.load %arg8[%c0_55, %c0_56] : memref<1x128xf32, #tpu.memory_space<vmem>>, vector<1x128xf32>
    %63 = vector.broadcast %62 : vector<1x128xf32> to vector<128x128xf32>
    %64 = arith.addf %61, %63 : vector<128x128xf32>
    %c0_57 = arith.constant 0 : index
    %c0_58 = arith.constant 0 : index
    %65 = vector.load %arg9[%c0_57, %c0_58] : memref<128x1xf32, #tpu.memory_space<vmem>>, vector<128x1xf32>
    %66 = vector.broadcast %65 : vector<128x1xf32> to vector<128x128xf32>
    %67 = arith.mulf %60, %66 : vector<128x128xf32>
    %68 = arith.truncf %67 : vector<128x128xf32> to vector<128x128xbf16>
    %cst_59 = arith.constant 0.000000e+00 : bf16
    %69 = vector.broadcast %cst_59 : bf16 to vector<24x128xbf16>
    %c0_60 = arith.constant 0 : index
    %c0_61 = arith.constant 0 : index
    %70 = vector.load %arg11[%c0_60, %c0_61] : memref<168x128xbf16, #tpu.memory_space<vmem>>, vector<24x128xbf16>
    tpu.vector_store %arg11[%c0_60, %c0_61], %69 {strides = array<i32>} : memref<168x128xbf16, #tpu.memory_space<vmem>>, vector<24x128xbf16>,
    %c144 = arith.constant 144 : index
    %c0_62 = arith.constant 0 : index
    %71 = vector.load %arg11[%c144, %c0_62] : memref<168x128xbf16, #tpu.memory_space<vmem>>, vector<24x128xbf16>
    tpu.vector_store %arg11[%c144, %c0_62], %69 {strides = array<i32>} : memref<168x128xbf16, #tpu.memory_space<vmem>>, vector<24x128xbf16>,
    %c17_63 = arith.constant 17 : index
    %c0_64 = arith.constant 0 : index
    %72 = vector.load %arg11[%c17_63, %c0_64] : memref<168x128xbf16, #tpu.memory_space<vmem>>, vector<128x128xbf16>
    tpu.vector_store %arg11[%c17_63, %c0_64], %68 {strides = array<i32>} : memref<168x128xbf16, #tpu.memory_space<vmem>>, vector<128x128xbf16>,
    %c0_65 = arith.constant 0 : index
    %c0_66 = arith.constant 0 : index
    %73 = vector.load %arg11[%c0_65, %c0_66] : memref<168x128xbf16, #tpu.memory_space<vmem>>, vector<128x128xbf16>
    %c0_67 = arith.constant 0 : index
    %c0_68 = arith.constant 0 : index
    %c0_69 = arith.constant 0 : index
    %74 = vector.load %arg6[%c0_67, %c0_68, %c0_69] : memref<9x128x128xbf16, #tpu.memory_space<vmem>>, vector<1x128x128xbf16>
    %75 = vector.shape_cast %74 : vector<1x128x128xbf16> to vector<128x128xbf16>
    %cst_70 = arith.constant dense<0.000000e+00> : vector<128x128xf32>
    %76 = tpu.matmul %73, %75, %cst_70 {dimension_numbers = #tpu.dot_dimension_numbers<[1], [0], [0], [1], [0, 0, 1, 1], [], []>} : vector<128x128xbf16>, vector<128x128xbf16>, vector<128x128xf32> -> vector<128x128xf32>
    %77 = arith.addf %64, %76 : vector<128x128xf32>
    %c1_71 = arith.constant 1 : index
    %c0_72 = arith.constant 0 : index
    %78 = vector.load %arg11[%c1_71, %c0_72] : memref<168x128xbf16, #tpu.memory_space<vmem>>, vector<128x128xbf16>
    %c1_73 = arith.constant 1 : index
    %c0_74 = arith.constant 0 : index
    %c0_75 = arith.constant 0 : index
    %79 = vector.load %arg6[%c1_73, %c0_74, %c0_75] : memref<9x128x128xbf16, #tpu.memory_space<vmem>>, vector<1x128x128xbf16>
    %80 = vector.shape_cast %79 : vector<1x128x128xbf16> to vector<128x128xbf16>
    %cst_76 = arith.constant dense<0.000000e+00> : vector<128x128xf32>
    %81 = tpu.matmul %78, %80, %cst_76 {dimension_numbers = #tpu.dot_dimension_numbers<[1], [0], [0], [1], [0, 0, 1, 1], [], []>} : vector<128x128xbf16>, vector<128x128xbf16>, vector<128x128xf32> -> vector<128x128xf32>
    %82 = arith.addf %77, %81 : vector<128x128xf32>
    %c2_77 = arith.constant 2 : index
    %c0_78 = arith.constant 0 : index
    %83 = vector.load %arg11[%c2_77, %c0_78] : memref<168x128xbf16, #tpu.memory_space<vmem>>, vector<128x128xbf16>
    %c2_79 = arith.constant 2 : index
    %c0_80 = arith.constant 0 : index
    %c0_81 = arith.constant 0 : index
    %84 = vector.load %arg6[%c2_79, %c0_80, %c0_81] : memref<9x128x128xbf16, #tpu.memory_space<vmem>>, vector<1x128x128xbf16>
    %85 = vector.shape_cast %84 : vector<1x128x128xbf16> to vector<128x128xbf16>
    %cst_82 = arith.constant dense<0.000000e+00> : vector<128x128xf32>
    %86 = tpu.matmul %83, %85, %cst_82 {dimension_numbers = #tpu.dot_dimension_numbers<[1], [0], [0], [1], [0, 0, 1, 1], [], []>} : vector<128x128xbf16>, vector<128x128xbf16>, vector<128x128xf32> -> vector<128x128xf32>
    %87 = arith.addf %82, %86 : vector<128x128xf32>
    %c16_83 = arith.constant 16 : index
    %c0_84 = arith.constant 0 : index
    %88 = vector.load %arg11[%c16_83, %c0_84] : memref<168x128xbf16, #tpu.memory_space<vmem>>, vector<128x128xbf16>
    %c3_85 = arith.constant 3 : index
    %c0_86 = arith.constant 0 : index
    %c0_87 = arith.constant 0 : index
    %89 = vector.load %arg6[%c3_85, %c0_86, %c0_87] : memref<9x128x128xbf16, #tpu.memory_space<vmem>>, vector<1x128x128xbf16>
    %90 = vector.shape_cast %89 : vector<1x128x128xbf16> to vector<128x128xbf16>
    %cst_88 = arith.constant dense<0.000000e+00> : vector<128x128xf32>
    %91 = tpu.matmul %88, %90, %cst_88 {dimension_numbers = #tpu.dot_dimension_numbers<[1], [0], [0], [1], [0, 0, 1, 1], [], []>} : vector<128x128xbf16>, vector<128x128xbf16>, vector<128x128xf32> -> vector<128x128xf32>
    %92 = arith.addf %87, %91 : vector<128x128xf32>
    %c17_89 = arith.constant 17 : index
    %c0_90 = arith.constant 0 : index
    %93 = vector.load %arg11[%c17_89, %c0_90] : memref<168x128xbf16, #tpu.memory_space<vmem>>, vector<128x128xbf16>
    %c4_91 = arith.constant 4 : index
    %c0_92 = arith.constant 0 : index
    %c0_93 = arith.constant 0 : index
    %94 = vector.load %arg6[%c4_91, %c0_92, %c0_93] : memref<9x128x128xbf16, #tpu.memory_space<vmem>>, vector<1x128x128xbf16>
    %95 = vector.shape_cast %94 : vector<1x128x128xbf16> to vector<128x128xbf16>
    %cst_94 = arith.constant dense<0.000000e+00> : vector<128x128xf32>
    %96 = tpu.matmul %93, %95, %cst_94 {dimension_numbers = #tpu.dot_dimension_numbers<[1], [0], [0], [1], [0, 0, 1, 1], [], []>} : vector<128x128xbf16>, vector<128x128xbf16>, vector<128x128xf32> -> vector<128x128xf32>
    %97 = arith.addf %92, %96 : vector<128x128xf32>
    %c18 = arith.constant 18 : index
    %c0_95 = arith.constant 0 : index
    %98 = vector.load %arg11[%c18, %c0_95] : memref<168x128xbf16, #tpu.memory_space<vmem>>, vector<128x128xbf16>
    %c5_96 = arith.constant 5 : index
    %c0_97 = arith.constant 0 : index
    %c0_98 = arith.constant 0 : index
    %99 = vector.load %arg6[%c5_96, %c0_97, %c0_98] : memref<9x128x128xbf16, #tpu.memory_space<vmem>>, vector<1x128x128xbf16>
    %100 = vector.shape_cast %99 : vector<1x128x128xbf16> to vector<128x128xbf16>
    %cst_99 = arith.constant dense<0.000000e+00> : vector<128x128xf32>
    %101 = tpu.matmul %98, %100, %cst_99 {dimension_numbers = #tpu.dot_dimension_numbers<[1], [0], [0], [1], [0, 0, 1, 1], [], []>} : vector<128x128xbf16>, vector<128x128xbf16>, vector<128x128xf32> -> vector<128x128xf32>
    %102 = arith.addf %97, %101 : vector<128x128xf32>
    %c32 = arith.constant 32 : index
    %c0_100 = arith.constant 0 : index
    %103 = vector.load %arg11[%c32, %c0_100] : memref<168x128xbf16, #tpu.memory_space<vmem>>, vector<128x128xbf16>
    %c6_101 = arith.constant 6 : index
    %c0_102 = arith.constant 0 : index
    %c0_103 = arith.constant 0 : index
    %104 = vector.load %arg6[%c6_101, %c0_102, %c0_103] : memref<9x128x128xbf16, #tpu.memory_space<vmem>>, vector<1x128x128xbf16>
    %105 = vector.shape_cast %104 : vector<1x128x128xbf16> to vector<128x128xbf16>
    %cst_104 = arith.constant dense<0.000000e+00> : vector<128x128xf32>
    %106 = tpu.matmul %103, %105, %cst_104 {dimension_numbers = #tpu.dot_dimension_numbers<[1], [0], [0], [1], [0, 0, 1, 1], [], []>} : vector<128x128xbf16>, vector<128x128xbf16>, vector<128x128xf32> -> vector<128x128xf32>
    %107 = arith.addf %102, %106 : vector<128x128xf32>
    %c33 = arith.constant 33 : index
    %c0_105 = arith.constant 0 : index
    %108 = vector.load %arg11[%c33, %c0_105] : memref<168x128xbf16, #tpu.memory_space<vmem>>, vector<128x128xbf16>
    %c7_106 = arith.constant 7 : index
    %c0_107 = arith.constant 0 : index
    %c0_108 = arith.constant 0 : index
    %109 = vector.load %arg6[%c7_106, %c0_107, %c0_108] : memref<9x128x128xbf16, #tpu.memory_space<vmem>>, vector<1x128x128xbf16>
    %110 = vector.shape_cast %109 : vector<1x128x128xbf16> to vector<128x128xbf16>
    %cst_109 = arith.constant dense<0.000000e+00> : vector<128x128xf32>
    %111 = tpu.matmul %108, %110, %cst_109 {dimension_numbers = #tpu.dot_dimension_numbers<[1], [0], [0], [1], [0, 0, 1, 1], [], []>} : vector<128x128xbf16>, vector<128x128xbf16>, vector<128x128xf32> -> vector<128x128xf32>
    %112 = arith.addf %107, %111 : vector<128x128xf32>
    %c34 = arith.constant 34 : index
    %c0_110 = arith.constant 0 : index
    %113 = vector.load %arg11[%c34, %c0_110] : memref<168x128xbf16, #tpu.memory_space<vmem>>, vector<128x128xbf16>
    %c8_111 = arith.constant 8 : index
    %c0_112 = arith.constant 0 : index
    %c0_113 = arith.constant 0 : index
    %114 = vector.load %arg6[%c8_111, %c0_112, %c0_113] : memref<9x128x128xbf16, #tpu.memory_space<vmem>>, vector<1x128x128xbf16>
    %115 = vector.shape_cast %114 : vector<1x128x128xbf16> to vector<128x128xbf16>
    %cst_114 = arith.constant dense<0.000000e+00> : vector<128x128xf32>
    %116 = tpu.matmul %113, %115, %cst_114 {dimension_numbers = #tpu.dot_dimension_numbers<[1], [0], [0], [1], [0, 0, 1, 1], [], []>} : vector<128x128xbf16>, vector<128x128xbf16>, vector<128x128xf32> -> vector<128x128xf32>
    %117 = arith.addf %112, %116 : vector<128x128xf32>
    %cst_115 = arith.constant 0.000000e+00 : f32
    %118 = vector.broadcast %cst_115 : f32 to vector<128x128xf32>
    %119 = arith.maximumf %117, %118 : vector<128x128xf32>
    %c0_116 = arith.constant 0 : index
    %c0_117 = arith.constant 0 : index
    %c0_118 = arith.constant 0 : index
    %120 = vector.load %arg10[%c0_116, %c0_117, %c0_118] : memref<1x128x128xf32, #tpu.memory_space<vmem>>, vector<1x128x128xf32>
    %121 = vector.shape_cast %120 : vector<1x128x128xf32> to vector<128x128xf32>
    %122 = vector.shape_cast %119 : vector<128x128xf32> to vector<1x128x128xf32>
    tpu.vector_store %arg10[%c0_116, %c0_117, %c0_118], %122 {strides = array<i32>} : memref<1x128x128xf32, #tpu.memory_space<vmem>>, vector<1x128x128xf32>,
    return
  }
  func.func @transform_0(%arg0: i32) -> (i32, i32, i32) {
    %c0_i32 = arith.constant 0 : i32
    %c0_i32_0 = arith.constant 0 : i32
    %c0_i32_1 = arith.constant 0 : i32
    return %arg0, %c0_i32, %c0_i32_0 : i32, i32, i32
  }
  func.func @transform_1(%arg0: i32) -> (i32, i32, i32) {
    %c0_i32 = arith.constant 0 : i32
    %c0_i32_0 = arith.constant 0 : i32
    %c0_i32_1 = arith.constant 0 : i32
    return %arg0, %c0_i32, %c0_i32_0 : i32, i32, i32
  }
  func.func @transform_2(%arg0: i32) -> (i32, i32, i32) {
    %c0_i32 = arith.constant 0 : i32
    %c0_i32_0 = arith.constant 0 : i32
    %c0_i32_1 = arith.constant 0 : i32
    return %arg0, %c0_i32, %c0_i32_0 : i32, i32, i32
  }
  func.func @transform_3(%arg0: i32) -> (i32, i32, i32) {
    %c0_i32 = arith.constant 0 : i32
    %c0_i32_0 = arith.constant 0 : i32
    %c0_i32_1 = arith.constant 0 : i32
    return %arg0, %c0_i32, %c0_i32_0 : i32, i32, i32
  }
  func.func @transform_4(%arg0: i32) -> (i32, i32, i32) {
    %c0_i32 = arith.constant 0 : i32
    %c0_i32_0 = arith.constant 0 : i32
    %c0_i32_1 = arith.constant 0 : i32
    %c0_i32_2 = arith.constant 0 : i32
    return %c0_i32, %c0_i32_0, %c0_i32_1 : i32, i32, i32
  }
  func.func @transform_5(%arg0: i32) -> (i32, i32, i32) {
    %c0_i32 = arith.constant 0 : i32
    %c0_i32_0 = arith.constant 0 : i32
    %c0_i32_1 = arith.constant 0 : i32
    %c0_i32_2 = arith.constant 0 : i32
    return %c0_i32, %c0_i32_0, %c0_i32_1 : i32, i32, i32
  }
  func.func @transform_6(%arg0: i32) -> (i32, i32) {
    %c0_i32 = arith.constant 0 : i32
    %c0_i32_0 = arith.constant 0 : i32
    %c0_i32_1 = arith.constant 0 : i32
    return %c0_i32, %c0_i32_0 : i32, i32
  }
  func.func @transform_7(%arg0: i32) -> (i32, i32) {
    %c0_i32 = arith.constant 0 : i32
    %c0_i32_0 = arith.constant 0 : i32
    %c0_i32_1 = arith.constant 0 : i32
    return %c0_i32, %c0_i32_0 : i32, i32
  }
  func.func @transform_8(%arg0: i32) -> (i32, i32) {
    %c0_i32 = arith.constant 0 : i32
    %c0_i32_0 = arith.constant 0 : i32
    %c0_i32_1 = arith.constant 0 : i32
    return %c0_i32, %c0_i32_0 : i32, i32
  }
  func.func @transform_9(%arg0: i32) -> (i32, i32, i32) {
    %c0_i32 = arith.constant 0 : i32
    %c0_i32_0 = arith.constant 0 : i32
    %c0_i32_1 = arith.constant 0 : i32
    return %arg0, %c0_i32, %c0_i32_0 : i32, i32, i32
  }
}

</mosaic_0001>

<bundles_post_ra>
// kernel: tpu_custom_call.1
= control target key start
LH: loop header
LB: loop body
LE: loop exit
PB: predicated region body
PF: predicated region fallthrough
CT: control target
= control target key end

     0   :  { %14 = vsyncpa [#allocation4], 0  ;;  %s8793_s0 = inlined_call_operand.vmem [shape: bf16[2,152,8], index: 0, kind: input, shape index: {}]   ;;  %s8794_s1 = inlined_call_operand.vmem [shape: bf16[2,152,8], index: 1, kind: input, shape index: {}]   ;;  %s8795_s2 = inlined_call_operand.vmem [shape: bf16[2,152,8], index: 2, kind: input, shape index: {}]   ;;  %s8796_s3 = inlined_call_operand.vmem [shape: bf16[2,152,8], index: 3, kind: input, shape index: {}]   ;;  %s8797_s4 = inlined_call_operand.vmem [shape: bf16[9,8,256], index: 4, kind: input, shape index: {}]   ;;  %s8798_s5 = inlined_call_operand.vmem [shape: bf16[9,128,128], index: 5, kind: input, shape index: {}]   ;;  %s8799_s6 = inlined_call_operand.vmem [shape: f32[1,128], index: 6, kind: input, shape index: {}]   ;;  %s8800_s7 = inlined_call_operand.vmem [shape: f32[1,128], index: 7, kind: input, shape index: {}]   ;;  %s8801_s8 = inlined_call_operand.vmem [shape: f32[128,1], index: 8, kind: input, shape index: {}]   ;;  %s8802_s9 = inlined_call_operand.hbm [shape: f32[2,128,128], index: 9, kind: output, shape index: {}]  }
   0x1   :  { %16 = vsyncpa [#allocation4 + $0x1], 0  ;;  %s6837_s30 = smov 0   ;;  %s6839_s10 = smov 0  }
   0x2   :  { %s6841_s11 = smov 0   ;;  %s6843_s12 = smov 0  }
   0x3 LB: > { %s6858_s13 = sadd.s32 4294967295, %s6781_s12   ;;  %s5538_s14 = sadd.s32 4294967294, %s6781_s12   ;;  %s6781_s12 = sphi %s6843_s12, %s8950_s12   ;;  %s6777_s11 = sphi %s6841_s11, %s8949_s11   ;;  %s6773_s10 = sphi %s6839_s10, %s8948_s10   ;;  %s6769_s30 = sphi %s6837_s30, %s8947_s30  }
   0x4   : > { %s6862_s15 = sadd.s32 1, %s6781_s12   ;;  %s238_s16 = sadd.s32 1, %s6777_s11 }
   0x5   : > { %s235_s17 = ssub.s32 %s6781_s12, %s6862_s15  ;;  %p248_p0 = scmp.ne.s32.totalorder %s6777_s11, %s6773_s10 }
   0x6   : > { %p236_p1 = scmp.eq.s32.totalorder %s235_s17, 0  ;;  %p249_p2 = scmp.eq.s32.totalorder %s6858_s13, 1 }
   0x7   : > { %p254_p3 = scmp.ne.s32.totalorder %s6773_s10, %s6769_s30  ;;  %p255_p4 = scmp.eq.s32.totalorder %s5538_s14, 1 }
   0x8   : > { %s6873_s18 = scalar_select %p236_p1, %s6777_s11, %s238_s16  }
   0x9   : > { %p6875_p5 = por %p249_p2, %p248_p0  ;;  %p6879_p6 = por %p255_p4, %p254_p3 }
   0xa   : > { %p5541_p7 = scmp.ge.s32.totalorder %s6781_s12, 1  ;;  %p320_p8 = scmp.lt.s32.totalorder %s6781_s12, 3 }
   0xc   : > { %p321_p9 = pnand %p5541_p7, %p320_p8 }
   0xe   : > { %324 = sbr.rel (%p321_p9) target bundleno = 884 (0x374), region = 56 }
  0x13   : > { %v5547_v0 = vld [vmem:[%s8797_s4 + $0x8] sm:$0xff]  ;;  %vm497_vm0 = vcmask 1043456   ;;  %v5586_v1 = vld [vmem:[%s8797_s4 + $0x10] sm:$0xff]  ;;  %p371_p10 = scmp.lt.s32.totalorder %s6858_s13, 1  ;;  %v6783_v4 = vmov 0   ;;  %v408_v6 = vld [vmem:[%s8797_s4] sm:$0xff] }
  0x14   : > { %v5557_v2 = vcombine.high %v5547_v0, %v5547_v0  ;;  %v5556_v3 = vcombine.low %v5547_v0, %v5547_v0  ;;  %536 = vmatprep.mubr.bf16.mxu0 %v6783_v4  ;;  %2870 = vst [vmem:[#allocation2] sm:$0xf] %v6783_v4  ;;  %2871 = vst [vmem:[#allocation2 + $0x4] sm:$0xf] %v6783_v4  ;;  %596 = vmatprep.mubr.bf16.mxu1 %v6783_v4  ;;  %v6917_v11 = vld [vmem:[%s8797_s4 + $0x20] sm:$0xff]  ;;  %vm472_vm1 = vcmask 64512  }
  0x15   : > { %2872 = vst [vmem:[#allocation2 + $0x8] sm:$0xf] %v6783_v4  ;;  %2873 = vst [vmem:[#allocation2 + $0x48] sm:$0xf] %v6783_v4  ;;  %v5597_v5 = vcombine.high %v5586_v1, %v5586_v1  ;;  %s372_s27 = scalar_select %p371_p10, %s6858_s13, 1  ;;  %v5576_v7 = vcombine.high %v408_v6, %v408_v6  ;;  %6500 = vset.pattern.permute.xlu0 %v6783_v4  ;;  %v5596_v9 = vcombine.low %v5586_v1, %v5586_v1  ;;  %v5607_v12 = vld [vmem:[%s8797_s4 + $0x18] sm:$0xff] }
  0x16   : > { %2874 = vst [vmem:[#allocation2 + $0x4c] sm:$0xf] %v6783_v4  ;;  %2875 = vst [vmem:[#allocation2 + $0x50] sm:$0xf] %v6783_v4  ;;  %5558 = vmatprep.subr.msk.bf16.mxu0 %vm497_vm0, %v5557_v2  ;;  %6455 = vmatprep.subr.msk.bf16.mxu1 %vm497_vm0, %v5557_v2  ;;  %v499_v8 = vsel %vm497_vm0, %v5556_v3, 0  ;;  %v5575_v10 = vcombine.low %v408_v6, %v408_v6  ;;  %v5637_v16 = vcombine.high %v6917_v11, %v6917_v11  ;;  %v6957_v23 = vld [vmem:[%s8797_s4 + $0x28] sm:$0xff] }
  0x17   : > { %519 = vmatpush1.bf16.msra.mxu0 %v499_v8  ;;  %6456 = vmatpush1.bf16.msra.mxu1 %v499_v8  ;;  %s6910_s28 = smul.u32 76, %s372_s27  ;;  %v966_v14 = vsel %vm497_vm0, %v5596_v9, 0  ;;  %v5617_v18 = vcombine.high %v5607_v12, %v5607_v12  ;;  %v5616_v21 = vcombine.low %v5607_v12, %v5607_v12  ;;  %v5658_v26 = vcombine.high %v6957_v23, %v6957_v23  ;;  %v7006_v43 = vld [vmem:[%s8797_s4 + $0x30] sm:$0xff]  ;;  %s368_s25 = sand.u32 1, %s6773_s10  }
  0x18   : > { %5598 = vmatprep.subr.msk.bf16.mxu0 %vm497_vm0, %v5597_v5  ;;  %5577 = vmatprep.subr.msk.bf16.mxu1 %vm497_vm0, %v5576_v7  ;;  %v687_v17 = vsel %vm497_vm0, %v5575_v10, 0  ;;  %vm867_vm2 = vsmask.f32 7424  ;;  %v5636_v42 = vcombine.low %v6917_v11, %v6917_v11  ;;  %v5678_v50 = vcombine.high %v7006_v43, %v7006_v43  ;;  %s5542_s27 = sshll.u32 %s368_s25, 7  ;;  %s6022_s14 = sshll.u32 %s6858_s13, 11 }
  0x19   : > { %s6923_s21 = scalar_lea.vmem %s8794_s1, %s6910_s28  ;;  %6501 = vset.pattern.permute.xlu1 %v6783_v4  ;;  %s6941_s26 = scalar_lea.vmem %s8793_s0, %s6910_s28  ;;  %v1204_v25 = vsel %vm497_vm0, %v5616_v21, 0  ;;  %v5657_v6 = vcombine.low %v6957_v23, %v6957_v23  ;;  %vm3080_vm3 = vsmask.f32 7938  ;;  %vm2916_vm4 = vsmask.f32 256 }
  0x1a   : > { %v6505_v13 = vld [vmem:[%s6923_s21] sm:$0xff]   ;;  %v6506_v15 = vld [vmem:[%s6923_s21 + $0x30] sm:$0xff]   ;;  %v6508_v19 = vld [vmem:[%s6923_s21 + $0x8] sm:$0xff]   ;;  %s6972_s17 = scalar_lea.vmem %s8795_s2, %s6910_s28  ;;  %s6987_s24 = scalar_lea.vmem %s8796_s3, %s6910_s28  ;;  %v1442_v48 = vsel %vm497_vm0, %v5636_v42, 0  ;;  %vm2917_vm6 = vsmask.f32 4368 }
  0x1b   : > { %5559 = vmatmul.mubr.msk.bf16.vlgmr.msra.gmra.mxu0 %vm472_vm1, %v6505_v13  ;;  %5565 = vmatmul.mubr.msk.bf16.vlgmr.msra.gmra.mxu1 %vm472_vm1, %v6506_v15  ;;  %v6509_v20 = vld [vmem:[%s6923_s21 + $0x38] sm:$0xff]   ;;  %v6512_v22 = vld [vmem:[%s6923_s21 + $0x10] sm:$0xff]   ;;  %v6513_v24 = vld [vmem:[%s6941_s26] sm:$0xff]   ;;  %v1752_v11 = vsel %vm497_vm0, %v5657_v6, 0  ;;  %vm3681_vm8 = vcmask 1046528   ;;  %vm3100_vm9 = vcmask 1040384   ;;  %s8745_s23 = scalar_lea.hbm %s8802_s9, %s6022_s14 }
  0x1c   : > { %986 = vmatpush1.bf16.msra.mxu0 %v966_v14  ;;  %546 = vmatprep.mubr.bf16.mxu0 %v6783_v4  ;;  %v6514_v27 = vld [vmem:[%s6923_s21 + $0x18] sm:$0xff]   ;;  %v6515_v28 = vld [vmem:[%s6941_s26 + $0x8] sm:$0xff]   ;;  %v6516_v29 = vld [vmem:[%s6923_s21 + $0x20] sm:$0xff]   ;;  %s8678_s29 = scalar_lea.vmem [#allocation3], %s5542_s27  ;;  %s8753_s13 = scalar_lea.sflag [#allocation4], %s368_s25 }
  0x1d   : > { %606 = vmatprep.mubr.bf16.mxu1 %v6783_v4  ;;  %707 = vmatpush1.bf16.msra.mxu1 %v687_v17  ;;  %v6517_v30 = vld [vmem:[%s6941_s26 + $0x10] sm:$0xff]   ;;  %v6524_v31 = vld [vmem:[%s6941_s26] sm:$0xff]   ;;  %v6525_v32 = vld [vmem:[%s6941_s26 + $0x8] sm:$0xff]  }
  0x1e   : > { %5638 = vmatprep.subr.msk.bf16.mxu0 %vm497_vm0, %v5637_v16  ;;  %5618 = vmatprep.subr.msk.bf16.mxu1 %vm497_vm0, %v5617_v18  ;;  %v871_v33 = vshll.u32 %v6524_v31, 16  ;;  %v6518_v34 = vld [vmem:[%s6923_s21 + $0x28] sm:$0xff]   ;;  %v6519_v35 = vld [vmem:[%s6941_s26 + $0x18] sm:$0xff]   ;;  %v869_v36 = vshrl.u32 %v6524_v31, 16  ;;  %v876_v38 = vshll.u32 %v6525_v32, 16  ;;  %v6528_v41 = vld [vmem:[%s6941_s26 + $0x10] sm:$0xff]  }
  0x1f   : > { %v6523_v44 = vld [vmem:[%s6941_s26 + $0x20] sm:$0xff]   ;;  %v880_v46 = vshrl.u32 %v6525_v32, 16  ;;  %v884_v47 = vshll.u32 %v6528_v41, 16  ;;  %v6530_v49 = vld [vmem:[%s6941_s26 + $0x18] sm:$0xff]   ;;  %v6527_v54 = vld [vmem:[%s6941_s26 + $0x28] sm:$0xff]   ;;  %v888_v55 = vshrl.u32 %v6528_v41, 16 }
  0x20   : > { %v873_v37 = vrot.slane %v871_v33, 1  ;;  %v878_v40 = vrot.slane %v876_v38, 1  ;;  %v892_v53 = vshll.u32 %v6530_v49, 16  ;;  %v6532_v57 = vld [vmem:[%s6941_s26 + $0x20] sm:$0xff]   ;;  %v6529_v61 = vld [vmem:[%s6941_s26 + $0x30] sm:$0xff]   ;;  %v896_v62 = vshrl.u32 %v6530_v49, 16  ;;  %vm7945_vm5 = vmand %vm497_vm0, %vm3080_vm3 }
  0x21   : > { %v886_v52 = vrot.slane %v884_v47, 1  ;;  %v900_v60 = vshll.u32 %v6532_v57, 16  ;;  %v6533_v0 = vld [vmem:[%s6941_s26 + $0x28] sm:$0xff]   ;;  %v6535_v5 = vld [vmem:[%s6941_s26 + $0x30] sm:$0xff]   ;;  %v6531_v7 = vld [vmem:[%s6941_s26 + $0x38] sm:$0xff]   ;;  %v904_v8 = vshrl.u32 %v6532_v57, 16 }
  0x22   : > { %v874_v39 = vor.u32 %v873_v37, %v869_v36  ;;  %v882_v51 = vor.u32 %v880_v46, %v878_v40  ;;  %v894_v58 = vrot.slane %v892_v53, 1  ;;  %v908_v3 = vshll.u32 %v6533_v0, 16  ;;  %v6537_v15 = vld [vmem:[%s6941_s26 + $0x38] sm:$0xff]   ;;  %v6534_v17 = vld [vmem:[%s6972_s17] sm:$0xff]   ;;  %v6538_v31 = vld [vmem:[%s6972_s17 + $0x10] sm:$0xff]  }
  0x23   : > { %5560 = vmatmul.mubr.msk.bf16.gmra.mxu0 %vm472_vm1, %v6508_v19  ;;  %5566 = vmatmul.mubr.msk.bf16.gmra.mxu1 %vm472_vm1, %v6509_v20  ;;  %v890_v59 = vor.u32 %v888_v55, %v886_v52  ;;  %v902_v1 = vrot.slane %v900_v60, 1  ;;  %v912_v10 = vshrl.u32 %v6533_v0, 16  ;;  %v916_v13 = vshll.u32 %v6535_v5, 16  ;;  %v7047_v16 = vld [vmem:[%s8797_s4 + $0x38] sm:$0xff]  ;;  %v6544_v38 = vld [vmem:[%s6972_s17 + $0x20] sm:$0xff]   ;;  %v6549_v46 = vld [vmem:[%s6972_s17 + $0x30] sm:$0xff]  }
  0x24   : > { %556 = vmatprep.mubr.bf16.mxu0 %v6783_v4  ;;  %724 = vmatprep.mubr.bf16.mxu1 %v6783_v4  ;;  %v879_v45 = vsel %vm867_vm2, %v874_v39, %v878_v40  ;;  %v887_v56 = vsel %vm867_vm2, %v882_v51, %v886_v52  ;;  %v898_v2 = vor.u32 %v896_v62, %v894_v58  ;;  %v910_v12 = vrot.slane %v908_v3, 1  ;;  %v6545_v39 = vld [vmem:[%s6987_s24] sm:$0xff]   ;;  %v6551_v51 = vld [vmem:[%s6972_s17 + $0x38] sm:$0xff]   ;;  %v6557_v57 = vld [vmem:[%s6972_s17 + $0x10] sm:$0xff]  }
  0x25   : > { %v895_v63 = vsel %vm867_vm2, %v890_v59, %v894_v58  ;;  %v906_v14 = vor.u32 %v904_v8, %v902_v1  ;;  %v918_v19 = vrot.slane %v916_v13, 1  ;;  %v920_v20 = vshrl.u32 %v6535_v5, 16  ;;  %v7084_v40 = vld [vmem:[%s8797_s4 + $0x40] sm:$0xff]  ;;  %v6556_v3 = vld [vmem:[%s6987_s24 + $0x28] sm:$0xff]   ;;  %vm7969_vm7 = vmor %vm2916_vm4, %vm2917_vm6 }
  0x26   : > { %v903_v9 = vsel %vm867_vm2, %v898_v2, %v902_v1  ;;  %v924_v21 = vshll.u32 %v6537_v15, 16  ;;  %v914_v23 = vor.u32 %v912_v10, %v910_v12  ;;  %v5677_v37 = vcombine.low %v7006_v43, %v7006_v43  ;;  %v6547_v43 = vld [vmem:[%s6972_s17 + $0x28] sm:$0xff]   ;;  %v6554_v47 = vld [vmem:[%s6972_s17] sm:$0xff]   ;;  %v6559_v2 = vld [vmem:[%s6972_s17 + $0x18] sm:$0xff]  }
  0x27   : > { %v911_v18 = vsel %vm867_vm2, %v906_v14, %v910_v12  ;;  %v5719_v42 = vcombine.high %v7084_v40, %v7084_v40  ;;  %v1657_v49 = vshll.u32 %v6554_v47, 16  ;;  %v1655_v52 = vshrl.u32 %v6554_v47, 16  ;;  %v6553_v59 = vld [vmem:[%s6987_s24 + $0x20] sm:$0xff]   ;;  %vm3101_vm10 = vmand %vm3100_vm9, %vm2916_vm4 }
  0x28   : > { %v1990_v41 = vsel %vm497_vm0, %v5677_v37, 0  ;;  %v5697_v58 = vcombine.low %v7047_v16, %v7047_v16  ;;  %v1670_v62 = vshll.u32 %v6557_v57, 16  ;;  %v1674_v6 = vshrl.u32 %v6557_v57, 16  ;;  %v6561_v10 = vld [vmem:[%s6972_s17 + $0x20] sm:$0xff]   ;;  %v2756_v57 = vld [vmem:[%s8801_s8 + $0x30] sm:$0xff] }
  0x29   : > { %v1659_v53 = vrot.slane %v1657_v49, 1  ;;  %v1682_v13 = vshrl.u32 %v6559_v2, 16  ;;  %v1686_v14 = vshll.u32 %v6561_v10, 16  ;;  %v2754_v49 = vld [vmem:[%s8801_s8 + $0x20] sm:$0xff] }
  0x2a   : > { %v1672_v1 = vrot.slane %v1670_v62, 1 }
  0x2b   : > { %5561 = vmatmul.mubr.msk.bf16.gmra.mxu0 %vm472_vm1, %v6512_v22  ;;  %5578 = vmatmul.mubr.msk.bf16.vlgmr.msra.gmra.mxu1 %vm472_vm1, %v6513_v24  ;;  %v5698_v22 = vcombine.high %v7047_v16, %v7047_v16  ;;  %v6539_v24 = vld [vmem:[%s6941_s26 + $0x40] ss:$0 sps:$4 sm:$0x11]   ;;  %v1660_v55 = vor.u32 %v1659_v53, %v1655_v52  ;;  %v1688_v16 = vrot.slane %v1686_v14, 1 }
  0x2c   : > { %566 = vmatprep.mubr.bf16.mxu0 %v6783_v4  ;;  %734 = vmatprep.mubr.bf16.mxu1 %v6783_v4  ;;  %v1676_v8 = vor.u32 %v1674_v6, %v1672_v1 }
  0x2d   : > { %1224 = vmatpush1.bf16.msra.mxu1 %v1204_v25  ;;  %v6536_v25 = vld [vmem:[%s6972_s17 + $0x8] sm:$0xff]  }
  0x2e   : > { %5659 = vmatprep.subr.msk.bf16.mxu1 %vm497_vm0, %v5658_v26  ;;  %v919_v26 = vsel %vm867_vm2, %v914_v23, %v918_v19 }
  0x33   : > { %5562 = vmatmul.mubr.msk.bf16.gmra.mxu0 %vm472_vm1, %v6514_v27  ;;  %5579 = vmatmul.mubr.msk.bf16.gmra.mxu1 %vm472_vm1, %v6515_v28  ;;  %v926_v27 = vrot.slane %v924_v21, 1  ;;  %v928_v28 = vshrl.u32 %v6537_v15, 16 }
  0x34   : > { %576 = vmatprep.mubr.bf16.mxu0 %v6783_v4  ;;  %744 = vmatprep.mubr.bf16.mxu1 %v6783_v4 }
  0x3b   : > { %5563 = vmatmul.mubr.msk.bf16.gmra.mxu0 %vm472_vm1, %v6516_v29  ;;  %5580 = vmatmul.mubr.msk.bf16.gmra.mxu1 %vm472_vm1, %v6517_v30  ;;  %v932_v29 = vshll.u32 %v6539_v24, 16  ;;  %v922_v30 = vor.u32 %v920_v20, %v918_v19  ;;  %v1690_v20 = vshrl.u32 %v6561_v10, 16  ;;  %v5718_v24 = vcombine.low %v7084_v40, %v7084_v40  ;;  %v6574_v10 = vld [vmem:[%s6941_s26 + $0x28] sm:$0xff]  }
  0x3c   : > { %586 = vmatprep.mubr.bf16.mxu0 %v6783_v4  ;;  %754 = vmatprep.mubr.bf16.mxu1 %v6783_v4 }
  0x3d   : > { %v927_v32 = vsel %vm867_vm2, %v922_v30, %v926_v27  ;;  %v934_v33 = vrot.slane %v932_v29, 1 }
  0x43   : > { %5564 = vmatmul.mubr.msk.bf16.gmra.mxu0 %vm472_vm1, %v6518_v34  ;;  %5581 = vmatmul.mubr.msk.bf16.gmra.mxu1 %vm472_vm1, %v6519_v35  ;;  %v930_v34 = vor.u32 %v928_v28, %v926_v27  ;;  %v6540_v35 = vld [vmem:[%s6972_s17 + $0x18] sm:$0xff]   ;;  %v2538_v28 = vsel %vm497_vm0, %v5718_v24, 0 }
  0x44   : > { %1003 = vmatprep.mubr.bf16.mxu0 %v6783_v4  ;;  %764 = vmatprep.mubr.bf16.mxu1 %v6783_v4 }
  0x45   : > { %v935_v36 = vsel %vm867_vm2, %v930_v34, %v934_v33  ;;  %v6570_v33 = vld [vmem:[%s6972_s17 + $0x38] sm:$0xff]   ;;  %v6569_v34 = vld [vmem:[%s6941_s26 + $0x10] sm:$0xff]  }
  0x46   : > { %v1710_v37 = vshll.u32 %v6570_v33, 16 }
  0x48   : > { %v1712_v40 = vrot.slane %v1710_v37, 1 }
  0x4b   : > { %5599 = vmatmul.mubr.msk.bf16.vlgmr.msra.gmra.mxu0 %vm472_vm1, %v879_v45  ;;  %5582 = vmatmul.mubr.msk.bf16.gmra.mxu1 %vm472_vm1, %v6523_v44  ;;  %v6548_v44 = vld [vmem:[%s6987_s24 + $0x8] sm:$0xff]   ;;  %v6550_v45 = vld [vmem:[%s6987_s24 + $0x10] sm:$0xff]  }
  0x4c   : > { %1462 = vmatpush1.bf16.msra.mxu0 %v1442_v48  ;;  %774 = vmatprep.mubr.bf16.mxu1 %v6783_v4  ;;  %v6555_v48 = vld [vmem:[%s6972_s17 + $0x8] sm:$0xff]  }
  0x4d   : > { %1013 = vmatprep.mubr.bf16.mxu0 %v6783_v4  ;;  %5679 = vmatprep.subr.msk.bf16.mxu0 %vm497_vm0, %v5678_v50  ;;  %v6552_v50 = vld [vmem:[%s6987_s24 + $0x18] sm:$0xff]  }
  0x53   : > { %5600 = vmatmul.mubr.msk.bf16.gmra.mxu0 %vm472_vm1, %v887_v56  ;;  %5583 = vmatmul.mubr.msk.bf16.gmra.mxu1 %vm472_vm1, %v6527_v54  ;;  %v1662_v54 = vshll.u32 %v6555_v48, 16 }
  0x54   : > { %1023 = vmatprep.mubr.bf16.mxu0 %v6783_v4  ;;  %784 = vmatprep.mubr.bf16.mxu1 %v6783_v4 }
  0x55   : > { %v1664_v56 = vrot.slane %v1662_v54, 1 }
  0x57   : > { %v1665_v60 = vsel %vm867_vm2, %v1660_v55, %v1664_v56 }
  0x5b   : > { %5601 = vmatmul.mubr.msk.bf16.gmra.mxu0 %vm472_vm1, %v895_v63  ;;  %5584 = vmatmul.mubr.msk.bf16.gmra.mxu1 %vm472_vm1, %v6529_v61  ;;  %v1666_v61 = vshrl.u32 %v6555_v48, 16  ;;  %v2228_v63 = vsel %vm497_vm0, %v5697_v58, 0  ;;  %v2753_v48 = vld [vmem:[%s8801_s8 + $0x18] sm:$0xff] }
  0x5c   : > { %1033 = vmatprep.mubr.bf16.mxu0 %v6783_v4  ;;  %794 = vmatprep.mubr.bf16.mxu1 %v6783_v4 }
  0x5d   : > { %v1668_v0 = vor.u32 %v1666_v61, %v1664_v56  ;;  %v2755_v56 = vld [vmem:[%s8801_s8 + $0x28] sm:$0xff] }
  0x5f   : > { %v1673_v5 = vsel %vm867_vm2, %v1668_v0, %v1672_v1  ;;  %v2757_v0 = vld [vmem:[%s8801_s8 + $0x38] sm:$0xff]  ;;  %v2758_v1 = vld [vmem:[%s8801_s8 + $0x40] sm:$0xff] }
  0x63   : > { %5602 = vmatmul.mubr.msk.bf16.gmra.mxu0 %vm472_vm1, %v903_v9  ;;  %5585 = vmatmul.mubr.msk.bf16.gmra.mxu1 %vm472_vm1, %v6531_v7  ;;  %v1678_v7 = vshll.u32 %v6559_v2, 16 }
  0x64   : > { %1043 = vmatprep.mubr.bf16.mxu0 %v6783_v4  ;;  %1241 = vmatprep.mubr.bf16.mxu1 %v6783_v4 }
  0x65   : > { %v1680_v9 = vrot.slane %v1678_v7, 1  ;;  %v2759_v7 = vld [vmem:[%s8801_s8 + $0x48] sm:$0xff] }
  0x67   : > { %v1681_v12 = vsel %vm867_vm2, %v1676_v8, %v1680_v9  ;;  %v1684_v15 = vor.u32 %v1682_v13, %v1680_v9  ;;  %v2760_v8 = vld [vmem:[%s8801_s8 + $0x50] sm:$0xff] }
  0x69   : > { %v1689_v19 = vsel %vm867_vm2, %v1684_v15, %v1688_v16  ;;  %v2761_v15 = vld [vmem:[%s8801_s8 + $0x58] sm:$0xff] }
  0x6b   : > { %5603 = vmatmul.mubr.msk.bf16.gmra.mxu0 %vm472_vm1, %v911_v18  ;;  %5619 = vmatmul.mubr.msk.bf16.vlgmr.msra.gmra.mxu1 %vm472_vm1, %v6534_v17  ;;  %v6565_v17 = vld [vmem:[%s6972_s17 + $0x28] sm:$0xff]   ;;  %v6560_v18 = vld [vmem:[%s6987_s24 + $0x38] sm:$0xff]  }
  0x6c   : > { %1053 = vmatprep.mubr.bf16.mxu0 %v6783_v4  ;;  %1251 = vmatprep.mubr.bf16.mxu1 %v6783_v4  ;;  %v1694_v21 = vshll.u32 %v6565_v17, 16  ;;  %v1698_v29 = vshrl.u32 %v6565_v17, 16 }
  0x6d   : > { %1772 = vmatpush1.bf16.msra.mxu1 %v1752_v11  ;;  %v6558_v11 = vld [vmem:[%s6987_s24 + $0x30] sm:$0xff]  }
  0x6e   : > { %5699 = vmatprep.subr.msk.bf16.mxu1 %vm497_vm0, %v5698_v22  ;;  %v1692_v22 = vor.u32 %v1690_v20, %v1688_v16  ;;  %v1696_v23 = vrot.slane %v1694_v21, 1  ;;  %v2762_v16 = vld [vmem:[%s8801_s8 + $0x60] sm:$0xff] }
  0x70   : > { %v1697_v27 = vsel %vm867_vm2, %v1692_v22, %v1696_v23  ;;  %v2763_v22 = vld [vmem:[%s8801_s8 + $0x68] sm:$0xff] }
  0x73   : > { %5604 = vmatmul.mubr.msk.bf16.gmra.mxu0 %vm472_vm1, %v919_v26  ;;  %5620 = vmatmul.mubr.msk.bf16.gmra.mxu1 %vm472_vm1, %v6536_v25  ;;  %v6568_v25 = vld [vmem:[%s6972_s17 + $0x30] sm:$0xff]   ;;  %v6566_v26 = vld [vmem:[%s6941_s26 + $0x8] sm:$0xff]  }
  0x74   : > { %1063 = vmatprep.mubr.bf16.mxu0 %v6783_v4  ;;  %1261 = vmatprep.mubr.bf16.mxu1 %v6783_v4  ;;  %v1702_v30 = vshll.u32 %v6568_v25, 16 }
  0x7b   : > { %5605 = vmatmul.mubr.msk.bf16.gmra.mxu0 %vm472_vm1, %v927_v32  ;;  %5621 = vmatmul.mubr.msk.bf16.gmra.mxu1 %vm472_vm1, %v6538_v31  ;;  %v1700_v31 = vor.u32 %v1698_v29, %v1696_v23  ;;  %v1704_v32 = vrot.slane %v1702_v30, 1  ;;  %v2764_v23 = vld [vmem:[%s8801_s8 + $0x70] sm:$0xff] }
  0x7c   : > { %1073 = vmatprep.mubr.bf16.mxu0 %v6783_v4  ;;  %1271 = vmatprep.mubr.bf16.mxu1 %v6783_v4 }
  0x83   : > { %5606 = vmatmul.mubr.msk.bf16.gmra.mxu0 %vm472_vm1, %v935_v36  ;;  %5622 = vmatmul.mubr.msk.bf16.gmra.mxu1 %vm472_vm1, %v6540_v35  ;;  %v1705_v35 = vsel %vm867_vm2, %v1700_v31, %v1704_v32  ;;  %v1706_v36 = vshrl.u32 %v6568_v25, 16 }
  0x84   : > { %1479 = vmatprep.mubr.bf16.mxu0 %v6783_v4  ;;  %1281 = vmatprep.mubr.bf16.mxu1 %v6783_v4 }
  0x8b   : > { %5639 = vmatmul.mubr.msk.bf16.vlgmr.msra.gmra.mxu0 %vm472_vm1, %v6545_v39  ;;  %5623 = vmatmul.mubr.msk.bf16.gmra.mxu1 %vm472_vm1, %v6544_v38  ;;  %v2750_v38 = vld [vmem:[%s8801_s8] sm:$0xff]  ;;  %v1708_v39 = vor.u32 %v1706_v36, %v1704_v32  ;;  %v2765_v32 = vld [vmem:[%s8801_s8 + $0x78] sm:$0xff] }
  0x8c   : > { %2010 = vmatpush1.bf16.msra.mxu0 %v1990_v41  ;;  %1291 = vmatprep.mubr.bf16.mxu1 %v6783_v4  ;;  %v6572_v41 = vld [vmem:[%s6972_s17 + $0x40] ss:$0 sps:$4 sm:$0x11]   ;;  %s5440_s17 = sshll.u32 %s8678_s29, 4  ;;  %s8747_s17 = int_to_ptr.vmem [resolvable:$true] %s5440_s17 }
  0x8d   : > { %1489 = vmatprep.mubr.bf16.mxu0 %v6783_v4  ;;  %5720 = vmatprep.subr.msk.bf16.mxu0 %vm497_vm0, %v5719_v42  ;;  %v2752_v42 = vld [vmem:[%s8801_s8 + $0x10] sm:$0xff]  ;;  %v1718_v47 = vshll.u32 %v6572_v41, 16  ;;  %v6578_v41 = vld [vmem:[%s6941_s26 + $0x38] sm:$0xff]  }
  0x8e   : > { %2768 = vperm.xlu0 %6500, %v2750_v38   ;;  %2778 = vperm.xlu1 %6501, %v2752_v42  }
  0x8f   : > { %v1720_v54 = vrot.slane %v1718_v47, 1 }
  0x92   : > { %2783 = vperm.xlu1 %6501, %v2753_v48  }
  0x93   : > { %5640 = vmatmul.mubr.msk.bf16.gmra.mxu0 %vm472_vm1, %v6548_v44  ;;  %5624 = vmatmul.mubr.msk.bf16.gmra.mxu1 %vm472_vm1, %v6547_v43  ;;  %v2751_v43 = vld [vmem:[%s8801_s8 + $0x8] sm:$0xff]  ;;  %v6571_v44 = vld [vmem:[%s6941_s26 + $0x18] sm:$0xff]  }
  0x94   : > { %1499 = vmatprep.mubr.bf16.mxu0 %v6783_v4  ;;  %1301 = vmatprep.mubr.bf16.mxu1 %v6783_v4 }
  0x95   : > { %2773 = vperm.xlu0 %6500, %v2751_v43   ;;  %v6579_v43 = vld [vmem:[%s6923_s21 + $0x18] sm:$0xff]  }
  0x96   : > { %2793 = vperm.xlu1 %6501, %v2755_v56  }
  0x99   : > { %2788 = vperm.xlu0 %6500, %v2754_v49  }
  0x9a   : > { %2803 = vperm.xlu1 %6501, %v2757_v0   ;;  %v6581_v0 = vld [vmem:[%s6923_s21 + $0x20] sm:$0xff]  }
  0x9b   : > { %5641 = vmatmul.mubr.msk.bf16.gmra.mxu0 %vm472_vm1, %v6550_v45  ;;  %5625 = vmatmul.mubr.msk.bf16.gmra.mxu1 %vm472_vm1, %v6549_v46  ;;  %v1713_v45 = vsel %vm867_vm2, %v1708_v39, %v1712_v40  ;;  %v1714_v46 = vshrl.u32 %v6570_v33, 16 }
  0x9c   : > { %1509 = vmatprep.mubr.bf16.mxu0 %v6783_v4  ;;  %1311 = vmatprep.mubr.bf16.mxu1 %v6783_v4 }
  0x9d   : > { %v1716_v53 = vor.u32 %v1714_v46, %v1712_v40  ;;  %2798 = vperm.xlu0 %6500, %v2756_v57  }
  0x9e   : > { %2813 = vperm.xlu1 %6501, %v2759_v7  }
  0x9f   : > { %v1721_v62 = vsel %vm867_vm2, %v1716_v53, %v1720_v54 }
  0xa1   : > { %2808 = vperm.xlu0 %6500, %v2758_v1  }
  0xa2   : > { %2823 = vperm.xlu1 %6501, %v2761_v15  }
  0xa3   : > { %5642 = vmatmul.mubr.msk.bf16.gmra.mxu0 %vm472_vm1, %v6552_v50  ;;  %5626 = vmatmul.mubr.msk.bf16.gmra.mxu1 %vm472_vm1, %v6551_v51 }
  0xa4   : > { %1519 = vmatprep.mubr.bf16.mxu0 %v6783_v4  ;;  %1789 = vmatprep.mubr.bf16.mxu1 %v6783_v4 }
  0xa5   : > { %2818 = vperm.xlu0 %6500, %v2760_v8  }
  0xa6   : > { %2833 = vperm.xlu1 %6501, %v2763_v22  }
  0xa9   : > { %2828 = vperm.xlu0 %6500, %v2762_v16  }
  0xaa   : > { %2843 = vperm.xlu1 %6501, %v2765_v32  }
  0xab   : > { %5643 = vmatmul.mubr.msk.bf16.gmra.mxu0 %vm472_vm1, %v6553_v59  ;;  %5660 = vmatmul.mubr.msk.bf16.vlgmr.msra.gmra.mxu1 %vm472_vm1, %v1665_v60  ;;  %v6573_v59 = vld [vmem:[%s6941_s26 + $0x20] sm:$0xff]  }
  0xac   : > { %1529 = vmatprep.mubr.bf16.mxu0 %v6783_v4  ;;  %1799 = vmatprep.mubr.bf16.mxu1 %v6783_v4 }
  0xad   : > { %2248 = vmatpush1.bf16.msra.mxu1 %v2228_v63  ;;  %2838 = vperm.xlu0 %6500, %v2764_v23  }
  0xb3   : > { %5644 = vmatmul.mubr.msk.bf16.gmra.mxu0 %vm472_vm1, %v6556_v3  ;;  %5661 = vmatmul.mubr.msk.bf16.gmra.mxu1 %vm472_vm1, %v1673_v5 }
  0xb4   : > { %1539 = vmatprep.mubr.bf16.mxu0 %v6783_v4  ;;  %1809 = vmatprep.mubr.bf16.mxu1 %v6783_v4 }
  0xbb   : > { %5645 = vmatmul.mubr.msk.bf16.gmra.mxu0 %vm472_vm1, %v6558_v11  ;;  %5662 = vmatmul.mubr.msk.bf16.gmra.mxu1 %vm472_vm1, %v1681_v12  ;;  %v6575_v12 = vld [vmem:[%s6923_s21 + $0x8] sm:$0xff]  }
  0xbc   : > { %1549 = vmatprep.mubr.bf16.mxu0 %v6783_v4  ;;  %1819 = vmatprep.mubr.bf16.mxu1 %v6783_v4 }
  0xc3   : > { %5646 = vmatmul.mubr.msk.bf16.gmra.mxu0 %vm472_vm1, %v6560_v18  ;;  %5663 = vmatmul.mubr.msk.bf16.gmra.mxu1 %vm472_vm1, %v1689_v19 }
  0xc4   : > { %2027 = vmatprep.mubr.bf16.mxu0 %v6783_v4  ;;  %1829 = vmatprep.mubr.bf16.mxu1 %v6783_v4 }
  0xcb   : > { %5680 = vmatmul.mubr.msk.bf16.vlgmr.msra.gmra.mxu0 %vm472_vm1, %v6566_v26  ;;  %5664 = vmatmul.mubr.msk.bf16.gmra.mxu1 %vm472_vm1, %v1697_v27  ;;  %v6576_v26 = vld [vmem:[%s6941_s26 + $0x30] sm:$0xff]  }
  0xcc   : > { %2558 = vmatpush1.bf16.msra.mxu0 %v2538_v28  ;;  %1839 = vmatprep.mubr.bf16.mxu1 %v6783_v4  ;;  %v6577_v28 = vld [vmem:[%s6923_s21 + $0x10] sm:$0xff]  }
  0xcd   : > { %2037 = vmatprep.mubr.bf16.mxu0 %v6783_v4 }
  0xd3   : > { %5681 = vmatmul.mubr.msk.bf16.gmra.mxu0 %vm472_vm1, %v6569_v34  ;;  %5665 = vmatmul.mubr.msk.bf16.gmra.mxu1 %vm472_vm1, %v1705_v35 }
  0xd4   : > { %2047 = vmatprep.mubr.bf16.mxu0 %v6783_v4  ;;  %1849 = vmatprep.mubr.bf16.mxu1 %v6783_v4 }
  0xdb   : > { %v538_v50 = vpop.f32.mrf.mxu0  ;;  %5682 = vmatmul.mubr.msk.bf16.gmra.mxu0 %vm472_vm1, %v6571_v44  ;;  %v7181_v51 = vpop.f32.mrf.mxu1  ;;  %5666 = vmatmul.mubr.msk.bf16.gmra.mxu1 %vm472_vm1, %v1713_v45  ;;  %v6583_v44 = vld [vmem:[%s6941_s26 + $0x8] sm:$0xff]  }
  0xdc   : > { %2057 = vmatprep.mubr.bf16.mxu0 %v6783_v4  ;;  %1859 = vmatprep.mubr.bf16.mxu1 %v6783_v4  ;;  %v2443_v53 = vshll.u32 %v6583_v44, 16  ;;  %v2441_v1 = vshrl.u32 %v6583_v44, 16 }
  0xdd   : > { %v540_v52 = vpop.f32.mrf.mxu0  ;;  %v7186_v55 = vpop.f32.mrf.mxu1 }
  0xdf   : > { %v542_v58 = vpop.f32.mrf.mxu0  ;;  %v7195_v60 = vpop.f32.mrf.mxu1 }
  0xe1   : > { %v544_v61 = vpop.f32.mrf.mxu0  ;;  %v7198_v63 = vpop.f32.mrf.mxu1 }
  0xe3   : > { %v548_v2 = vpop.f32.mrf.mxu0  ;;  %5683 = vmatmul.mubr.msk.bf16.gmra.mxu0 %vm472_vm1, %v6573_v59  ;;  %v7207_v3 = vpop.f32.mrf.mxu1  ;;  %5667 = vmatmul.mubr.msk.bf16.gmra.mxu1 %vm472_vm1, %v1721_v62 }
  0xe4   : > { %2067 = vmatprep.mubr.bf16.mxu0 %v6783_v4  ;;  %2265 = vmatprep.mubr.bf16.mxu1 %v6783_v4 }
  0xe5   : > { %v550_v5 = vpop.f32.mrf.mxu0  ;;  %v7212_v6 = vpop.f32.mrf.mxu1 }
  0xe7   : > { %v552_v9 = vpop.f32.mrf.mxu0  ;;  %v7221_v11 = vpop.f32.mrf.mxu1 }
  0xe9   : > { %v554_v13 = vpop.f32.mrf.mxu0  ;;  %v7224_v14 = vpop.f32.mrf.mxu1 }
  0xeb   : > { %v558_v17 = vpop.f32.mrf.mxu0  ;;  %5684 = vmatmul.mubr.msk.bf16.gmra.mxu0 %vm472_vm1, %v6574_v10  ;;  %v726_v18 = vpop.f32.mrf.mxu1  ;;  %5700 = vmatmul.mubr.msk.bf16.vlgmr.msra.gmra.mxu1 %vm472_vm1, %v6575_v12 }
  0xec   : > { %2077 = vmatprep.mubr.bf16.mxu0 %v6783_v4  ;;  %v7235_v19 = vadd.f32 %v726_v18, %v538_v50  ;;  %2275 = vmatprep.mubr.bf16.mxu1 %v6783_v4 }
  0xed   : > { %v560_v20 = vpop.f32.mrf.mxu0  ;;  %v728_v21 = vpop.f32.mrf.mxu1 }
  0xee   : > { %v7244_v24 = vadd.f32 %v728_v21, %v540_v52  ;;  %v6584_v52 = vld [vmem:[%s6941_s26 + $0x10] sm:$0xff]  }
  0xef   : > { %v562_v25 = vpop.f32.mrf.mxu0  ;;  %v730_v27 = vpop.f32.mrf.mxu1 }
  0xf0   : > { %v7248_v29 = vadd.f32 %v730_v27, %v542_v58 }
  0xf1   : > { %v564_v30 = vpop.f32.mrf.mxu0  ;;  %v732_v31 = vpop.f32.mrf.mxu1 }
  0xf2   : > { %v7253_v33 = vadd.f32 %v732_v31, %v544_v61  ;;  %v6580_v61 = vld [vmem:[%s6941_s26 + $0x40] sm:$0xff]  }
  0xf3   : > { %v568_v34 = vpop.f32.mrf.mxu0  ;;  %5685 = vmatmul.mubr.msk.bf16.gmra.mxu0 %vm472_vm1, %v6576_v26  ;;  %v736_v35 = vpop.f32.mrf.mxu1  ;;  %5701 = vmatmul.mubr.msk.bf16.gmra.mxu1 %vm472_vm1, %v6577_v28  ;;  %v6582_v26 = vld [vmem:[%s6923_s21 + $0x28] sm:$0xff]   ;;  %v2452_v28 = vshrl.u32 %v6584_v52, 16 }
  0xf4   : > { %2087 = vmatprep.mubr.bf16.mxu0 %v6783_v4  ;;  %v7258_v36 = vadd.f32 %v736_v35, %v548_v2  ;;  %2285 = vmatprep.mubr.bf16.mxu1 %v6783_v4  ;;  %v2445_v2 = vrot.slane %v2443_v53, 1 }
  0xf5   : > { %v570_v37 = vpop.f32.mrf.mxu0  ;;  %v738_v38 = vpop.f32.mrf.mxu1 }
  0xf6   : > { %v7261_v39 = vadd.f32 %v738_v38, %v550_v5  ;;  %v2448_v5 = vshll.u32 %v6584_v52, 16  ;;  %v2446_v15 = vor.u32 %v2445_v2, %v2441_v1 }
  0xf7   : > { %v572_v40 = vpop.f32.mrf.mxu0  ;;  %v740_v42 = vpop.f32.mrf.mxu1 }
  0xf8   : > { %v7266_v45 = vadd.f32 %v740_v42, %v552_v9  ;;  %v2450_v16 = vrot.slane %v2448_v5, 1 }
  0xf9   : > { %v574_v46 = vpop.f32.mrf.mxu0  ;;  %v742_v47 = vpop.f32.mrf.mxu1 }
  0xfa   : > { %v7268_v48 = vadd.f32 %v742_v47, %v554_v13  ;;  %v2451_v27 = vsel %vm867_vm2, %v2446_v15, %v2450_v16  ;;  %v2454_v42 = vor.u32 %v2452_v28, %v2450_v16  ;;  %v6590_v15 = vld [vmem:[%s6941_s26 + $0x28] sm:$0xff]   ;;  %v6587_v28 = vld [vmem:[%s6923_s21 + $0x38] sm:$0xff]  }
  0xfb   : > { %v578_v49 = vpop.f32.mrf.mxu0  ;;  %5686 = vmatmul.mubr.msk.bf16.gmra.mxu0 %vm472_vm1, %v6578_v41  ;;  %v746_v50 = vpop.f32.mrf.mxu1  ;;  %5702 = vmatmul.mubr.msk.bf16.gmra.mxu1 %vm472_vm1, %v6579_v43  ;;  %v6588_v43 = vld [vmem:[%s6941_s26 + $0x20] sm:$0xff]  }
  0xfc   : > { %2097 = vmatprep.mubr.bf16.mxu0 %v6783_v4  ;;  %v7274_v54 = vadd.f32 %v746_v50, %v558_v17  ;;  %2295 = vmatprep.mubr.bf16.mxu1 %v6783_v4  ;;  %v6586_v17 = vld [vmem:[%s6941_s26 + $0x18] sm:$0xff]  }
  0xfd   : > { %v580_v56 = vpop.f32.mrf.mxu0  ;;  %v748_v57 = vpop.f32.mrf.mxu1 }
  0xfe   : > { %v7277_v58 = vadd.f32 %v748_v57, %v560_v20 }
  0xff   : > { %v582_v59 = vpop.f32.mrf.mxu0  ;;  %v750_v62 = vpop.f32.mrf.mxu1 }
 0x100   : > { %v7281_v7 = vadd.f32 %v750_v62, %v562_v25 }
 0x101   : > { %v7283_v8 = vpop.f32.mrf.mxu0  ;;  %v752_v9 = vpop.f32.mrf.mxu1 }
 0x102   : > { %v7285_v10 = vadd.f32 %v752_v9, %v564_v30  ;;  %v2456_v30 = vshll.u32 %v6586_v17, 16 }
 0x103   : > { %v588_v12 = vpop.f32.mrf.mxu0  ;;  %5687 = vmatmul.mubr.msk.bf16.gmra.mxu0 %vm472_vm1, %v6580_v61  ;;  %v756_v13 = vpop.f32.mrf.mxu1  ;;  %5703 = vmatmul.mubr.msk.bf16.gmra.mxu1 %vm472_vm1, %v6581_v0  ;;  %v6585_v61 = vld [vmem:[%s6923_s21 + $0x30] sm:$0xff]   ;;  %v2464_v0 = vshll.u32 %v6588_v43, 16 }
 0x104   : > { %2575 = vmatprep.mubr.bf16.mxu0 %v6783_v4  ;;  %v7291_v18 = vadd.f32 %v756_v13, %v568_v34  ;;  %2305 = vmatprep.mubr.bf16.mxu1 %v6783_v4 }
 0x105   : > { %v590_v20 = vpop.f32.mrf.mxu0  ;;  %v758_v21 = vpop.f32.mrf.mxu1  ;;  %v2466_v13 = vrot.slane %v2464_v0, 1  ;;  %v6589_v0 = vld [vmem:[%s6923_s21 + $0x40] sm:$0xff]   ;;  %s6721_s21 = scalar_lea.vmem %s8747_s17, 2048 }
 0x106   : > { %v7294_v22 = vadd.f32 %v758_v21, %v570_v37  ;;  %p6722_p11 = scmp.ne.s32.totalorder %s8747_s17, %s6721_s21 }
 0x107   : > { %v592_v23 = vpop.f32.mrf.mxu0  ;;  %v760_v25 = vpop.f32.mrf.mxu1 }
 0x108   : > { %v7298_v31 = vadd.f32 %v760_v25, %v572_v40  ;;  %v2458_v40 = vrot.slane %v2456_v30, 1  ;;  %p6723_p12 = pnand %p6722_p11, %p6875_p5 }
 0x109   : > { %v7300_v32 = vpop.f32.mrf.mxu0  ;;  %v762_v34 = vpop.f32.mrf.mxu1 }
 0x10a   : > { %v7302_v35 = vadd.f32 %v762_v34, %v574_v46  ;;  %v2459_v62 = vsel %vm867_vm2, %v2454_v42, %v2458_v40  ;;  %v2472_v34 = vshll.u32 %v6590_v15, 16  ;;  %p6724_p13 = pneg %p6723_p12 }
 0x10b   : > { %v1005_v38 = vpop.f32.mrf.mxu0  ;;  %5721 = vmatmul.mubr.msk.bf16.vlgmr.msra.gmra.mxu0 %vm472_vm1, %v2451_v27  ;;  %v766_v37 = vpop.f32.mrf.mxu1  ;;  %5704 = vmatmul.mubr.msk.bf16.gmra.mxu1 %vm472_vm1, %v6582_v26 }
 0x10c   : > { %v7306_v41 = vadd.f32 %v1005_v38, %v7235_v19  ;;  %2585 = vmatprep.mubr.bf16.mxu0 %v6783_v4  ;;  %v7311_v44 = vadd.f32 %v766_v37, %v578_v49  ;;  %2315 = vmatprep.mubr.bf16.mxu1 %v6783_v4  ;;  %v2460_v49 = vshrl.u32 %v6586_v17, 16 }
 0x10d   : > { %v1007_v47 = vpop.f32.mrf.mxu0  ;;  %v768_v46 = vpop.f32.mrf.mxu1 }
 0x10e   : > { %v7315_v50 = vadd.f32 %v1007_v47, %v7244_v24  ;;  %v7317_v52 = vadd.f32 %v768_v46, %v580_v56  ;;  %v6591_v47 = vld [vmem:[%s6941_s26 + $0x30] sm:$0xff]  }
 0x10f   : > { %v1009_v19 = vpop.f32.mrf.mxu0  ;;  %v770_v53 = vpop.f32.mrf.mxu1 }
 0x110   : > { %v7320_v57 = vadd.f32 %v1009_v19, %v7248_v29  ;;  %v7324_v1 = vadd.f32 %v770_v53, %v582_v59  ;;  %v2462_v59 = vor.u32 %v2460_v49, %v2458_v40 }
 0x111   : > { %v1011_v2 = vpop.f32.mrf.mxu0  ;;  %v7326_v5 = vpop.f32.mrf.mxu1 }
 0x112   : > { %v7329_v24 = vadd.f32 %v1011_v2, %v7253_v33  ;;  %v2467_v30 = vsel %vm867_vm2, %v2462_v59, %v2466_v13  ;;  %v2476_v2 = vshrl.u32 %v6590_v15, 16 }
 0x113   : > { %v1015_v56 = vpop.f32.mrf.mxu0  ;;  %5722 = vmatmul.mubr.msk.bf16.gmra.mxu0 %vm472_vm1, %v2459_v62  ;;  %v776_v9 = vpop.f32.mrf.mxu1  ;;  %5705 = vmatmul.mubr.msk.bf16.gmra.mxu1 %vm472_vm1, %v6585_v61 }
 0x114   : > { %v7333_v29 = vadd.f32 %v1015_v56, %v7258_v36  ;;  %2595 = vmatprep.mubr.bf16.mxu0 %v6783_v4  ;;  %v7338_v16 = vadd.f32 %v776_v9, %v588_v12  ;;  %2325 = vmatprep.mubr.bf16.mxu1 %v6783_v4  ;;  %v2468_v12 = vshrl.u32 %v6588_v43, 16  ;;  %v2474_v43 = vrot.slane %v2472_v34, 1 }
 0x115   : > { %v1017_v17 = vpop.f32.mrf.mxu0  ;;  %v778_v33 = vpop.f32.mrf.mxu1  ;;  %v2480_v56 = vshll.u32 %v6591_v47, 16 }
 0x116   : > { %v7342_v21 = vadd.f32 %v1017_v17, %v7261_v39  ;;  %v7344_v25 = vadd.f32 %v778_v33, %v590_v20  ;;  %v2478_v15 = vor.u32 %v2476_v2, %v2474_v43  ;;  %v6592_v33 = vld [vmem:[%s6941_s26 + $0x38] sm:$0xff]  }
 0x117   : > { %v1019_v36 = vpop.f32.mrf.mxu0  ;;  %v780_v26 = vpop.f32.mrf.mxu1 }
 0x118   : > { %v7347_v27 = vadd.f32 %v1019_v36, %v7266_v45  ;;  %v7351_v38 = vadd.f32 %v780_v26, %v592_v23  ;;  %v2470_v23 = vor.u32 %v2468_v12, %v2466_v13 }
 0x119   : > { %v1021_v37 = vpop.f32.mrf.mxu0  ;;  %v7353_v42 = vpop.f32.mrf.mxu1 }
 0x11a   : > { %v7356_v39 = vadd.f32 %v1021_v37, %v7268_v48 }
 0x11b   : > { %v1025_v20 = vpop.f32.mrf.mxu0  ;;  %5723 = vmatmul.mubr.msk.bf16.gmra.mxu0 %vm472_vm1, %v2467_v30  ;;  %v786_v40 = vpop.f32.mrf.mxu1  ;;  %5706 = vmatmul.mubr.msk.bf16.gmra.mxu1 %vm472_vm1, %v6587_v28 }
 0x11c   : > { %v7360_v45 = vadd.f32 %v1025_v20, %v7274_v54  ;;  %2605 = vmatprep.mubr.bf16.mxu0 %v6783_v4  ;;  %v7366_v46 = vadd.f32 %v786_v40, %v7181_v51  ;;  %2335 = vmatprep.mubr.bf16.mxu1 %v6783_v4  ;;  %v2475_v51 = vsel %vm867_vm2, %v2470_v23, %v2474_v43  ;;  %v2484_v20 = vshrl.u32 %v6591_v47, 16 }
 0x11d   : > { %v1027_v48 = vpop.f32.mrf.mxu0  ;;  %v788_v19 = vpop.f32.mrf.mxu1  ;;  %v2488_v40 = vshll.u32 %v6592_v33, 16 }
 0x11e   : > { %v7370_v53 = vadd.f32 %v1027_v48, %v7277_v58  ;;  %v7373_v54 = vadd.f32 %v788_v19, %v7186_v55 }
 0x11f   : > { %v1029_v61 = vpop.f32.mrf.mxu0  ;;  %v790_v62 = vpop.f32.mrf.mxu1  ;;  %v2490_v19 = vrot.slane %v2488_v40, 1 }
 0x120   : > { %v7376_v49 = vadd.f32 %v1029_v61, %v7281_v7  ;;  %v7381_v9 = vadd.f32 %v790_v62, %v7195_v60  ;;  %v2482_v60 = vrot.slane %v2480_v56, 1  ;;  %v6593_v61 = vld [vmem:[%s6941_s26 + $0x40] sm:$0xff]  }
 0x121   : > { %v1031_v59 = vpop.f32.mrf.mxu0  ;;  %v7383_v58 = vpop.f32.mrf.mxu1 }
 0x122   : > { %v7386_v55 = vadd.f32 %v1031_v59, %v7285_v10  ;;  %v2483_v37 = vsel %vm867_vm2, %v2478_v15, %v2482_v60  ;;  %v2486_v47 = vor.u32 %v2484_v20, %v2482_v60 }
 0x123   : > { %v1035_v13 = vpop.f32.mrf.mxu0  ;;  %5724 = vmatmul.mubr.msk.bf16.gmra.mxu0 %vm472_vm1, %v2475_v51  ;;  %v796_v7 = vpop.f32.mrf.mxu1  ;;  %5707 = vmatmul.mubr.msk.bf16.gmra.mxu1 %vm472_vm1, %v6589_v0 }
 0x124   : > { %v7390_v17 = vadd.f32 %v1035_v13, %v7291_v18  ;;  %2615 = vmatprep.mubr.bf16.mxu0 %v6783_v4  ;;  %v7396_v36 = vadd.f32 %v796_v7, %v7207_v3  ;;  %v2491_v59 = vsel %vm867_vm2, %v2486_v47, %v2490_v19  ;;  %v2492_v13 = vshrl.u32 %v6592_v33, 16  ;;  %v6594_v33 = vld [vmem:[%s6941_s26 + $0x48] ss:$0 sps:$4 sm:$0x11]   ;;  %s6784_s26 = smov [#allocation3]  }
 0x125   : > { %v1037_v26 = vpop.f32.mrf.mxu0  ;;  %v798_v10 = vpop.f32.mrf.mxu1  ;;  %v2496_v7 = vshll.u32 %v6593_v61, 16  ;;  %v2504_v47 = vshll.u32 %v6594_v33, 16  ;;  %s6725_s24 = sshll.u32 %s6784_s26, 4  ;;  %s6726_s24 = int_to_ptr.vmem [resolvable:$false] %s6725_s24 }
 0x126   : > { %v7399_v28 = vadd.f32 %v1037_v26, %v7294_v22  ;;  %v7402_v30 = vadd.f32 %v798_v10, %v7212_v6  ;;  %v2494_v26 = vor.u32 %v2492_v13, %v2490_v19  ;;  %s6727_s28 = scalar_lea.vmem %s6726_s24, 4096  ;;  %p6728_p0 = scmp.lt.s32.totalorder %s8747_s17, %s6726_s24 }
 0x127   : > { %v1039_v18 = vpop.f32.mrf.mxu0  ;;  %v800_v12 = vpop.f32.mrf.mxu1  ;;  %v2498_v10 = vrot.slane %v2496_v7, 1  ;;  %p6729_p1 = scmp.lt.s32.totalorder %s6727_s28, %s6721_s21 }
 0x128   : > { %v7405_v34 = vadd.f32 %v1039_v18, %v7298_v31  ;;  %v7409_v3 = vadd.f32 %v800_v12, %v7221_v11 }
 0x129   : > { %v1041_v23 = vpop.f32.mrf.mxu0  ;;  %v7411_v43 = vpop.f32.mrf.mxu1  ;;  %p6730_p2 = por %p6729_p1, %p6728_p0 }
 0x12a   : > { %v7414_v22 = vadd.f32 %v1041_v23, %v7302_v35 }
 0x12b   : > { %v1045_v6 = vpop.f32.mrf.mxu0  ;;  %5725 = vmatmul.mubr.msk.bf16.gmra.mxu0 %vm472_vm1, %v2483_v37  ;;  %v1243_v31 = vpop.f32.mrf.mxu1  ;;  %p6731_p3 = pnand %p6730_p2, %p6724_p13 }
 0x12c   : > { %v7418_v48 = vadd.f32 %v1045_v6, %v7311_v44  ;;  %2625 = vmatprep.mubr.bf16.mxu0 %v6783_v4  ;;  %v7423_v11 = vadd.f32 %v1243_v31, %v7306_v41  ;;  %v2499_v6 = vsel %vm867_vm2, %v2494_v26, %v2498_v10  ;;  %v2500_v31 = vshrl.u32 %v6593_v61, 16 }
 0x12d   : > { %v1047_v62 = vpop.f32.mrf.mxu0  ;;  %v1245_v35 = vpop.f32.mrf.mxu1 }
 0x12e   : > { %v7426_v0 = vadd.f32 %v1047_v62, %v7317_v52  ;;  %v7429_v51 = vadd.f32 %v1245_v35, %v7315_v50  ;;  %v2502_v35 = vor.u32 %v2500_v31, %v2498_v10 }
 0x12f   : > { %v1049_v2 = vpop.f32.mrf.mxu0  ;;  %v1247_v56 = vpop.f32.mrf.mxu1 }
 0x130   : > { %v7432_v44 = vadd.f32 %v1049_v2, %v7324_v1  ;;  %v7436_v41 = vadd.f32 %v1247_v56, %v7320_v57  ;;  %v2506_v2 = vrot.slane %v2504_v47, 1 }
 0x131   : > { %v7438_v15 = vpop.f32.mrf.mxu0  ;;  %v7440_v52 = vpop.f32.mrf.mxu1 }
 0x133   : > { %v1055_v60 = vpop.f32.mrf.mxu0  ;;  %5726 = vmatmul.mubr.msk.bf16.gmra.mxu0 %vm472_vm1, %v2491_v59  ;;  %v1253_v1 = vpop.f32.mrf.mxu1 }
 0x134   : > { %v7444_v50 = vadd.f32 %v1055_v60, %v7338_v16  ;;  %2635 = vmatprep.mubr.bf16.mxu0 %v6783_v4  ;;  %v7449_v18 = vadd.f32 %v1253_v1, %v7333_v29 }
 0x135   : > { %v1057_v57 = vpop.f32.mrf.mxu0  ;;  %v1255_v37 = vpop.f32.mrf.mxu1 }
 0x136   : > { %v7452_v12 = vadd.f32 %v1057_v57, %v7344_v25  ;;  %v7455_v20 = vadd.f32 %v1255_v37, %v7342_v21 }
 0x137   : > { %v1059_v40 = vpop.f32.mrf.mxu0  ;;  %v1257_v23 = vpop.f32.mrf.mxu1 }
 0x138   : > { %v7458_v16 = vadd.f32 %v1059_v40, %v7351_v38  ;;  %v7462_v29 = vadd.f32 %v1257_v23, %v7347_v27 }
 0x139   : > { %v7464_v19 = vpop.f32.mrf.mxu0  ;;  %v7466_v25 = vpop.f32.mrf.mxu1 }
 0x13b   : > { %v1065_v62 = vpop.f32.mrf.mxu0  ;;  %5727 = vmatmul.mubr.msk.bf16.gmra.mxu0 %vm472_vm1, %v2499_v6  ;;  %v1263_v38 = vpop.f32.mrf.mxu1 }
 0x13c   : > { %v7470_v21 = vadd.f32 %v1065_v62, %v7366_v46  ;;  %2645 = vmatprep.mubr.bf16.mxu0 %v6783_v4  ;;  %v7474_v61 = vadd.f32 %v1263_v38, %v7360_v45  ;;  %v2507_v4 = vsel %vm867_vm2, %v2502_v35, %v2506_v2 }
 0x13d   : > { %v1067_v27 = vpop.f32.mrf.mxu0  ;;  %v1265_v59 = vpop.f32.mrf.mxu1 }
 0x13e   : > { %v7477_v56 = vadd.f32 %v1067_v27, %v7373_v54  ;;  %v7480_v13 = vadd.f32 %v1265_v59, %v7370_v53  ;;  %v6595_v53 = vld [vmem:[%s8798_s5 + $0x38] sm:$0xff]  }
 0x13f   : > { %v1069_v7 = vpop.f32.mrf.mxu0  ;;  %v1267_v60 = vpop.f32.mrf.mxu1  ;;  %6167 = vmatprep.subr.bf16.mxu1 %v6595_v53 }
 0x140   : > { %v7483_v46 = vadd.f32 %v1069_v7, %v7381_v9  ;;  %v7487_v1 = vadd.f32 %v1267_v60, %v7376_v49  ;;  %6168 = vmatpush3.bf16.msra.mxu1 %v6595_v53 }
 0x141   : > { %v7489_v45 = vpop.f32.mrf.mxu0  ;;  %v7491_v26 = vpop.f32.mrf.mxu1 }
 0x143   : > { %v1075_v54 = vpop.f32.mrf.mxu0  ;;  %5728 = vmatmul.mubr.msk.bf16.gmra.mxu0 %vm472_vm1, %v2507_v4  ;;  %v1273_v10 = vpop.f32.mrf.mxu1  ;;  %v6597_v4 = vld [vmem:[%s8798_s5 + $0x28] sm:$0xff]  }
 0x144   : > { %v7498_v9 = vadd.f32 %v1075_v54, %v7396_v36  ;;  %v7501_v33 = vadd.f32 %v1273_v10, %v7390_v17 }
 0x145   : > { %v1077_v49 = vpop.f32.mrf.mxu0  ;;  %v1275_v37 = vpop.f32.mrf.mxu1 }
 0x146   : > { %v7504_v57 = vadd.f32 %v1077_v49, %v7402_v30  ;;  %v7507_v40 = vadd.f32 %v1275_v37, %v7399_v28  ;;  %v6596_v30 = vld [vmem:[%s8798_s5 + $0x30] sm:$0xff]   ;;  %v6599_v49 = vld [vmem:[%s8798_s5 + $0x20] sm:$0xff]  }
 0x147   : > { %v1079_v23 = vpop.f32.mrf.mxu0  ;;  %v1277_v36 = vpop.f32.mrf.mxu1  ;;  %6169 = vmatprep.subr.bf16.mxu1 %v6596_v30 }
 0x148   : > { %v7510_v6 = vadd.f32 %v1079_v23, %v7409_v3  ;;  %v7513_v31 = vadd.f32 %v1277_v36, %v7405_v34  ;;  %6170 = vmatpush3.bf16.msra.mxu1 %v6596_v30  ;;  %v6600_v30 = vld [vmem:[%s8798_s5 + $0xb0] sm:$0xff]  }
 0x149   : > { %v7515_v17 = vpop.f32.mrf.mxu0  ;;  %v7517_v47 = vpop.f32.mrf.mxu1  ;;  %6171 = vmatprep.subr.bf16.mxu1 %v6597_v4 }
 0x14b   : > { %v1481_v62 = vpop.f32.mrf.mxu0  ;;  %v1283_v38 = vpop.f32.mrf.mxu1 }
 0x14c   : > { %v7523_v28 = vadd.f32 %v1481_v62, %v7423_v11  ;;  %v7526_v3 = vadd.f32 %v1283_v38, %v7418_v48  ;;  %6172 = vmatpush3.bf16.msra.mxu1 %v6597_v4 }
 0x14d   : > { %v1483_v35 = vpop.f32.mrf.mxu0  ;;  %v1285_v34 = vpop.f32.mrf.mxu1  ;;  %6173 = vmatprep.subr.bf16.mxu1 %v6599_v49 }
 0x14e   : > { %v7529_v2 = vadd.f32 %v1483_v35, %v7429_v51  ;;  %v7532_v27 = vadd.f32 %v1285_v34, %v7426_v0 }
 0x14f   : > { %v1485_v59 = vpop.f32.mrf.mxu0  ;;  %v1287_v7 = vpop.f32.mrf.mxu1 }
 0x150   : > { %v7535_v60 = vadd.f32 %v1485_v59, %v7436_v41  ;;  %v7538_v11 = vadd.f32 %v1287_v7, %v7432_v44  ;;  %v6598_v44 = vld [vmem:[%s8798_s5 + $0xb8] sm:$0xff]   ;;  %6174 = vmatpush3.bf16.msra.mxu1 %v6599_v49 }
 0x151   : > { %v7540_v48 = vpop.f32.mrf.mxu0  ;;  %v7545_v51 = vpop.f32.mrf.mxu1  ;;  %6231 = vmatprep.subr.bf16.mxu0 %v6598_v44 }
 0x152   : > { %8807 = vst [vmem:[#allocation6_spill] sm:$0xff] %v7535_v60  ;;  %6232 = vmatpush3.bf16.msra.mxu0 %v6598_v44 }
 0x153   : > { %v1491_v54 = vpop.f32.mrf.mxu0  ;;  %v1293_v0 = vpop.f32.mrf.mxu1  ;;  %6233 = vmatprep.subr.bf16.mxu0 %v6600_v30 }
 0x154   : > { %v7548_v53 = vadd.f32 %v1491_v54, %v7449_v18  ;;  %v7554_v41 = vadd.f32 %v1293_v0, %v7444_v50  ;;  %v6603_v54 = vld [vmem:[%s8798_s5 + $0x10] sm:$0xff]  }
 0x155   : > { %v1493_v10 = vpop.f32.mrf.mxu0  ;;  %v1295_v37 = vpop.f32.mrf.mxu1 }
 0x156   : > { %8808 = vst [vmem:[#allocation7_spill] sm:$0xff] %v7548_v53  ;;  %v7560_v23 = vadd.f32 %v1493_v10, %v7455_v20  ;;  %v7563_v18 = vadd.f32 %v1295_v37, %v7452_v12  ;;  %v6601_v12 = vld [vmem:[%s8798_s5 + $0x18] sm:$0xff]   ;;  %6234 = vmatpush3.bf16.msra.mxu0 %v6600_v30 }
 0x157   : > { %v1495_v36 = vpop.f32.mrf.mxu0  ;;  %v1297_v62 = vpop.f32.mrf.mxu1  ;;  %6175 = vmatprep.subr.bf16.mxu1 %v6601_v12 }
 0x158   : > { %v7566_v50 = vadd.f32 %v1495_v36, %v7462_v29  ;;  %v7572_v38 = vadd.f32 %v1297_v62, %v7458_v16  ;;  %6176 = vmatpush3.bf16.msra.mxu1 %v6601_v12  ;;  %v6602_v16 = vld [vmem:[%s8798_s5 + $0xa8] sm:$0xff]  }
 0x159   : > { %v7574_v20 = vpop.f32.mrf.mxu0  ;;  %v7579_v35 = vpop.f32.mrf.mxu1  ;;  %6235 = vmatprep.subr.bf16.mxu0 %v6602_v16  ;;  %6177 = vmatprep.subr.bf16.mxu1 %v6603_v54 }
 0x15a   : > { %8809 = vst [vmem:[#allocation8_spill] sm:$0xff] %v7566_v50  ;;  %6236 = vmatpush3.bf16.msra.mxu0 %v6602_v16 }
 0x15b   : > { %v1501_v34 = vpop.f32.mrf.mxu0  ;;  %v1303_v29 = vpop.f32.mrf.mxu1 }
 0x15c   : > { %v7582_v59 = vadd.f32 %v1501_v34, %v7474_v61  ;;  %v7588_v7 = vadd.f32 %v1303_v29, %v7470_v21  ;;  %6178 = vmatpush3.bf16.msra.mxu1 %v6603_v54  ;;  %v6606_v29 = vld [vmem:[%s8798_s5 + $0x98] sm:$0xff]  }
 0x15d   : > { %v1503_v4 = vpop.f32.mrf.mxu0  ;;  %v1305_v0 = vpop.f32.mrf.mxu1 }
 0x15e   : > { %8810 = vst [vmem:[#allocation9_spill] sm:$0xff] %v7582_v59  ;;  %v7594_v44 = vadd.f32 %v1503_v4, %v7480_v13  ;;  %v7597_v61 = vadd.f32 %v1305_v0, %v7477_v56  ;;  %v6604_v13 = vld [vmem:[%s8798_s5 + $0xa0] sm:$0xff]   ;;  %v6605_v56 = vld [vmem:[%s8798_s5 + $0x8] sm:$0xff]  }
 0x15f   : > { %v1505_v10 = vpop.f32.mrf.mxu0  ;;  %v1307_v49 = vpop.f32.mrf.mxu1  ;;  %6237 = vmatprep.subr.bf16.mxu0 %v6604_v13  ;;  %6179 = vmatprep.subr.bf16.mxu1 %v6605_v56 }
 0x160   : > { %v7600_v21 = vadd.f32 %v1505_v10, %v7487_v1  ;;  %v7603_v37 = vadd.f32 %v1307_v49, %v7483_v46  ;;  %6238 = vmatpush3.bf16.msra.mxu0 %v6604_v13  ;;  %6180 = vmatpush3.bf16.msra.mxu1 %v6605_v56  ;;  %v6609_v56 = vld [vmem:[%s8798_s5 + $0x90] sm:$0xff]  }
 0x161   : > { %v7605_v36 = vpop.f32.mrf.mxu0  ;;  %v7610_v62 = vpop.f32.mrf.mxu1  ;;  %6239 = vmatprep.subr.bf16.mxu0 %v6606_v29 }
 0x162   : > { %8811 = vst [vmem:[#allocation10_spill] sm:$0xff] %v7600_v21 }
 0x163   : > { %v1511_v30 = vpop.f32.mrf.mxu0  ;;  %v1313_v1 = vpop.f32.mrf.mxu1 }
 0x164   : > { %v7616_v12 = vadd.f32 %v1511_v30, %v7501_v33  ;;  %v7619_v46 = vadd.f32 %v1313_v1, %v7498_v9  ;;  %v6607_v33 = vld [vmem:[%s8798_s5] sm:$0xff]   ;;  %6240 = vmatpush3.bf16.msra.mxu0 %v6606_v29 }
 0x165   : > { %v1513_v34 = vpop.f32.mrf.mxu0  ;;  %v1315_v16 = vpop.f32.mrf.mxu1  ;;  %6181 = vmatprep.subr.bf16.mxu1 %v6607_v33  ;;  %6241 = vmatprep.subr.bf16.mxu0 %v6609_v56 }
 0x166   : > { %8812 = vst [vmem:[#allocation11_spill] sm:$0xff] %v7616_v12  ;;  %v7625_v4 = vadd.f32 %v1513_v34, %v7507_v40  ;;  %v7631_v54 = vadd.f32 %v1315_v16, %v7504_v57  ;;  %6182 = vmatpush3.bf16.msra.mxu1 %v6607_v33  ;;  %v6608_v40 = vld [vmem:[#allocation2] sm:$0xff]   ;;  %v6611_v34 = vld [vmem:[%s8798_s5 + $0x88] sm:$0xff]  }
 0x167   : > { %v1515_v0 = vpop.f32.mrf.mxu0  ;;  %v1317_v9 = vpop.f32.mrf.mxu1  ;;  %6183 = vmatprep.mubr.bf16.mxu1 %v6608_v40 }
 0x168   : > { %v7634_v10 = vadd.f32 %v1515_v0, %v7513_v31  ;;  %v1352_v49 = vadd.f32 %v1317_v9, %v7510_v6  ;;  %6242 = vmatpush3.bf16.msra.mxu0 %v6609_v56 }
 0x169   : > { %v7637_v13 = vpop.f32.mrf.mxu0  ;;  %v7642_v57 = vpop.f32.mrf.mxu1  ;;  %6243 = vmatprep.subr.bf16.mxu0 %v6611_v34 }
 0x16a   : > { %8813 = vst [vmem:[#allocation12_spill] sm:$0xff] %v7634_v10 }
 0x16b   : > { %v1521_v30 = vpop.f32.mrf.mxu0  ;;  %v7647_v1 = vpop.f32.mrf.mxu1 }
 0x16c   : > { %v7645_v31 = vadd.f32 %v1521_v30, %v7526_v3  ;;  %6244 = vmatpush3.bf16.msra.mxu0 %v6611_v34  ;;  %v6615_v30 = vld [vmem:[%s8798_s5 + $0x80] sm:$0xff]  }
 0x16d   : > { %v1523_v6 = vpop.f32.mrf.mxu0  ;;  %v1793_v16 = vpop.f32.mrf.mxu1  ;;  %6245 = vmatprep.subr.bf16.mxu0 %v6615_v30 }
 0x16e   : > { %8814 = vst [vmem:[#allocation13_spill] sm:$0xff] %v7645_v31  ;;  %v1577_v29 = vadd.f32 %v1523_v6, %v7532_v27  ;;  %v1871_v33 = vadd.f32 %v1793_v16, %v7529_v2 }
 0x16f   : > { %v1525_v0 = vpop.f32.mrf.mxu0  ;;  %v7657_v3 = vpop.f32.mrf.mxu1 }
 0x170   : > { %v7655_v9 = vadd.f32 %v1525_v0, %v7538_v11  ;;  %8816 = vst [vmem:[#allocation15_spill] sm:$0xff] %v7657_v3  ;;  %6246 = vmatpush3.bf16.msra.mxu0 %v6615_v30 }
 0x171   : > { %v7659_v40 = vpop.f32.mrf.mxu0  ;;  %v7661_v56 = vpop.f32.mrf.mxu1 }
 0x172   : > { %8815 = vst [vmem:[#allocation14_spill] sm:$0xff] %v7655_v9 }
 0x173   : > { %v1531_v27 = vpop.f32.mrf.mxu0  ;;  %v7669_v2 = vpop.f32.mrf.mxu1 }
 0x174   : > { %v7667_v6 = vadd.f32 %v1531_v27, %v7554_v41  ;;  %8818 = vst [vmem:[#allocation17_spill] sm:$0xff] %v7669_v2 }
 0x175   : > { %v1533_v11 = vpop.f32.mrf.mxu0  ;;  %v1803_v34 = vpop.f32.mrf.mxu1 }
 0x176   : > { %8817 = vst [vmem:[#allocation16_spill] sm:$0xff] %v7667_v6  ;;  %v1581_v16 = vadd.f32 %v1533_v11, %v7563_v18  ;;  %v1875_v0 = vadd.f32 %v1803_v34, %v7560_v23 }
 0x177   : > { %v1535_v9 = vpop.f32.mrf.mxu0  ;;  %v7676_v10 = vpop.f32.mrf.mxu1 }
 0x178   : > { %v7674_v31 = vadd.f32 %v1535_v9, %v7572_v38  ;;  %8820 = vst [vmem:[#allocation19_spill] sm:$0xff] %v7676_v10 }
 0x179   : > { %v7678_v12 = vpop.f32.mrf.mxu0  ;;  %v7680_v41 = vpop.f32.mrf.mxu1 }
 0x17a   : > { %8819 = vst [vmem:[#allocation18_spill] sm:$0xff] %v7674_v31 }
 0x17b   : > { %v1541_v27 = vpop.f32.mrf.mxu0  ;;  %v7685_v30 = vpop.f32.mrf.mxu1 }
 0x17c   : > { %v7683_v6 = vadd.f32 %v1541_v27, %v7588_v7  ;;  %8822 = vst [vmem:[#allocation21_spill] sm:$0xff] %v7685_v30  ;;  %v7701_v27 = vld [vmem:[%s8798_s5 + $0x78] sm:$0xff]  }
 0x17d   : > { %v1543_v18 = vpop.f32.mrf.mxu0  ;;  %v1813_v23 = vpop.f32.mrf.mxu1  ;;  %8825 = vst [vmem:[#allocation24_spill] sm:$0xff] %v7701_v27  ;;  %6199 = vmatprep.subr.bf16.mxu1 %v7701_v27 }
 0x17e   : > { %8821 = vst [vmem:[#allocation20_spill] sm:$0xff] %v7683_v6  ;;  %v1585_v11 = vadd.f32 %v1543_v18, %v7597_v61  ;;  %v1879_v34 = vadd.f32 %v1813_v23, %v7594_v44 }
 0x17f   : > { %v1545_v38 = vpop.f32.mrf.mxu0  ;;  %v7692_v31 = vpop.f32.mrf.mxu1 }
 0x180   : > { %v7690_v9 = vadd.f32 %v1545_v38, %v7603_v37  ;;  %8824 = vst [vmem:[#allocation23_spill] sm:$0xff] %v7692_v31 }
 0x181   : > { %v7694_v21 = vpop.f32.mrf.mxu0  ;;  %v7696_v59 = vpop.f32.mrf.mxu1 }
 0x182   : > { %8823 = vst [vmem:[#allocation22_spill] sm:$0xff] %v7690_v9 }
 0x183   : > { %v1551_v7 = vpop.f32.mrf.mxu0  ;;  %v7706_v44 = vpop.f32.mrf.mxu1 }
 0x184   : > { %v7704_v61 = vadd.f32 %v1551_v7, %v7619_v46  ;;  %8827 = vst [vmem:[#allocation26_spill] sm:$0xff] %v7706_v44  ;;  %v7722_v46 = vld [vmem:[%s8798_s5 + $0x138] sm:$0xff]  }
 0x185   : > { %v1553_v18 = vpop.f32.mrf.mxu0  ;;  %v1823_v23 = vpop.f32.mrf.mxu1  ;;  %8830 = vst [vmem:[#allocation29_spill] sm:$0xff] %v7722_v46  ;;  %6295 = vmatprep.subr.bf16.mxu0 %v7722_v46 }
 0x186   : > { %8826 = vst [vmem:[#allocation25_spill] sm:$0xff] %v7704_v61  ;;  %v1589_v37 = vadd.f32 %v1553_v18, %v7631_v54  ;;  %v1883_v38 = vadd.f32 %v1823_v23, %v7625_v4 }
 0x187   : > { %v1555_v9 = vpop.f32.mrf.mxu0  ;;  %v7713_v31 = vpop.f32.mrf.mxu1 }
 0x188   : > { %v7711_v6 = vadd.f32 %v1555_v9, %v1352_v49  ;;  %8829 = vst [vmem:[#allocation28_spill] sm:$0xff] %v7713_v31 }
 0x189   : > { %v7715_v30 = vpop.f32.mrf.mxu0  ;;  %v7717_v10 = vpop.f32.mrf.mxu1 }
 0x18a   : > { %8828 = vst [vmem:[#allocation27_spill] sm:$0xff] %v7711_v6 }
 0x18b   : > { %v7724_v7 = vpop.f32.mrf.mxu0  ;;  %v7726_v54 = vpop.f32.mrf.mxu1 }
 0x18c   : > { %8831 = vst [vmem:[#allocation30_spill] sm:$0xff] %v7726_v54 }
 0x18d   : > { %v2031_v4 = vpop.f32.mrf.mxu0  ;;  %v1833_v49 = vpop.f32.mrf.mxu1 }
 0x18e   : > { %v2109_v9 = vadd.f32 %v2031_v4, %v1871_v33  ;;  %v1887_v18 = vadd.f32 %v1833_v49, %v1577_v29 }
 0x18f   : > { %v7729_v23 = vpop.f32.mrf.mxu0  ;;  %v7731_v6 = vpop.f32.mrf.mxu1 }
 0x190   : > { %8832 = vst [vmem:[#allocation31_spill] sm:$0xff] %v7729_v23  ;;  %8833 = vst [vmem:[#allocation32_spill] sm:$0xff] %v7731_v6 }
 0x191   : > { %v2035_v61 = vpop.f32.mrf.mxu0  ;;  %v1837_v27 = vpop.f32.mrf.mxu1 }
 0x193   : > { %v7733_v31 = vpop.f32.mrf.mxu0  ;;  %v7735_v44 = vpop.f32.mrf.mxu1 }
 0x194   : > { %8834 = vst [vmem:[#allocation33_spill] sm:$0xff] %v7733_v31  ;;  %8835 = vst [vmem:[#allocation34_spill] sm:$0xff] %v7735_v44 }
 0x195   : > { %v2041_v50 = vpop.f32.mrf.mxu0  ;;  %v1843_v2 = vpop.f32.mrf.mxu1 }
 0x196   : > { %v2113_v53 = vadd.f32 %v2041_v50, %v1875_v0  ;;  %v1891_v54 = vadd.f32 %v1843_v2, %v1581_v16 }
 0x197   : > { %v7737_v3 = vpop.f32.mrf.mxu0  ;;  %v7739_v46 = vpop.f32.mrf.mxu1 }
 0x198   : > { %8836 = vst [vmem:[#allocation35_spill] sm:$0xff] %v7737_v3  ;;  %8837 = vst [vmem:[#allocation36_spill] sm:$0xff] %v7739_v46 }
 0x199   : > { %v2045_v33 = vpop.f32.mrf.mxu0  ;;  %v1847_v29 = vpop.f32.mrf.mxu1 }
 0x19b   : > { %v7741_v4 = vpop.f32.mrf.mxu0  ;;  %v7743_v49 = vpop.f32.mrf.mxu1 }
 0x19c   : > { %8838 = vst [vmem:[#allocation37_spill] sm:$0xff] %v7741_v4  ;;  %8839 = vst [vmem:[#allocation38_spill] sm:$0xff] %v7743_v49 }
 0x19d   : > { %v2051_v6 = vpop.f32.mrf.mxu0  ;;  %v1853_v23 = vpop.f32.mrf.mxu1 }
 0x19e   : > { %v7745_v60 = vadd.f32 %v2051_v6, %v1879_v34  ;;  %v7747_v31 = vadd.f32 %v1853_v23, %v1585_v11  ;;  %v773_v34 = vadd.f32 %v7326_v5, %v7283_v8 }
 0x19f   : > { %v7749_v44 = vpop.f32.mrf.mxu0  ;;  %v7751_v50 = vpop.f32.mrf.mxu1 }
 0x1a0   : > { %8840 = vst [vmem:[#allocation39_spill] sm:$0xff] %v7749_v44  ;;  %8841 = vst [vmem:[#allocation40_spill] sm:$0xff] %v7751_v50  ;;  %v1103_v44 = vadd.f32 %v7438_v15, %v773_v34 }
 0x1a1   : > { %v7753_v2 = vpop.f32.mrf.mxu0  ;;  %v7755_v16 = vpop.f32.mrf.mxu1 }
 0x1a3   : > { %v7757_v0 = vpop.f32.mrf.mxu0  ;;  %v7759_v46 = vpop.f32.mrf.mxu1 }
 0x1a4   : > { %8842 = vst [vmem:[#allocation41_spill] sm:$0xff] %v7757_v0  ;;  %8843 = vst [vmem:[#allocation42_spill] sm:$0xff] %v7759_v46  ;;  %v1325_v46 = vadd.f32 %v7440_v52, %v7329_v24  ;;  %v783_v24 = vadd.f32 %v7353_v42, %v7300_v32 }
 0x1a5   : > { %v2061_v4 = vpop.f32.mrf.mxu0  ;;  %v1863_v49 = vpop.f32.mrf.mxu1 }
 0x1a6   : > { %v7761_v3 = vadd.f32 %v2061_v4, %v1883_v38  ;;  %v7763_v6 = vadd.f32 %v1863_v49, %v1589_v37  ;;  %v1341_v37 = vadd.f32 %v7545_v51, %v1103_v44  ;;  %v1563_v49 = vadd.f32 %v7540_v48, %v1325_v46 }
 0x1a7   : > { %v7765_v11 = vpop.f32.mrf.mxu0  ;;  %v7769_v23 = vpop.f32.mrf.mxu1  ;;  %v1107_v46 = vadd.f32 %v7464_v19, %v783_v24 }
 0x1a8   : > { %8844 = vst [vmem:[#allocation43_spill] sm:$0xff] %v7765_v11  ;;  %8845 = vst [vmem:[#allocation44_spill] sm:$0xff] %v7769_v23  ;;  %v1579_v5 = vadd.f32 %v7659_v40, %v1341_v37  ;;  %v1873_v15 = vadd.f32 %v7661_v56, %v1563_v49  ;;  %v1329_v56 = vadd.f32 %v7466_v25, %v7356_v39 }
 0x1a9   : > { %v7771_v50 = vpop.f32.mrf.mxu0  ;;  %v7774_v0 = vpop.f32.mrf.mxu1  ;;  %v1345_v37 = vadd.f32 %v7579_v35, %v1107_v46  ;;  %v793_v25 = vadd.f32 %v7383_v58, %v7198_v63 }
 0x1aa   : > { %8846 = vst [vmem:[#allocation45_spill] sm:$0xff] %v7771_v50  ;;  %v1889_v52 = vadd.f32 %v1837_v27, %v1579_v5  ;;  %v2111_v44 = vadd.f32 %v2035_v61, %v1873_v15  ;;  %v1567_v42 = vadd.f32 %v7574_v20, %v1329_v56 }
 0x1ab   : > { %v7778_v38 = vpop.f32.mrf.mxu0  ;;  %v7781_v4 = vpop.f32.mrf.mxu1  ;;  %v1583_v61 = vadd.f32 %v7678_v12, %v1345_v37 }
 0x1ad   : > { %v2071_v8 = vpop.f32.mrf.mxu0  ;;  %v2269_v11 = vpop.f32.mrf.mxu1  ;;  %v1893_v35 = vadd.f32 %v1847_v29, %v1583_v61 }
 0x1ae   : > { %v7785_v23 = vadd.f32 %v2071_v8, %v1887_v18  ;;  %v7788_v34 = vadd.f32 %v2269_v11, %v2109_v9  ;;  %v1877_v8 = vadd.f32 %v7680_v41, %v1567_v42  ;;  %v1333_v41 = vadd.f32 %v7491_v26, %v7386_v55 }
 0x1af   : > { %v7790_v50 = vpop.f32.mrf.mxu0  ;;  %v7794_v51 = vpop.f32.mrf.mxu1 }
 0x1b0   : > { %v2115_v24 = vadd.f32 %v2045_v33, %v1877_v8  ;;  %v1571_v58 = vadd.f32 %v7605_v36, %v1333_v41 }
 0x1b1   : > { %v2075_v48 = vpop.f32.mrf.mxu0  ;;  %v2273_v18 = vpop.f32.mrf.mxu1 }
 0x1b2   : > { %v7797_v40 = vadd.f32 %v2075_v48, %v1889_v52  ;;  %v7801_v9 = vadd.f32 %v2273_v18, %v2111_v44  ;;  %v1111_v52 = vadd.f32 %v7489_v45, %v793_v25  ;;  %v1881_v18 = vadd.f32 %v7696_v59, %v1571_v58 }
 0x1b3   : > { %v7803_v11 = vpop.f32.mrf.mxu0  ;;  %v7806_v32 = vpop.f32.mrf.mxu1 }
 0x1b4   : > { %v1349_v48 = vadd.f32 %v7610_v62, %v1111_v52  ;;  %v803_v62 = vadd.f32 %v7411_v43, %v7224_v14 }
 0x1b5   : > { %v2081_v27 = vpop.f32.mrf.mxu0  ;;  %v2279_v49 = vpop.f32.mrf.mxu1 }
 0x1b6   : > { %v7810_v19 = vadd.f32 %v2081_v27, %v1891_v54  ;;  %v7813_v5 = vadd.f32 %v2279_v49, %v2113_v53  ;;  %v1587_v29 = vadd.f32 %v7694_v21, %v1349_v48  ;;  %v2119_v21 = vadd.f32 %v7753_v2, %v1881_v18  ;;  %v8851_v18 = vld [vmem:[#allocation7_spill] sm:$0xff] }
 0x1b7   : > { %v7815_v39 = vpop.f32.mrf.mxu0  ;;  %v7819_v15 = vpop.f32.mrf.mxu1 }
 0x1b8   : > { %v1897_v56 = vadd.f32 %v7755_v16, %v1587_v29 }
 0x1b9   : > { %v2085_v20 = vpop.f32.mrf.mxu0  ;;  %v2283_v54 = vpop.f32.mrf.mxu1 }
 0x1ba   : > { %v7822_v12 = vadd.f32 %v2085_v20, %v1893_v35  ;;  %v7826_v53 = vadd.f32 %v2283_v54, %v2115_v24  ;;  %v8848_v20 = vld [vmem:[#allocation6_spill] sm:$0xff] }
 0x1bb   : > { %v7828_v44 = vpop.f32.mrf.mxu0  ;;  %v7831_v63 = vpop.f32.mrf.mxu1 }
 0x1bd   : > { %v2091_v33 = vpop.f32.mrf.mxu0  ;;  %v2289_v46 = vpop.f32.mrf.mxu1 }
 0x1be   : > { %v7836_v45 = vadd.f32 %v2091_v33, %v7747_v31  ;;  %v7840_v55 = vadd.f32 %v2289_v46, %v7745_v60  ;;  %v1115_v31 = vadd.f32 %v7515_v17, %v803_v62  ;;  %v1337_v60 = vadd.f32 %v7517_v47, %v7414_v22  ;;  %v8852_v62 = vld [vmem:[#allocation17_spill] sm:$0xff] }
 0x1bf   : > { %v7842_v26 = vpop.f32.mrf.mxu0  ;;  %v7847_v36 = vpop.f32.mrf.mxu1  ;;  %v1870_v17 = vadd.f32 %v7647_v1, %v7523_v28  ;;  %v8847_v28 = vld [vmem:[#allocation45_spill] sm:$0xff] }
 0x1c0   : > { %v1353_v14 = vadd.f32 %v7642_v57, %v1115_v31  ;;  %v1575_v16 = vadd.f32 %v7637_v13, %v1337_v60 }
 0x1c1   : > { %v2095_v37 = vpop.f32.mrf.mxu0  ;;  %v2293_v59 = vpop.f32.mrf.mxu1  ;;  %v2108_v35 = vadd.f32 %v7724_v7, %v1870_v17  ;;  %v7890_v7 = vld [vmem:[%s8799_s6] ss:$0 sm:$0xff] }
 0x1c2   : > { %v7851_v42 = vadd.f32 %v2095_v37, %v1897_v56  ;;  %v7855_v27 = vadd.f32 %v2293_v59, %v2119_v21  ;;  %v1591_v49 = vadd.f32 %v7715_v30, %v1353_v14  ;;  %v1885_v47 = vadd.f32 %v7717_v10, %v1575_v16  ;;  %v2769_v59 = vpop.permute.xlu0 %2768  ;;  %v8853_v16 = vld [vmem:[#allocation33_spill] sm:$0xff] }
 0x1c3   : > { %v7857_v61 = vpop.f32.mrf.mxu0  ;;  %v7860_v43 = vpop.f32.mrf.mxu1  ;;  %v2346_v54 = vadd.f32 %v7781_v4, %v2108_v35  ;;  %v1874_v4 = vadd.f32 %v8852_v62, %v8851_v18  ;;  %v8855_v35 = vld [vmem:[#allocation19_spill] sm:$0xff]  ;;  %v8858_v18 = vld [vmem:[#allocation21_spill] sm:$0xff] }
 0x1c4   : > { %v1901_v13 = vadd.f32 %v7774_v0, %v1591_v49  ;;  %v2123_v1 = vadd.f32 %v8847_v28, %v1885_v47  ;;  %v8850_v0 = vld [vmem:[#allocation31_spill] sm:$0xff]  ;;  %v8854_v47 = vld [vmem:[#allocation8_spill] sm:$0xff] }
 0x1c5   : > { %v2101_v2 = vpop.f32.mrf.mxu0  ;;  %v2299_v22 = vpop.f32.mrf.mxu1 }
 0x1c6   : > { %v7867_v8 = vadd.f32 %v2101_v2, %v7763_v6  ;;  %v7871_v25 = vadd.f32 %v2299_v22, %v7761_v3  ;;  %v8849_v6 = vld [vmem:[#allocation15_spill] sm:$0xff]  ;;  %v2112_v2 = vadd.f32 %v8853_v16, %v1874_v4 }
 0x1c7   : > { %v7873_v57 = vpop.f32.mrf.mxu0  ;;  %v7877_v24 = vpop.f32.mrf.mxu1  ;;  %v1872_v52 = vadd.f32 %v8849_v6, %v8848_v20  ;;  %v3660_v20 = vld [vmem:[#allocation2] sm:$0xe] }
 0x1c8   : > { %v2350_v28 = vadd.f32 %v7806_v32, %v2112_v2  ;;  %v8860_v4 = vld [vmem:[#allocation23_spill] sm:$0xff] }
 0x1c9   : > { %v2105_v30 = vpop.f32.mrf.mxu0  ;;  %v2303_v3 = vpop.f32.mrf.mxu1  ;;  %v2110_v58 = vadd.f32 %v8850_v0, %v1872_v52 }
 0x1ca   : > { %v7883_v10 = vadd.f32 %v2105_v30, %v1901_v13  ;;  %v7885_v41 = vadd.f32 %v2303_v3, %v2123_v1 }
 0x1cb   : > { %v2577_v48 = vpop.f32.mrf.mxu0  ;;  %v7893_v33 = vpop.f32.mrf.mxu1  ;;  %v2348_v56 = vadd.f32 %v7794_v51, %v2110_v58  ;;  %v1876_v51 = vadd.f32 %v8855_v35, %v8854_v47 }
 0x1cc   : > { %v2656_v29 = vadd.f32 %v2577_v48, %v2346_v54  ;;  %v8856_v54 = vld [vmem:[#allocation35_spill] sm:$0xff] }
 0x1cd   : > { %v2579_v46 = vpop.f32.mrf.mxu0  ;;  %v2309_v37 = vpop.f32.mrf.mxu1  ;;  %v2114_v3 = vadd.f32 %v8856_v54, %v1876_v51  ;;  %v8862_v54 = vld [vmem:[#allocation11_spill] sm:$0xff] }
 0x1ce   : > { %v2695_v21 = vadd.f32 %v7890_v7, %v2656_v29  ;;  %v7900_v31 = vadd.f32 %v2579_v46, %v7788_v34  ;;  %v7903_v60 = vadd.f32 %v2309_v37, %v7785_v23  ;;  %v7921_v29 = vld [vmem:[#allocation2 + $0x4] sm:$0xf]  ;;  %v8857_v46 = vld [vmem:[#allocation9_spill] sm:$0xff] }
 0x1cf   : > { %v2581_v14 = vpop.f32.mrf.mxu0  ;;  %v7906_v49 = vpop.f32.mrf.mxu1  ;;  %v1878_v62 = vadd.f32 %v8858_v18, %v8857_v46  ;;  %v5812_v37 = vcombine.low %v3660_v20, %v7921_v29  ;;  %v8865_v46 = vld [vmem:[#allocation28_spill] sm:$0xff] }
 0x1d0   : > { %v2711_v17 = vmax.f32 %v2695_v21, 0.0  ;;  %v2658_v22 = vadd.f32 %v2581_v14, %v2348_v56  ;;  %v2774_v21 = vpop.permute.xlu0 %2773 }
 0x1d1   : > { %v2583_v13 = vpop.f32.mrf.mxu0  ;;  %v2313_v30 = vpop.f32.mrf.mxu1 }
 0x1d2   : > { %v2846_v1 = vmul.f32 %v2769_v59, %v2711_v17  ;;  %v2696_v34 = vadd.f32 %v7890_v7, %v2658_v22  ;;  %v7913_v23 = vadd.f32 %v2583_v13, %v7801_v9  ;;  %v7916_v6 = vadd.f32 %v2313_v30, %v7797_v40  ;;  %v8859_v9 = vld [vmem:[#allocation10_spill] sm:$0xff]  ;;  %v8861_v22 = vld [vmem:[#allocation37_spill] sm:$0xff] }
 0x1d3   : > { %v2587_v52 = vpop.f32.mrf.mxu0  ;;  %v7919_v58 = vpop.f32.mrf.mxu1  ;;  %v1880_v56 = vadd.f32 %v8860_v4, %v8859_v9  ;;  %v2352_v59 = vadd.f32 %v7819_v15, %v2114_v3  ;;  %v2116_v47 = vadd.f32 %v8861_v22, %v1878_v62  ;;  %v8863_v3 = vld [vmem:[#allocation26_spill] sm:$0xff]  ;;  %v7949_v62 = vrot.slane %v5812_v37, 1  ;;  %v8868_v9 = vld [vmem:[#allocation39_spill] sm:$0xff] }
 0x1d4   : > { %v6006_v48 = vpack.c.bf16 %v2846_v1, %v2846_v1  ;;  %v2712_v0 = vmax.f32 %v2696_v34, 0.0  ;;  %v2660_v32 = vadd.f32 %v2587_v52, %v2350_v28  ;;  %v2779_v34 = vpop.permute.xlu1 %2778 }
 0x1d5   : > { %v2589_v40 = vpop.f32.mrf.mxu0  ;;  %v2319_v17 = vpop.f32.mrf.mxu1  ;;  %v2118_v4 = vadd.f32 %v8868_v9, %v1880_v56 }
 0x1d6   : > { %v2920_v14 = vshrl.u32 %v6006_v48, 16  ;;  %v2847_v16 = vmul.f32 %v2774_v21, %v2712_v0  ;;  %v2697_v2 = vadd.f32 %v7890_v7, %v2660_v32  ;;  %v2923_v35 = vshll.u32 %v6006_v48, 16  ;;  %v8864_v32 = vld [vmem:[#allocation12_spill] sm:$0xff] }
 0x1d7   : > { %v7932_v51 = vadd.f32 %v2319_v17, %v7810_v19  ;;  %v7935_v13 = vadd.f32 %v2589_v40, %v7813_v5  ;;  %v2591_v28 = vpop.f32.mrf.mxu0  ;;  %v7937_v15 = vpop.f32.mrf.mxu1  ;;  %v1882_v0 = vadd.f32 %v8863_v3, %v8862_v54  ;;  %v1884_v48 = vadd.f32 %v8865_v46, %v8864_v32  ;;  %v3082_v5 = vld [vmem:[#allocation2 + $0x8] sm:$0xf] }
 0x1d8   : > { %v2922_v1 = vrot.slane %v2920_v14, 7  ;;  %v6007_v30 = vpack.c.bf16 %v2847_v16, %v2847_v16  ;;  %v2713_v20 = vmax.f32 %v2697_v2, 0.0  ;;  %v2662_v52 = vadd.f32 %v2591_v28, %v2352_v59  ;;  %v2784_v19 = vpop.permute.xlu1 %2783 }
 0x1d9   : > { %v2593_v18 = vpop.f32.mrf.mxu0  ;;  %v2354_v21 = vadd.f32 %v7831_v63, %v2116_v47  ;;  %v2323_v14 = vpop.f32.mrf.mxu1  ;;  %v8869_v47 = vld [vmem:[#allocation13_spill] sm:$0xff] }
 0x1da   : > { %v2925_v40 = vor.u32 %v2923_v35, %v2922_v1  ;;  %v2928_v59 = vshrl.u32 %v6007_v30, 16  ;;  %v2848_v16 = vmul.f32 %v2779_v34, %v2713_v20  ;;  %v2698_v2 = vadd.f32 %v7890_v7, %v2662_v52  ;;  %v8870_v35 = vld [vmem:[#allocation30_spill] sm:$0xff] }
 0x1db   : > { %v7955_v17 = vadd.f32 %v2323_v14, %v7822_v12  ;;  %v7958_v22 = vadd.f32 %v2593_v18, %v7826_v53  ;;  %v2597_v28 = vpop.f32.mrf.mxu0  ;;  %v2931_v56 = vshll.u32 %v6007_v30, 16  ;;  %v7962_v3 = vpop.f32.mrf.mxu1  ;;  %v1886_v34 = vadd.f32 %v8870_v35, %v8869_v47 }
 0x1dc   : > { %v3083_v37 = vsel %vm7945_vm5, %v2925_v40, %v3082_v5  ;;  %v2930_v54 = vrot.slane %v2928_v59, 7  ;;  %v2664_v63 = vadd.f32 %v2597_v28, %v2354_v21  ;;  %v2356_v20 = vadd.f32 %v7847_v36, %v2118_v4  ;;  %v8873_v36 = vld [vmem:[#allocation14_spill] sm:$0xff]  ;;  %v8874_v4 = vld [vmem:[#allocation32_spill] sm:$0xff] }
 0x1dd   : > { %3084 = vst [vmem:[#allocation2 + $0x8] sm:$0xf] %v3083_v37  ;;  %v6008_v53 = vpack.c.bf16 %v2848_v16, %v2848_v16  ;;  %v2714_v52 = vmax.f32 %v2698_v2, 0.0  ;;  %v2599_v32 = vpop.f32.mrf.mxu0  ;;  %v2926_v46 = vrot.slane %v2922_v1, 4  ;;  %v2329_v18 = vpop.f32.mrf.mxu1  ;;  %v1888_v21 = vadd.f32 %v8874_v4, %v8873_v36  ;;  %v8875_v2 = vld [vmem:[#allocation41_spill] sm:$0xff] }
 0x1de   : > { %v2933_v30 = vor.u32 %v2931_v56, %v2930_v54  ;;  %v2699_v5 = vadd.f32 %v7890_v7, %v2664_v63  ;;  %v7975_v9 = vadd.f32 %v2599_v32, %v7840_v55  ;;  %v7980_v14 = vadd.f32 %v2329_v18, %v7836_v45  ;;  %v8876_v55 = vld [vmem:[#allocation43_spill] sm:$0xff]  ;;  %v2789_v36 = vpop.permute.xlu0 %2788 }
 0x1df   : > { %v2937_v40 = vshrl.u32 %v6008_v53, 16  ;;  %v2849_v59 = vmul.f32 %v2784_v19, %v2714_v52  ;;  %v2601_v16 = vpop.f32.mrf.mxu0  ;;  %v2120_v28 = vadd.f32 %v8875_v2, %v1882_v0  ;;  %v7985_v56 = vpop.f32.mrf.mxu1  ;;  %v2122_v47 = vadd.f32 %v8876_v55, %v1884_v48 }
 0x1e0   : > { %v2934_v1 = vsel %vm7969_vm7, %v2926_v46, %v2933_v30  ;;  %v2715_v37 = vmax.f32 %v2699_v5, 0.0  ;;  %v2666_v63 = vadd.f32 %v2601_v16, %v2356_v20  ;;  %v2940_v32 = vshll.u32 %v6008_v53, 16 }
 0x1e1   : > { %3085 = vst [vmem:[#allocation2 + $0xc] sm:$0xf] %v2934_v1  ;;  %v2939_v35 = vrot.slane %v2937_v40, 7  ;;  %v6009_v52 = vpack.c.bf16 %v2849_v59, %v2849_v59  ;;  %v2603_v19 = vpop.f32.mrf.mxu0  ;;  %v2358_v45 = vadd.f32 %v7860_v43, %v2120_v28  ;;  %v2333_v4 = vpop.f32.mrf.mxu1  ;;  %v2124_v30 = vadd.f32 %v7778_v38, %v1886_v34 }
 0x1e2   : > { %v2850_v18 = vmul.f32 %v2789_v36, %v2715_v37  ;;  %v2700_v0 = vadd.f32 %v7890_v7, %v2666_v63  ;;  %v7991_v46 = vadd.f32 %v2603_v19, %v7855_v27  ;;  %v2935_v20 = vrot.slane %v2930_v54, 4  ;;  %v2794_v54 = vpop.permute.xlu1 %2793 }
 0x1e3   : > { %v2942_v5 = vor.u32 %v2940_v32, %v2939_v35  ;;  %v2946_v48 = vshrl.u32 %v6009_v52, 16  ;;  %v2607_v16 = vpop.f32.mrf.mxu0  ;;  %v7995_v59 = vadd.f32 %v2333_v4, %v7851_v42  ;;  %v7997_v2 = vpop.f32.mrf.mxu1  ;;  %v2360_v28 = vadd.f32 %v7877_v24, %v2122_v47 }
 0x1e4   : > { %v6010_v40 = vpack.c.bf16 %v2850_v18, %v2850_v18  ;;  %v2716_v53 = vmax.f32 %v2700_v0, 0.0  ;;  %v2668_v43 = vadd.f32 %v2607_v16, %v2358_v45  ;;  %v2949_v38 = vshll.u32 %v6009_v52, 16  ;;  %v6622_v52 = vld [vmem:[%s8798_s5 + $0x70] sm:$0xff]  }
 0x1e5   : > { %v2943_v27 = vsel %vm7969_vm7, %v2935_v20, %v2942_v5  ;;  %v2948_v1 = vrot.slane %v2946_v48, 7  ;;  %v2609_v34 = vpop.f32.mrf.mxu0  ;;  %v2944_v37 = vrot.slane %v2939_v35, 4  ;;  %v2339_v32 = vpop.f32.mrf.mxu1  ;;  %v8877_v48 = vld [vmem:[#allocation16_spill] sm:$0xff]  ;;  %v8878_v16 = vld [vmem:[#allocation34_spill] sm:$0xff] }
 0x1e6   : > { %3086 = vst [vmem:[#allocation2 + $0x10] sm:$0xf] %v2943_v27  ;;  %v2955_v63 = vshrl.u32 %v6010_v40, 16  ;;  %v2851_v55 = vmul.f32 %v2794_v54, %v2716_v53  ;;  %v2701_v42 = vadd.f32 %v7890_v7, %v2668_v43  ;;  %v2958_v19 = vshll.u32 %v6010_v40, 16  ;;  %v8880_v53 = vld [vmem:[#allocation36_spill] sm:$0xff] }
 0x1e7   : > { %v2951_v36 = vor.u32 %v2949_v38, %v2948_v1  ;;  %v8004_v45 = vadd.f32 %v2339_v32, %v7867_v8  ;;  %v8007_v24 = vadd.f32 %v2609_v34, %v7871_v25  ;;  %v2611_v47 = vpop.f32.mrf.mxu0  ;;  %v1890_v40 = vadd.f32 %v8878_v16, %v8877_v48  ;;  %v8879_v8 = vld [vmem:[#allocation18_spill] sm:$0xff] }
 0x1e8   : > { %v2957_v35 = vrot.slane %v2955_v63, 7  ;;  %v6011_v18 = vpack.c.bf16 %v2851_v55, %v2851_v55  ;;  %v2717_v0 = vmax.f32 %v2701_v42, 0.0  ;;  %v2670_v4 = vadd.f32 %v2611_v47, %v2360_v28  ;;  %v6610_v20 = vld [vmem:[#allocation2 + $0x8] sm:$0xff]   ;;  %v2799_v28 = vpop.permute.xlu0 %2798 }
 0x1e9   : > { %v8012_v5 = vld [vmem:[#allocation2 + $0x8] sm:$0xff]   ;;  %v1892_v43 = vadd.f32 %v8880_v53, %v8879_v8  ;;  %v2126_v25 = vadd.f32 %v7790_v50, %v1888_v21  ;;  %v2952_v27 = vsel %vm7969_vm7, %v2944_v37, %v2951_v36  ;;  %v2613_v38 = vpop.f32.mrf.mxu0  ;;  %v2362_v54 = vadd.f32 %v7893_v33, %v2124_v30  ;;  %6184 = vmatmul.mubr.bf16.vlgmr.msra.gmra.mxu1 %v6610_v20  ;;  %v2804_v53 = vpop.permute.xlu1 %2803 }
 0x1ea   : > { %v2953_v34 = vrot.slane %v2948_v1, 4  ;;  %3087 = vst [vmem:[#allocation2 + $0x14] sm:$0xf] %v2952_v27  ;;  %v2960_v63 = vor.u32 %v2958_v19, %v2957_v35  ;;  %v2964_v55 = vshrl.u32 %v6011_v18, 16  ;;  %v2967_v42 = vshll.u32 %v6011_v18, 16  ;;  %v8881_v21 = vld [vmem:[#allocation24_spill] sm:$0xff] }
 0x1eb   : > { %v2852_v32 = vmul.f32 %v2799_v28, %v2717_v0  ;;  %v2702_v47 = vadd.f32 %v7890_v7, %v2670_v4  ;;  %v8024_v48 = vadd.f32 %v2613_v38, %v7885_v41  ;;  %v2617_v50 = vpop.f32.mrf.mxu0  ;;  %6200 = vmatpush3.bf16.msra.mxu1 %v8881_v21  ;;  %v3683_v1 = vrot.slane %v8012_v5, 1  ;;  %v6624_v36 = vld [vmem:[%s8798_s5 + $0x68] sm:$0xff]   ;;  %v8883_v18 = vld [vmem:[#allocation38_spill] sm:$0xff] }
 0x1ec   : > { %v2961_v37 = vsel %vm7969_vm7, %v2953_v34, %v2960_v63  ;;  %v2966_v33 = vrot.slane %v2964_v55, 7  ;;  %v2672_v30 = vadd.f32 %v2617_v50, %v2362_v54  ;;  %6201 = vmatprep.subr.bf16.mxu1 %v6622_v52  ;;  %v8882_v19 = vld [vmem:[#allocation20_spill] sm:$0xff]  ;;  %v2364_v41 = vadd.f32 %v7906_v49, %v2126_v25 }
 0x1ed   : > { %v1894_v0 = vadd.f32 %v8883_v18, %v8882_v19  ;;  %3088 = vst [vmem:[#allocation2 + $0x18] sm:$0xf] %v2961_v37  ;;  %v6012_v4 = vpack.c.bf16 %v2852_v32, %v2852_v32  ;;  %v2718_v20 = vmax.f32 %v2702_v47, 0.0  ;;  %v2619_v16 = vpop.f32.mrf.mxu0  ;;  %v2962_v8 = vrot.slane %v2957_v35, 4 }
 0x1ee   : > { %v2969_v27 = vor.u32 %v2967_v42, %v2966_v33  ;;  %v2703_v38 = vadd.f32 %v7890_v7, %v2672_v30  ;;  %v8038_v54 = vadd.f32 %v2619_v16, %v7903_v60  ;;  %v2128_v34 = vadd.f32 %v7803_v11, %v1890_v40  ;;  %v6627_v11 = vld [vmem:[%s8798_s5 + $0x60] sm:$0xff]   ;;  %v8884_v60 = vld [vmem:[#allocation22_spill] sm:$0xff] }
 0x1ef   : > { %v2973_v28 = vshrl.u32 %v6012_v4, 16  ;;  %v2853_v63 = vmul.f32 %v2804_v53, %v2718_v20  ;;  %v3684_v49 = vsel %vm3681_vm8, %v7949_v62, %v3683_v1  ;;  %v2621_v25 = vpop.f32.mrf.mxu0  ;;  %6202 = vmatpush3.bf16.msra.mxu1 %v6622_v52  ;;  %v2976_v55 = vshll.u32 %v6012_v4, 16  ;;  %v8885_v40 = vld [vmem:[#allocation40_spill] sm:$0xff]  ;;  %v2809_v62 = vpop.permute.xlu0 %2808 }
 0x1f0   : > { %v2970_v35 = vsel %vm7969_vm7, %v2962_v8, %v2969_v27  ;;  %v2719_v42 = vmax.f32 %v2703_v38, 0.0  ;;  %6247 = vmatprep.mubr.bf16.mxu0 %v3684_v49  ;;  %v2674_v32 = vadd.f32 %v2621_v25, %v2364_v41  ;;  %6203 = vmatprep.subr.bf16.mxu1 %v6624_v36  ;;  %v1896_v47 = vadd.f32 %v8885_v40, %v8884_v60 }
 0x1f1   : > { %v2130_v50 = vadd.f32 %v7815_v39, %v1892_v43  ;;  %3089 = vst [vmem:[#allocation2 + $0x1c] sm:$0xf] %v2970_v35  ;;  %v2975_v52 = vrot.slane %v2973_v28, 7  ;;  %v6013_v21 = vpack.c.bf16 %v2853_v63, %v2853_v63  ;;  %v2623_v37 = vpop.f32.mrf.mxu0  ;;  %v6616_v30 = vld [vmem:[#allocation2 + $0x10] sm:$0xff]   ;;  %v2366_v19 = vadd.f32 %v7919_v58, %v2128_v34  ;;  %v6630_v58 = vld [vmem:[%s8798_s5 + $0x58] sm:$0xff]   ;;  %v2814_v63 = vpop.permute.xlu1 %2813 }
 0x1f2   : > { %v2854_v18 = vmul.f32 %v2809_v62, %v2719_v42  ;;  %v2704_v41 = vadd.f32 %v7890_v7, %v2674_v32  ;;  %v8056_v4 = vadd.f32 %v2623_v37, %v7916_v6  ;;  %v8058_v20 = vld [vmem:[#allocation2 + $0x10] sm:$0xff]   ;;  %v2132_v16 = vadd.f32 %v7828_v44, %v1894_v0  ;;  %6187 = vmatprep.mubr.bf16.mxu1 %v6616_v30 }
 0x1f3   : > { %v2971_v8 = vrot.slane %v2966_v33, 4  ;;  %v2978_v39 = vor.u32 %v2976_v55, %v2975_v52  ;;  %v2982_v43 = vshrl.u32 %v6013_v21, 16  ;;  %v2627_v53 = vpop.f32.mrf.mxu0  ;;  %6204 = vmatpush3.bf16.msra.mxu1 %v6624_v36  ;;  %v3685_v6 = vrot.slane %v8058_v20, 1  ;;  %v6629_v36 = vld [vmem:[%s8798_s5 + $0x130] sm:$0xff]  }
 0x1f4   : > { %v6014_v27 = vpack.c.bf16 %v2854_v18, %v2854_v18  ;;  %v2720_v38 = vmax.f32 %v2704_v41, 0.0  ;;  %v2676_v34 = vadd.f32 %v2627_v53, %v2366_v19  ;;  %6205 = vmatprep.subr.bf16.mxu1 %v6627_v11  ;;  %v2368_v28 = vadd.f32 %v7937_v15, %v2130_v50  ;;  %v6633_v62 = vld [vmem:[%s8798_s5 + $0x50] sm:$0xff]  }
 0x1f5   : > { %v2979_v44 = vsel %vm7969_vm7, %v2971_v8, %v2978_v39  ;;  %v2984_v33 = vrot.slane %v2982_v43, 7  ;;  %v2985_v0 = vshll.u32 %v6013_v21, 16  ;;  %v2629_v49 = vpop.f32.mrf.mxu0  ;;  %v2980_v25 = vrot.slane %v2975_v52, 4  ;;  %v8887_v41 = vld [vmem:[#allocation42_spill] sm:$0xff]  ;;  %v8888_v43 = vld [vmem:[#allocation29_spill] sm:$0xff] }
 0x1f6   : > { %3090 = vst [vmem:[#allocation2 + $0x20] sm:$0xf] %v2979_v44  ;;  %v2991_v35 = vshrl.u32 %v6014_v27, 16  ;;  %v2855_v55 = vmul.f32 %v2814_v63, %v2720_v38  ;;  %v2705_v42 = vadd.f32 %v7890_v7, %v2676_v34  ;;  %v2994_v60 = vshll.u32 %v6014_v27, 16  ;;  %v2819_v27 = vpop.permute.xlu0 %2818  ;;  %v6631_v63 = vld [vmem:[%s8798_s5 + $0x128] sm:$0xff]  }
 0x1f7   : > { %v2987_v32 = vor.u32 %v2985_v0, %v2984_v33  ;;  %v8073_v15 = vadd.f32 %v2629_v49, %v7932_v51  ;;  %v3686_v40 = vsel %vm3681_vm8, %v3683_v1, %v3685_v6  ;;  %v2631_v50 = vpop.f32.mrf.mxu0  ;;  %6206 = vmatpush3.bf16.msra.mxu1 %v6627_v11  ;;  %v8886_v51 = vld [vmem:[#allocation25_spill] sm:$0xff]  ;;  %v2134_v1 = vadd.f32 %v7842_v26, %v1896_v47  ;;  %v3346_v49 = vld [vmem:[#allocation2] sm:$0xf] }
 0x1f8   : > { %v2993_v52 = vrot.slane %v2991_v35, 7  ;;  %v6015_v21 = vpack.c.bf16 %v2855_v55, %v2855_v55  ;;  %v2721_v37 = vmax.f32 %v2705_v42, 0.0  ;;  %6248 = vmatmul.mubr.bf16.vlgmr.msra.gmra.mxu0 %v3686_v40  ;;  %v2678_v30 = vadd.f32 %v2631_v50, %v2368_v28  ;;  %v6618_v19 = vld [vmem:[#allocation2 + $0x18] sm:$0xff]   ;;  %6207 = vmatprep.subr.bf16.mxu1 %v6630_v58  ;;  %v2824_v40 = vpop.permute.xlu1 %2823 }
 0x1f9   : > { %v8081_v18 = vld [vmem:[#allocation2 + $0x18] sm:$0xff]   ;;  %v1898_v8 = vadd.f32 %v8887_v41, %v8886_v51  ;;  %v2988_v11 = vsel %vm7969_vm7, %v2980_v25, %v2987_v32  ;;  %v2633_v39 = vpop.f32.mrf.mxu0  ;;  %6296 = vmatpush3.bf16.msra.mxu0 %v8888_v43  ;;  %v2370_v53 = vadd.f32 %v7962_v3, %v2132_v16  ;;  %v2989_v38 = vrot.slane %v2984_v33, 4  ;;  %6188 = vmatmul.mubr.bf16.gmra.mxu1 %v6618_v19  ;;  %v6636_v16 = vld [vmem:[%s8798_s5 + $0x48] sm:$0xff]  }
 0x1fa   : > { %3091 = vst [vmem:[#allocation2 + $0x24] sm:$0xf] %v2988_v11  ;;  %v2996_v34 = vor.u32 %v2994_v60, %v2993_v52  ;;  %v3000_v28 = vshrl.u32 %v6015_v21, 16  ;;  %6297 = vmatprep.subr.bf16.mxu0 %v6629_v36  ;;  %v2856_v26 = vmul.f32 %v2819_v27, %v2721_v37  ;;  %v2706_v47 = vadd.f32 %v7890_v7, %v2678_v30  ;;  %v8890_v43 = vld [vmem:[#allocation44_spill] sm:$0xff]  ;;  %v2829_v27 = vpop.permute.xlu0 %2828 }
 0x1fb   : > { %v8095_v44 = vadd.f32 %v2633_v39, %v7955_v17  ;;  %v2637_v0 = vpop.f32.mrf.mxu0  ;;  %v3687_v3 = vrot.slane %v8081_v18, 1  ;;  %6208 = vmatpush3.bf16.msra.mxu1 %v6630_v58  ;;  %v3003_v35 = vshll.u32 %v6015_v21, 16  ;;  %v2372_v17 = vadd.f32 %v7985_v56, %v2134_v1  ;;  %v6635_v56 = vld [vmem:[%s8798_s5 + $0x120] sm:$0xff]  }
 0x1fc   : > { %v2997_v33 = vsel %vm7969_vm7, %v2989_v38, %v2996_v34  ;;  %v8103_v25 = vrot.slane %v3000_v28, 7  ;;  %v2680_v55 = vadd.f32 %v2637_v0, %v2370_v53  ;;  %6209 = vmatprep.subr.bf16.mxu1 %v6633_v62  ;;  %v6016_v42 = vpack.c.bf16 %v2856_v26, %v2856_v26  ;;  %v8889_v39 = vld [vmem:[#allocation27_spill] sm:$0xff]  ;;  %v2341_v26 = vpop.f32.mrf.mxu1 }
 0x1fd   : > { %3092 = vst [vmem:[#allocation2 + $0x28] sm:$0xf] %v2997_v33  ;;  %v2722_v32 = vmax.f32 %v2706_v47, 0.0  ;;  %v2639_v60 = vpop.f32.mrf.mxu0  ;;  %v3688_v58 = vsel %vm3681_vm8, %v3685_v6, %v3687_v3  ;;  %6298 = vmatpush3.bf16.msra.mxu0 %v6629_v36  ;;  %v2998_v50 = vrot.slane %v2993_v52, 4  ;;  %v2136_v19 = vadd.f32 %v7857_v61, %v1898_v8 }
 0x1fe   : > { %v3005_v37 = vor.u32 %v3003_v35, %v8103_v25  ;;  %v2707_v30 = vadd.f32 %v7890_v7, %v2680_v55  ;;  %v8112_v21 = vadd.f32 %v2639_v60, %v7980_v14  ;;  %6251 = vmatprep.mubr.bf16.mxu0 %v3688_v58  ;;  %6299 = vmatprep.subr.bf16.mxu0 %v6631_v63  ;;  %v3009_v51 = vshrl.u32 %v6016_v42, 16  ;;  %v6639_v14 = vld [vmem:[%s8798_s5 + $0x40] sm:$0xff]  }
 0x1ff   : > { %v2857_v6 = vmul.f32 %v2824_v40, %v2722_v32  ;;  %v2641_v36 = vpop.f32.mrf.mxu0  ;;  %6210 = vmatpush3.bf16.msra.mxu1 %v6633_v62  ;;  %v3012_v41 = vshll.u32 %v6016_v42, 16  ;;  %v1900_v53 = vadd.f32 %v8890_v43, %v8889_v39  ;;  %v8126_v61 = vcombine.low %v3346_v49, %v7921_v29  ;;  %v6637_v29 = vld [vmem:[%s8798_s5 + $0x118] sm:$0xff]  }
 0x200   : > { %v3006_v52 = vsel %vm7969_vm7, %v2998_v50, %v3005_v37  ;;  %v2723_v1 = vmax.f32 %v2707_v30, 0.0  ;;  %v2682_v11 = vadd.f32 %v2641_v36, %v2372_v17  ;;  %6211 = vmatprep.subr.bf16.mxu1 %v6636_v16  ;;  %v3011_v62 = vrot.slane %v3009_v51, 7  ;;  %v6641_v36 = vld [vmem:[%s8798_s5 + $0x110] sm:$0xff]  }
 0x201   : > { %3093 = vst [vmem:[#allocation2 + $0x2c] sm:$0xf] %v3006_v52  ;;  %v6017_v8 = vpack.c.bf16 %v2857_v6, %v2857_v6  ;;  %v2643_v38 = vpop.f32.mrf.mxu0  ;;  %v6621_v34 = vld [vmem:[#allocation2 + $0x20] sm:$0xff]   ;;  %6300 = vmatpush3.bf16.msra.mxu0 %v6631_v63  ;;  %v2374_v28 = vadd.f32 %v7997_v2, %v2136_v19  ;;  %v2138_v49 = vadd.f32 %v7873_v57, %v1900_v53  ;;  %v3007_v63 = vrot.slane %v8103_v25, 4  ;;  %v2834_v57 = vpop.permute.xlu1 %2833 }
 0x202   : > { %v2858_v47 = vmul.f32 %v2829_v27, %v2723_v1  ;;  %v2708_v0 = vadd.f32 %v7890_v7, %v2682_v11  ;;  %v8131_v33 = vadd.f32 %v2643_v38, %v7995_v59  ;;  %v8133_v35 = vld [vmem:[#allocation2 + $0x20] sm:$0xff]   ;;  %6301 = vmatprep.subr.bf16.mxu0 %v6635_v56  ;;  %v3014_v55 = vor.u32 %v3012_v41, %v3011_v62  ;;  %v8143_v59 = vld [vmem:[%s8798_s5 + $0xf8] sm:$0xff]   ;;  %v2839_v38 = vpop.permute.xlu0 %2838 }
 0x203   : > { %v3018_v2 = vshrl.u32 %v6017_v8, 16  ;;  %v2647_v17 = vpop.f32.mrf.mxu0  ;;  %6191 = vmatprep.mubr.bf16.mxu1 %v6621_v34  ;;  %6212 = vmatpush3.bf16.msra.mxu1 %v6636_v16  ;;  %v3689_v58 = vrot.slane %v8133_v35, 1  ;;  %v2376_v40 = vadd.f32 %v2341_v26, %v2138_v49  ;;  %v3021_v37 = vshll.u32 %v6017_v8, 16 }
 0x204   : > { %v6018_v42 = vpack.c.bf16 %v2858_v47, %v2858_v47  ;;  %v2724_v32 = vmax.f32 %v2708_v0, 0.0  ;;  %v2684_v60 = vadd.f32 %v2647_v17, %v2374_v28  ;;  %6213 = vmatprep.subr.bf16.mxu1 %v6639_v14  ;;  %v3015_v25 = vsel %vm7969_vm7, %v3007_v63, %v3014_v55 }
 0x205   : > { %v3020_v50 = vrot.slane %v3018_v2, 7  ;;  %v2649_v30 = vpop.f32.mrf.mxu0  ;;  %6302 = vmatpush3.bf16.msra.mxu0 %v6635_v56  ;;  %v3016_v16 = vrot.slane %v3011_v62, 4  ;;  %3094 = vst [vmem:[#allocation2 + $0x30] sm:$0xf] %v3015_v25  ;;  %v3690_v56 = vsel %vm3681_vm8, %v3687_v3, %v3689_v58  ;;  %v3426_v49 = vshll.u32 %v8126_v61, 16 }
 0x206   : > { %v3027_v19 = vshrl.u32 %v6018_v42, 16  ;;  %v2859_v51 = vmul.f32 %v2834_v57, %v2724_v32  ;;  %v2709_v6 = vadd.f32 %v7890_v7, %v2684_v60  ;;  %6303 = vmatprep.subr.bf16.mxu0 %v6637_v29  ;;  %v3030_v41 = vshll.u32 %v6018_v42, 16  ;;  %6252 = vmatmul.mubr.bf16.gmra.mxu0 %v3690_v56  ;;  %v2844_v32 = vpop.permute.xlu1 %2843 }
 0x207   : > { %v3023_v52 = vor.u32 %v3021_v37, %v3020_v50  ;;  %v8153_v1 = vadd.f32 %v2649_v30, %v8004_v45  ;;  %v2651_v11 = vpop.f32.mrf.mxu0  ;;  %6214 = vmatpush3.bf16.msra.mxu1 %v6639_v14  ;;  %v3025_v34 = vrot.slane %v3020_v50, 4  ;;  %v6644_v14 = vld [vmem:[%s8798_s5 + $0x108] sm:$0xff]   ;;  %v3424_v50 = vshrl.u32 %v8126_v61, 16  ;;  %v8187_v61 = vld [vmem:[%s8798_s5 + $0x1b8] sm:$0xff]  }
 0x208   : > { %v3029_v39 = vrot.slane %v3027_v19, 7  ;;  %v6019_v43 = vpack.c.bf16 %v2859_v51, %v2859_v51  ;;  %v2725_v53 = vmax.f32 %v2709_v6, 0.0  ;;  %v2686_v27 = vadd.f32 %v2651_v11, %v2376_v40  ;;  %v6626_v62 = vld [vmem:[#allocation2 + $0x28] sm:$0xff]   ;;  %6263 = vmatprep.subr.bf16.mxu1 %v8143_v59 }
 0x209   : > { %v8158_v8 = vld [vmem:[#allocation2 + $0x28] sm:$0xff]   ;;  %v3024_v45 = vsel %vm7969_vm7, %v3016_v16, %v3023_v52  ;;  %6304 = vmatpush3.bf16.msra.mxu0 %v6637_v29  ;;  %6192 = vmatmul.mubr.bf16.gmra.mxu1 %v6626_v62  ;;  %v3428_v16 = vrot.slane %v3426_v49, 1 }
 0x20a   : > { %3095 = vst [vmem:[#allocation2 + $0x34] sm:$0xf] %v3024_v45  ;;  %v3032_v3 = vor.u32 %v3030_v41, %v3029_v39  ;;  %v3036_v28 = vshrl.u32 %v6019_v43, 16  ;;  %6305 = vmatprep.subr.bf16.mxu0 %v6641_v36  ;;  %v2860_v26 = vmul.f32 %v2839_v38, %v2725_v53  ;;  %v2710_v47 = vadd.f32 %v7890_v7, %v2686_v27  ;;  %v6648_v7 = vld [vmem:[%s8798_s5 + $0x100] sm:$0xff]   ;;  %v8176_v37 = vld [vmem:[#allocation2 + $0xc] sm:$0xf] }
 0x20b   : > { %v3691_v0 = vrot.slane %v8158_v8, 1  ;;  %v3039_v55 = vshll.u32 %v6019_v43, 16  ;;  %v3034_v60 = vrot.slane %v3029_v39, 4  ;;  %v4110_v19 = vld [vmem:[#allocation2 + $0x8] sm:$0xf]  ;;  %v3431_v41 = vshll.u32 %v8012_v5, 16 }
 0x20c   : > { %v3033_v29 = vsel %vm7969_vm7, %v3025_v34, %v3032_v3  ;;  %v3038_v63 = vrot.slane %v3036_v28, 7  ;;  %v6020_v2 = vpack.c.bf16 %v2860_v26, %v2860_v26  ;;  %v2726_v17 = vmax.f32 %v2710_v47, 0.0  ;;  %v8190_v27 = vld [vmem:[#allocation2 + $0x10] sm:$0xff]   ;;  %v3102_v34 = vld [vmem:[#allocation2 + $0x48] sm:$0x1] }
 0x20d   : > { %3096 = vst [vmem:[#allocation2 + $0x38] sm:$0xf] %v3033_v29  ;;  %v3692_v42 = vsel %vm3681_vm8, %v3689_v58, %v3691_v0  ;;  %6306 = vmatpush3.bf16.msra.mxu0 %v6641_v36  ;;  %v5869_v56 = vcombine.low %v4110_v19, %v8176_v37  ;;  %v3429_v3 = vor.u32 %v3428_v16, %v3424_v50  ;;  %v3439_v26 = vshll.u32 %v8058_v20, 16  ;;  %v8212_v19 = vld [vmem:[#allocation2 + $0x20] sm:$0xff]  }
 0x20e   : > { %v3041_v40 = vor.u32 %v3039_v55, %v3038_v63  ;;  %6255 = vmatprep.mubr.bf16.mxu0 %v3692_v42  ;;  %6307 = vmatprep.subr.bf16.mxu0 %v6644_v14  ;;  %v3045_v57 = vshrl.u32 %v6020_v2, 16  ;;  %v2861_v25 = vmul.f32 %v2844_v32, %v2726_v17  ;;  %v3048_v58 = vshll.u32 %v6020_v2, 16 }
 0x20f   : > { %v3043_v11 = vrot.slane %v3038_v63, 4  ;;  %v4190_v47 = vshll.u32 %v5869_v56, 16  ;;  %v4195_v2 = vshll.u32 %v8190_v27, 16 }
 0x210   : > { %v3042_v30 = vsel %vm7969_vm7, %v3034_v60, %v3041_v40  ;;  %v3047_v51 = vrot.slane %v3045_v57, 7  ;;  %v6021_v6 = vpack.c.bf16 %v2861_v25, %v2861_v25  ;;  %v3435_v60 = vshrl.u32 %v8012_v5, 16 }
 0x211   : > { %3097 = vst [vmem:[#allocation2 + $0x3c] sm:$0xf] %v3042_v30  ;;  %v6632_v36 = vld [vmem:[#allocation2 + $0x30] sm:$0xff]   ;;  %6308 = vmatpush3.bf16.msra.mxu0 %v6644_v14  ;;  %v3433_v14 = vrot.slane %v3431_v41, 1  ;;  %v3447_v57 = vshll.u32 %v8081_v18, 16  ;;  %v4188_v25 = vshrl.u32 %v5869_v56, 16 }
 0x212   : > { %v8180_v52 = vld [vmem:[#allocation2 + $0x30] sm:$0xff]   ;;  %6309 = vmatprep.subr.bf16.mxu0 %v6648_v7  ;;  %v3050_v39 = vor.u32 %v3048_v58, %v3047_v51  ;;  %v3054_v43 = vshrl.u32 %v6021_v6, 16  ;;  %6195 = vmatprep.mubr.bf16.mxu1 %v6632_v36  ;;  %v3057_v38 = vshll.u32 %v6021_v6, 16  ;;  %v3052_v49 = vrot.slane %v3047_v51, 4  ;;  %v8207_v30 = vld [vmem:[#allocation2 + $0x18] sm:$0xff]  }
 0x213   : > { %v3693_v53 = vrot.slane %v8180_v52, 1  ;;  %v4192_v50 = vrot.slane %v4190_v47, 1  ;;  %v4197_v12 = vrot.slane %v4195_v2, 1  ;;  %v3437_v51 = vor.u32 %v3435_v60, %v3433_v14  ;;  %v6647_v56 = vld [vmem:[%s8798_s5 + $0xf0] sm:$0xff]  }
 0x214   : > { %v3051_v62 = vsel %vm7969_vm7, %v3043_v11, %v3050_v39  ;;  %v3056_v45 = vrot.slane %v3054_v43, 7  ;;  %v3443_v6 = vshrl.u32 %v8058_v20, 16  ;;  %v3449_v36 = vrot.slane %v3447_v57, 1  ;;  %v6653_v57 = vld [vmem:[%s8798_s5 + $0xe0] sm:$0xff]  }
 0x215   : > { %6310 = vmatpush3.bf16.msra.mxu0 %v6648_v7  ;;  %3098 = vst [vmem:[#allocation2 + $0x40] sm:$0xf] %v3051_v62  ;;  %v3694_v28 = vsel %vm3681_vm8, %v3691_v0, %v3693_v53  ;;  %v3434_v0 = vsel %vm867_vm2, %v3429_v3, %v3433_v14  ;;  %v3441_v7 = vrot.slane %v3439_v26, 1  ;;  %v4193_v41 = vor.u32 %v4192_v50, %v4188_v25  ;;  %v6649_v3 = vld [vmem:[%s8798_s5 + $0xe8] sm:$0xff]   ;;  %v6654_v25 = vld [vmem:[%s8798_s5 + $0x1b0] sm:$0xff]  }
 0x216   : > { %6359 = vmatprep.subr.bf16.mxu0 %v8187_v61  ;;  %v3059_v29 = vor.u32 %v3057_v38, %v3056_v45  ;;  %v3061_v63 = vrot.slane %v3056_v45, 4  ;;  %6256 = vmatmul.mubr.bf16.gmra.mxu0 %v3694_v28  ;;  %v4203_v11 = vshll.u32 %v8207_v30, 16  ;;  %v3455_v62 = vshll.u32 %v8133_v35, 16  ;;  %v8231_v14 = vld [vmem:[#allocation2 + $0x28] sm:$0xff]  }
 0x217   : > { %v3442_v43 = vsel %vm867_vm2, %v3437_v51, %v3441_v7  ;;  %v4198_v45 = vsel %vm867_vm2, %v4193_v41, %v4197_v12  ;;  %v4211_v20 = vshll.u32 %v8212_v19, 16  ;;  %v4199_v26 = vshrl.u32 %v8190_v27, 16 }
 0x218   : > { %v6638_v55 = vld [vmem:[#allocation2 + $0x38] sm:$0xff]   ;;  %v3060_v17 = vsel %vm7969_vm7, %v3052_v49, %v3059_v29  ;;  %v3103_v42 = vsel %vm3101_vm10, %v3061_v63, %v3102_v34  ;;  %v3463_v34 = vshll.u32 %v8158_v8, 16  ;;  %v4205_v28 = vrot.slane %v4203_v11, 1  ;;  %v8236_v63 = vld [vmem:[#allocation2 + $0x30] sm:$0xff]  }
 0x219   : > { %v8201_v32 = vld [vmem:[#allocation2 + $0x38] sm:$0xff]   ;;  %3099 = vst [vmem:[#allocation2 + $0x44] sm:$0xf] %v3060_v17  ;;  %3104 = vst [vmem:[#allocation2 + $0x48] sm:$0x1] %v3103_v42  ;;  %6196 = vmatmul.mubr.bf16.gmra.mxu1 %v6638_v55  ;;  %v3451_v47 = vshrl.u32 %v8081_v18, 16  ;;  %v4201_v55 = vor.u32 %v4199_v26, %v4197_v12 }
 0x21a   : > { %6215 = vmatprep.mubr.bf16.mxu1 %v3434_v0  ;;  %v3695_v40 = vrot.slane %v8201_v32, 1  ;;  %v3457_v49 = vrot.slane %v3455_v62, 1  ;;  %v4213_v29 = vrot.slane %v4211_v20, 1  ;;  %v3459_v17 = vshrl.u32 %v8133_v35, 16 }
 0x21b   : > { %v3453_v2 = vor.u32 %v3451_v47, %v3449_v36  ;;  %v3465_v42 = vrot.slane %v3463_v34, 1  ;;  %v4219_v60 = vshll.u32 %v8231_v14, 16  ;;  %v3471_v35 = vshll.u32 %v8180_v52, 16  ;;  %v6659_v47 = vld [vmem:[%s8798_s5 + $0xd0] sm:$0xff]  }
 0x21c   : > { %v3696_v58 = vsel %vm3681_vm8, %v3693_v53, %v3695_v40  ;;  %v8210_v16 = vld [vmem:[#allocation2 + $0x40] ss:$0 sps:$4 sm:$0x11]   ;;  %v3445_v53 = vor.u32 %v3443_v6, %v3441_v7  ;;  %v3461_v7 = vor.u32 %v3459_v17, %v3457_v49  ;;  %v4227_v12 = vshll.u32 %v8236_v63, 16 }
 0x21d   : > { %6259 = vmatprep.mubr.bf16.mxu0 %v3696_v58  ;;  %v3697_v5 = vrot.slane %v8210_v16, 1  ;;  %v3458_v18 = vsel %vm867_vm2, %v3453_v2, %v3457_v49  ;;  %v3479_v51 = vshll.u32 %v8201_v32, 16  ;;  %v4221_v6 = vrot.slane %v4219_v60, 1  ;;  %v6661_v2 = vld [vmem:[%s8798_s5 + $0xc8] sm:$0xff]  }
 0x21e   : > { %v3450_v38 = vsel %vm867_vm2, %v3445_v53, %v3449_v36  ;;  %v3466_v58 = vsel %vm867_vm2, %v3461_v7, %v3465_v42  ;;  %v8257_v36 = vld [vmem:[#allocation2 + $0x38] sm:$0xff]   ;;  %v4215_v41 = vshrl.u32 %v8212_v19, 16  ;;  %v3467_v11 = vshrl.u32 %v8158_v8, 16 }
 0x21f   : > { %v3698_v39 = vsel %vm3681_vm8, %v3695_v40, %v3697_v5  ;;  %v4206_v40 = vsel %vm867_vm2, %v4201_v55, %v4205_v28  ;;  %v6655_v5 = vld [vmem:[%s8798_s5 + $0xd8] sm:$0xff]   ;;  %v3475_v20 = vshrl.u32 %v8180_v52, 16  ;;  %v6660_v52 = vld [vmem:[%s8798_s5 + $0x1a0] sm:$0xff]   ;;  %v3487_v49 = vshll.u32 %v8210_v16, 16 }
 0x220   : > { %6260 = vmatmul.mubr.bf16.gmra.mxu0 %v3698_v39  ;;  %v3473_v39 = vrot.slane %v3471_v35, 1  ;;  %v8265_v53 = vld [vmem:[#allocation2 + $0x40] sm:$0xff]   ;;  %v4217_v62 = vor.u32 %v4215_v41, %v4213_v29  ;;  %v4231_v16 = vshrl.u32 %v8236_v63, 16 }
 0x221   : > { %6216 = vmatmul.mubr.bf16.vlgmr.msra.gmra.mxu1 %v3442_v43  ;;  %6311 = vmatprep.mubr.bf16.mxu0 %v4198_v45  ;;  %v4229_v43 = vrot.slane %v4227_v12, 1  ;;  %v3469_v45 = vor.u32 %v3467_v11, %v3465_v42  ;;  %v6663_v42 = vld [vmem:[%s8798_s5 + $0x198] sm:$0xff]   ;;  %v3489_v60 = vrot.slane %v3487_v49, 1  ;;  %v6683_v49 = vld [vmem:[%s8798_s5 + $0x230] sm:$0xff]  }
 0x222   : > { %6264 = vmatpush3.bf16.msra.mxu1 %v8143_v59  ;;  %6219 = vmatprep.mubr.bf16.mxu1 %v3450_v38  ;;  %v4207_v59 = vshrl.u32 %v8207_v30, 16  ;;  %v3481_v38 = vrot.slane %v3479_v51, 1  ;;  %v3477_v26 = vor.u32 %v3475_v20, %v3473_v39  ;;  %v6674_v20 = vld [vmem:[%s8798_s5 + $0x170] sm:$0xff]  }
 0x223   : > { %6265 = vmatprep.subr.bf16.mxu1 %v6647_v56  ;;  %v3474_v8 = vsel %vm867_vm2, %v3469_v45, %v3473_v39  ;;  %v4233_v7 = vor.u32 %v4231_v16, %v4229_v43  ;;  %v6670_v39 = vld [vmem:[%s8798_s5 + $0x188] sm:$0xff]   ;;  %v6672_v45 = vld [vmem:[#allocation2 + $0x10] sm:$0xff]  }
 0x224   : > { %v4209_v0 = vor.u32 %v4207_v59, %v4205_v28  ;;  %v4222_v28 = vsel %vm867_vm2, %v4217_v62, %v4221_v6  ;;  %v3482_v55 = vsel %vm867_vm2, %v3477_v26, %v3481_v38  ;;  %v6677_v26 = vld [vmem:[#allocation2 + $0x18] sm:$0xff]   ;;  %v6690_v16 = vld [vmem:[%s8798_s5 + $0x150] sm:$0xff]  }
 0x226   : > { %6266 = vmatpush3.bf16.msra.mxu1 %v6647_v56  ;;  %v4214_v50 = vsel %vm867_vm2, %v4209_v0, %v4213_v29  ;;  %v6657_v56 = vld [vmem:[%s8798_s5 + $0x1a8] sm:$0xff]   ;;  %v4243_v29 = vshll.u32 %v8265_v53, 16  ;;  %v3483_v0 = vshrl.u32 %v8201_v32, 16  ;;  %v6666_v32 = vld [vmem:[%s8798_s5 + $0xc0] sm:$0xff]  }
 0x227   : > { %6267 = vmatprep.subr.bf16.mxu1 %v6649_v3 }
 0x228   : > { %6312 = vmatmul.mubr.bf16.vlgmr.msra.gmra.mxu0 %v4206_v40  ;;  %v4239_v40 = vshrl.u32 %v8257_v36, 16 }
 0x229   : > { %6220 = vmatmul.mubr.bf16.gmra.mxu1 %v3458_v18  ;;  %6315 = vmatprep.mubr.bf16.mxu0 %v4214_v50  ;;  %v4245_v18 = vrot.slane %v4243_v29, 1  ;;  %v6684_v29 = vld [vmem:[%s8798_s5 + $0x158] sm:$0xff]  }
 0x22a   : > { %6268 = vmatpush3.bf16.msra.mxu1 %v6649_v3  ;;  %6360 = vmatpush3.bf16.msra.mxu0 %v8187_v61  ;;  %v4223_v61 = vshrl.u32 %v8231_v14, 16  ;;  %v4235_v3 = vshll.u32 %v8257_v36, 16 }
 0x22b   : > { %6223 = vmatprep.mubr.bf16.mxu1 %v3466_v58  ;;  %6269 = vmatprep.subr.bf16.mxu1 %v6653_v57  ;;  %v6667_v58 = vld [vmem:[%s8798_s5 + $0x190] sm:$0xff]  }
 0x22c   : > { %6361 = vmatprep.subr.bf16.mxu0 %v6654_v25  ;;  %v4225_v34 = vor.u32 %v4223_v61, %v4221_v6  ;;  %v4237_v17 = vrot.slane %v4235_v3, 1  ;;  %v4247_v6 = vshrl.u32 %v8265_v53, 16  ;;  %v6676_v3 = vld [vmem:[%s8798_s5 + $0x168] sm:$0xff]  }
 0x22e   : > { %6270 = vmatpush3.bf16.msra.mxu1 %v6653_v57  ;;  %6362 = vmatpush3.bf16.msra.mxu0 %v6654_v25  ;;  %v4230_v59 = vsel %vm867_vm2, %v4225_v34, %v4229_v43  ;;  %v3485_v57 = vor.u32 %v3483_v0, %v3481_v38  ;;  %v8290_v25 = vld [vmem:[#allocation2 + $0x48] ss:$0 sps:$4 sm:$0x11]   ;;  %v4241_v35 = vor.u32 %v4239_v40, %v4237_v17  ;;  %v6671_v43 = vld [vmem:[#allocation2 + $0x10] sm:$0xff]   ;;  %v6675_v38 = vld [vmem:[%s8798_s5 + $0x180] sm:$0xff]  }
 0x22f   : > { %6271 = vmatprep.subr.bf16.mxu1 %v6655_v5  ;;  %6363 = vmatprep.subr.bf16.mxu0 %v6657_v56  ;;  %v4238_v50 = vsel %vm867_vm2, %v4233_v7, %v4237_v17  ;;  %v4251_v41 = vshll.u32 %v8290_v25, 16  ;;  %v4249_v11 = vor.u32 %v4247_v6, %v4245_v18  ;;  %v6673_v34 = vld [vmem:[#allocation2 + $0x18] sm:$0xff]   ;;  %v6685_v17 = vld [vmem:[#allocation2 + $0x28] sm:$0xff]   ;;  %v6691_v0 = vld [vmem:[%s8798_s5 + $0x220] sm:$0xff]  }
 0x230   : > { %6316 = vmatmul.mubr.bf16.gmra.mxu0 %v4222_v28  ;;  %v3490_v12 = vsel %vm867_vm2, %v3485_v57, %v3489_v60  ;;  %v4246_v51 = vsel %vm867_vm2, %v4241_v35, %v4245_v18  ;;  %v6678_v28 = vld [vmem:[%s8798_s5 + $0x238] sm:$0xff]   ;;  %v6692_v40 = vld [vmem:[%s8798_s5 + $0x148] sm:$0xff]   ;;  %v6695_v35 = vld [vmem:[#allocation2 + $0x40] sm:$0xff]  }
 0x231   : > { %6224 = vmatmul.mubr.bf16.gmra.mxu1 %v3474_v8  ;;  %6319 = vmatprep.mubr.bf16.mxu0 %v4230_v59  ;;  %v4253_v61 = vrot.slane %v4251_v41, 1  ;;  %v6679_v8 = vld [vmem:[#allocation2 + $0x20] sm:$0xff]   ;;  %v6681_v59 = vld [vmem:[#allocation2 + $0x28] sm:$0xff]   ;;  %v6689_v60 = vld [vmem:[#allocation2 + $0x38] sm:$0xff]  }
 0x232   : > { %6272 = vmatpush3.bf16.msra.mxu1 %v6655_v5  ;;  %6364 = vmatpush3.bf16.msra.mxu0 %v6657_v56  ;;  %v6665_v5 = vld [vmem:[#allocation2 + $0x8] sm:$0xff]   ;;  %v6669_v56 = vld [vmem:[%s8798_s5 + $0x178] sm:$0xff]  }
 0x233   : > { %6227 = vmatprep.mubr.bf16.mxu1 %v3482_v55  ;;  %6273 = vmatprep.subr.bf16.mxu1 %v6659_v47  ;;  %v4254_v62 = vsel %vm867_vm2, %v4249_v11, %v4253_v61  ;;  %v6686_v55 = vld [vmem:[%s8798_s5 + $0x228] sm:$0xff]   ;;  %v6694_v18 = vld [vmem:[%s8798_s5 + $0x218] sm:$0xff]  }
 0x234   : > { %6365 = vmatprep.subr.bf16.mxu0 %v6660_v52  ;;  %v4424_v7 = vld [vmem:[#allocation2 + $0x8] sm:$0xe]  ;;  %v8354_v6 = vld [vmem:[#allocation2 + $0x18] sm:$0xff]  }
 0x235   : > { %v5902_v57 = vcombine.low %v4424_v7, %v8176_v37  ;;  %v4874_v37 = vld [vmem:[#allocation2 + $0x14] sm:$0xf]  ;;  %v6701_v41 = vld [vmem:[%s8798_s5 + $0x1f8] sm:$0xff]   ;;  %v6702_v11 = vld [vmem:[%s8798_s5 + $0x208] sm:$0xff]  }
 0x236   : > { %6274 = vmatpush3.bf16.msra.mxu1 %v6659_v47  ;;  %6366 = vmatpush3.bf16.msra.mxu0 %v6660_v52  ;;  %v6682_v47 = vld [vmem:[%s8798_s5 + $0x160] sm:$0xff]  }
 0x237   : > { %6275 = vmatprep.subr.bf16.mxu1 %v6661_v2  ;;  %6367 = vmatprep.subr.bf16.mxu0 %v6663_v42  ;;  %v6680_v52 = vld [vmem:[#allocation2 + $0x20] sm:$0xff]  }
 0x238   : > { %6320 = vmatmul.mubr.bf16.gmra.mxu0 %v4238_v50  ;;  %v4446_v50 = vrot.slane %v8190_v27, 1 }
 0x239   : > { %6228 = vmatmul.mubr.bf16.gmra.mxu1 %v3490_v12  ;;  %6323 = vmatprep.mubr.bf16.mxu0 %v4246_v51  ;;  %v6693_v12 = vld [vmem:[#allocation2 + $0x38] sm:$0xff]   ;;  %v4445_v51 = vrot.slane %v5902_v57, 1  ;;  %v4458_v57 = vrot.slane %v8265_v53, 1  ;;  %v8413_v53 = vld [vmem:[#allocation2 + $0x48] sm:$0xff]  }
 0x23a   : > { %6276 = vmatpush3.bf16.msra.mxu1 %v6661_v2  ;;  %6368 = vmatpush3.bf16.msra.mxu0 %v6663_v42  ;;  %v6687_v2 = vld [vmem:[#allocation2 + $0x30] sm:$0xff]  }
 0x23b   : > { %6279 = vmatprep.mubr.bf16.mxu1 %v6665_v5  ;;  %6277 = vmatprep.subr.bf16.mxu1 %v6666_v32  ;;  %v6688_v42 = vld [vmem:[#allocation2 + $0x30] sm:$0xff]   ;;  %v4447_v27 = vsel %vm3681_vm8, %v4445_v51, %v4446_v50 }
 0x23c   : > { %6369 = vmatprep.subr.bf16.mxu0 %v6667_v58  ;;  %v6699_v5 = vld [vmem:[%s8798_s5 + $0x210] sm:$0xff]  }
 0x23e   : > { %6278 = vmatpush3.bf16.msra.mxu1 %v6666_v32  ;;  %6370 = vmatpush3.bf16.msra.mxu0 %v6667_v58  ;;  %v6698_v32 = vld [vmem:[%s8798_s5 + $0x140] sm:$0xff]  }
 0x23f   : > { %6327 = vmatprep.subr.bf16.mxu1 %v6669_v56  ;;  %6371 = vmatprep.subr.bf16.mxu0 %v6670_v39  ;;  %v6696_v58 = vld [vmem:[#allocation2 + $0x40] sm:$0xff]  }
 0x240   : > { %6324 = vmatmul.mubr.bf16.gmra.mxu0 %v4254_v62  ;;  %v4450_v62 = vrot.slane %v8212_v19, 1 }
 0x241   : > { %6280 = vmatmul.mubr.bf16.vlgmr.msra.gmra.mxu1 %v6671_v43  ;;  %6375 = vmatprep.mubr.bf16.mxu0 %v6672_v45  ;;  %v5209_v43 = vrot.slane %v8354_v6, 1  ;;  %v6700_v45 = vld [vmem:[#allocation2 + $0x48] sm:$0xff]  }
 0x242   : > { %6328 = vmatpush3.bf16.msra.mxu1 %v6669_v56  ;;  %6372 = vmatpush3.bf16.msra.mxu0 %v6670_v39  ;;  %v5187_v56 = vld [vmem:[#allocation2 + $0x10] sm:$0xe]  ;;  %v4448_v39 = vrot.slane %v8207_v30, 1  ;;  %v6707_v30 = vld [vmem:[%s8798_s5 + $0x200] sm:$0xff]  }
 0x243   : > { %6283 = vmatprep.mubr.bf16.mxu1 %v6673_v34  ;;  %6329 = vmatprep.subr.bf16.mxu1 %v6674_v20  ;;  %v5992_v61 = vcombine.low %v5187_v56, %v4874_v37  ;;  %v6706_v34 = vld [vmem:[%s8798_s5 + $0x1f0] sm:$0xff]  }
 0x244   : > { %6373 = vmatprep.subr.bf16.mxu0 %v6675_v38 }
 0x246   : > { %6330 = vmatpush3.bf16.msra.mxu1 %v6674_v20  ;;  %6374 = vmatpush3.bf16.msra.mxu0 %v6675_v38  ;;  %v4449_v20 = vsel %vm3681_vm8, %v4446_v50, %v4448_v39  ;;  %v5208_v38 = vrot.slane %v5992_v61, 1  ;;  %v6715_v50 = vld [vmem:[%s8798_s5 + $0x1d0] sm:$0xff]  }
 0x247   : > { %6331 = vmatprep.subr.bf16.mxu1 %v6676_v3  ;;  %6423 = vmatprep.subr.bf16.mxu0 %v6678_v28 }
 0x248   : > { %v5210_v19 = vsel %vm3681_vm8, %v5208_v38, %v5209_v43  ;;  %v6720_v38 = vld [vmem:[#allocation2 + $0x50] ss:$0 sps:$4 sm:$0x11]  }
 0x249   : > { %6284 = vmatmul.mubr.bf16.gmra.mxu1 %v6679_v8  ;;  %6376 = vmatmul.mubr.bf16.vlgmr.msra.gmra.mxu0 %v6677_v26  ;;  %v4451_v8 = vsel %vm3681_vm8, %v4448_v39, %v4450_v62  ;;  %v6708_v26 = vld [vmem:[%s8798_s5 + $0x1e8] sm:$0xff]  }
 0x24a   : > { %6332 = vmatpush3.bf16.msra.mxu1 %v6676_v3  ;;  %6379 = vmatprep.mubr.bf16.mxu0 %v6680_v52  ;;  %v8373_v3 = vld [vmem:[#allocation2 + $0x20] sm:$0xff]  }
 0x24b   : > { %6424 = vmatpush3.bf16.msra.mxu0 %v6678_v28  ;;  %6287 = vmatprep.mubr.bf16.mxu1 %v6681_v59  ;;  %v8376_v28 = vld [vmem:[#allocation2 + $0x28] sm:$0xff]   ;;  %v5211_v52 = vrot.slane %v8373_v3, 1  ;;  %v4454_v59 = vrot.slane %v8236_v63, 1  ;;  %v8395_v63 = vld [vmem:[#allocation2 + $0x38] sm:$0xff]  }
 0x24c   : > { %6333 = vmatprep.subr.bf16.mxu1 %v6682_v47  ;;  %6425 = vmatprep.subr.bf16.mxu0 %v6683_v49  ;;  %v5217_v7 = vrot.slane %v8395_v63, 1 }
 0x24e   : > { %6334 = vmatpush3.bf16.msra.mxu1 %v6682_v47  ;;  %v4452_v47 = vrot.slane %v8231_v14, 1  ;;  %v8391_v14 = vld [vmem:[#allocation2 + $0x30] sm:$0xff]  }
 0x24f   : > { %6426 = vmatpush3.bf16.msra.mxu0 %v6683_v49  ;;  %6335 = vmatprep.subr.bf16.mxu1 %v6684_v29  ;;  %v5213_v49 = vrot.slane %v8376_v28, 1 }
 0x250   : > { %6427 = vmatprep.subr.bf16.mxu0 %v6686_v55 }
 0x251   : > { %6288 = vmatmul.mubr.bf16.gmra.mxu1 %v6687_v2  ;;  %6380 = vmatmul.mubr.bf16.gmra.mxu0 %v6685_v17  ;;  %v5212_v2 = vsel %vm3681_vm8, %v5209_v43, %v5211_v52  ;;  %v5214_v17 = vsel %vm3681_vm8, %v5211_v52, %v5213_v49  ;;  %v4966_v43 = vshll.u32 %v8373_v3, 16  ;;  %v4970_v52 = vshrl.u32 %v8373_v3, 16 }
 0x252   : > { %6336 = vmatpush3.bf16.msra.mxu1 %v6684_v29  ;;  %6383 = vmatprep.mubr.bf16.mxu0 %v6688_v42  ;;  %v4453_v29 = vsel %vm3681_vm8, %v4450_v62, %v4452_v47  ;;  %v4873_v42 = vld [vmem:[#allocation2 + $0x10] sm:$0xf]  ;;  %v4978_v3 = vshrl.u32 %v8376_v28, 16 }
 0x253   : > { %6428 = vmatpush3.bf16.msra.mxu0 %v6686_v55  ;;  %6291 = vmatprep.mubr.bf16.mxu1 %v6689_v60  ;;  %v6711_v55 = vld [vmem:[%s8798_s5 + $0x1e0] sm:$0xff]   ;;  %v5959_v60 = vcombine.low %v4873_v42, %v4874_v37  ;;  %v6716_v37 = vld [vmem:[%s8798_s5 + $0x1c8] sm:$0xff]   ;;  %v4990_v42 = vshll.u32 %v8395_v63, 16 }
 0x254   : > { %6337 = vmatprep.subr.bf16.mxu1 %v6690_v16  ;;  %6429 = vmatprep.subr.bf16.mxu0 %v6691_v0 }
 0x255   : > { %v4951_v39 = vshrl.u32 %v5959_v60, 16 }
 0x256   : > { %6338 = vmatpush3.bf16.msra.mxu1 %v6690_v16  ;;  %v4455_v16 = vsel %vm3681_vm8, %v4452_v47, %v4454_v59  ;;  %v5223_v47 = vrot.slane %v6720_v38, 1 }
 0x257   : > { %6430 = vmatpush3.bf16.msra.mxu0 %v6691_v0  ;;  %6339 = vmatprep.subr.bf16.mxu1 %v6692_v40  ;;  %v6712_v0 = vld [vmem:[%s8798_s5 + $0x1d8] sm:$0xff]  }
 0x258   : > { %6431 = vmatprep.subr.bf16.mxu0 %v6694_v18 }
 0x259   : > { %6292 = vmatmul.mubr.bf16.gmra.mxu1 %v6695_v35  ;;  %6384 = vmatmul.mubr.bf16.gmra.mxu0 %v6693_v12  ;;  %v4953_v12 = vshll.u32 %v5959_v60, 16  ;;  %v4992_v60 = vrot.slane %v4990_v42, 1 }
 0x25a   : > { %6340 = vmatpush3.bf16.msra.mxu1 %v6692_v40  ;;  %6387 = vmatprep.mubr.bf16.mxu0 %v6696_v58  ;;  %v4456_v40 = vrot.slane %v8257_v36, 1  ;;  %v8409_v58 = vld [vmem:[#allocation2 + $0x40] sm:$0xff]  }
 0x25b   : > { %6432 = vmatpush3.bf16.msra.mxu0 %v6694_v18  ;;  %6343 = vmatprep.mubr.bf16.mxu1 %v4447_v27  ;;  %v5215_v18 = vrot.slane %v8391_v14, 1  ;;  %v4460_v27 = vrot.slane %v8290_v25, 1  ;;  %v5219_v56 = vrot.slane %v8409_v58, 1 }
 0x25c   : > { %6341 = vmatprep.subr.bf16.mxu1 %v6698_v32  ;;  %6433 = vmatprep.subr.bf16.mxu0 %v6699_v5  ;;  %v4457_v35 = vsel %vm3681_vm8, %v4454_v59, %v4456_v40  ;;  %v4459_v51 = vsel %vm3681_vm8, %v4456_v40, %v4458_v57  ;;  %v4998_v40 = vshll.u32 %v8409_v58, 16 }
 0x25d   : > { %v5218_v36 = vsel %vm3681_vm8, %v5215_v18, %v5217_v7  ;;  %v4461_v62 = vsel %vm3681_vm8, %v4458_v57, %v4460_v27  ;;  %v5220_v25 = vsel %vm3681_vm8, %v5217_v7, %v5219_v56 }
 0x25e   : > { %6342 = vmatpush3.bf16.msra.mxu1 %v6698_v32  ;;  %v5216_v32 = vsel %vm3681_vm8, %v5213_v49, %v5215_v18 }
 0x25f   : > { %6434 = vmatpush3.bf16.msra.mxu0 %v6699_v5  ;;  %6391 = vmatprep.subr.bf16.mxu1 %v6701_v41  ;;  %v4958_v5 = vshll.u32 %v8354_v6, 16 }
 0x260   : > { %6435 = vmatprep.subr.bf16.mxu0 %v6702_v11 }
 0x261   : > { %6344 = vmatmul.mubr.bf16.vlgmr.msra.gmra.mxu1 %v4449_v20  ;;  %6388 = vmatmul.mubr.bf16.gmra.mxu0 %v6700_v45  ;;  %v4960_v61 = vrot.slane %v4958_v5, 1  ;;  %v6719_v20 = vld [vmem:[%s8798_s5 + $0x1c0] sm:$0xff]  }
 0x262   : > { %6392 = vmatpush3.bf16.msra.mxu1 %v6701_v41  ;;  %6439 = vmatprep.mubr.bf16.mxu0 %v5210_v19  ;;  %v4955_v41 = vrot.slane %v4953_v12, 1  ;;  %v5002_v12 = vshrl.u32 %v8409_v58, 16 }
 0x263   : > { %6436 = vmatpush3.bf16.msra.mxu0 %v6702_v11  ;;  %6347 = vmatprep.mubr.bf16.mxu1 %v4451_v8  ;;  %v5221_v11 = vrot.slane %v8413_v53, 1  ;;  %v4968_v8 = vrot.slane %v4966_v43, 1 }
 0x264   : > { %6393 = vmatprep.subr.bf16.mxu1 %v6706_v34  ;;  %6437 = vmatprep.subr.bf16.mxu0 %v6707_v30  ;;  %v4956_v45 = vor.u32 %v4955_v41, %v4951_v39  ;;  %v5010_v41 = vshrl.u32 %v8413_v53, 16  ;;  %v2343_v39 = vpop.f32.mrf.mxu1 }
 0x266   : > { %6394 = vmatpush3.bf16.msra.mxu1 %v6706_v34  ;;  %v4974_v34 = vshll.u32 %v8376_v28, 16  ;;  %v4961_v19 = vsel %vm867_vm2, %v4956_v45, %v4960_v61  ;;  %v4994_v28 = vshrl.u32 %v8395_v63, 16  ;;  %v5730_v63 = vld [vmem:[%s8800_s7] ss:$0 sm:$0xff] }
 0x267   : > { %6438 = vmatpush3.bf16.msra.mxu0 %v6707_v30  ;;  %6395 = vmatprep.subr.bf16.mxu1 %v6708_v26  ;;  %v5222_v30 = vsel %vm3681_vm8, %v5219_v56, %v5221_v11  ;;  %v2734_v45 = vadd.f32 %v5730_v63, %v7900_v31  ;;  %v2738_v31 = vadd.f32 %v5730_v63, %v7975_v9 }
 0x268   : > { %v4976_v49 = vrot.slane %v4974_v34, 1 }
 0x269   : > { %6348 = vmatmul.mubr.bf16.gmra.mxu1 %v4453_v29  ;;  %v4972_v29 = vor.u32 %v4970_v52, %v4968_v8 }
 0x26a   : > { %6440 = vmatmul.mubr.bf16.vlgmr.msra.gmra.mxu0 %v5212_v2  ;;  %6396 = vmatpush3.bf16.msra.mxu1 %v6708_v26  ;;  %v4962_v26 = vshrl.u32 %v8354_v6, 16  ;;  %v4980_v18 = vor.u32 %v4978_v3, %v4976_v49 }
 0x26b   : > { %6443 = vmatprep.mubr.bf16.mxu0 %v5214_v17  ;;  %6351 = vmatprep.mubr.bf16.mxu1 %v4455_v16  ;;  %v5224_v17 = vsel %vm3681_vm8, %v5221_v11, %v5223_v47  ;;  %v4977_v16 = vsel %vm867_vm2, %v4972_v29, %v4976_v49 }
 0x26c   : > { %6397 = vmatprep.subr.bf16.mxu1 %v6711_v55  ;;  %v4964_v59 = vor.u32 %v4962_v26, %v4960_v61  ;;  %v2736_v61 = vadd.f32 %v5730_v63, %v7935_v13  ;;  %v2653_v26 = vpop.f32.mrf.mxu0  ;;  %v2740_v13 = vadd.f32 %v5730_v63, %v8007_v24 }
 0x26e   : > { %6398 = vmatpush3.bf16.msra.mxu1 %v6711_v55  ;;  %v4982_v55 = vshll.u32 %v8391_v14, 16  ;;  %v4969_v2 = vsel %vm867_vm2, %v4964_v59, %v4968_v8 }
 0x26f   : > { %6399 = vmatprep.subr.bf16.mxu1 %v6712_v0 }
 0x270   : > { %v4984_v6 = vrot.slane %v4982_v55, 1 }
 0x271   : > { %6352 = vmatmul.mubr.bf16.gmra.mxu1 %v4457_v35 }
 0x272   : > { %6444 = vmatmul.mubr.bf16.gmra.mxu0 %v5216_v32  ;;  %6400 = vmatpush3.bf16.msra.mxu1 %v6712_v0  ;;  %v4986_v0 = vshrl.u32 %v8391_v14, 16  ;;  %v4985_v57 = vsel %vm867_vm2, %v4980_v18, %v4984_v6  ;;  %v5006_v32 = vshll.u32 %v8413_v53, 16  ;;  %v4996_v14 = vor.u32 %v4994_v28, %v4992_v60 }
 0x273   : > { %6447 = vmatprep.mubr.bf16.mxu0 %v5218_v36  ;;  %6355 = vmatprep.mubr.bf16.mxu1 %v4459_v51  ;;  %v2737_v53 = vadd.f32 %v5730_v63, %v7958_v22  ;;  %v2741_v22 = vadd.f32 %v5730_v63, %v8024_v48 }
 0x274   : > { %6401 = vmatprep.subr.bf16.mxu1 %v6715_v50  ;;  %v4988_v7 = vor.u32 %v4986_v0, %v4984_v6  ;;  %v5008_v51 = vrot.slane %v5006_v32, 1  ;;  %v2744_v0 = vadd.f32 %v5730_v63, %v8073_v15 }
 0x276   : > { %6402 = vmatpush3.bf16.msra.mxu1 %v6715_v50  ;;  %v4993_v35 = vsel %vm867_vm2, %v4988_v7, %v4992_v60  ;;  %v5000_v50 = vrot.slane %v4998_v40, 1  ;;  %v5012_v56 = vor.u32 %v5010_v41, %v5008_v51  ;;  %v2742_v40 = vadd.f32 %v5730_v63, %v8038_v54 }
 0x277   : > { %6403 = vmatprep.subr.bf16.mxu1 %v6716_v37 }
 0x278   : > { %v5004_v36 = vor.u32 %v5002_v12, %v5000_v50  ;;  %v5001_v5 = vsel %vm867_vm2, %v4996_v14, %v5000_v50  ;;  %v2743_v50 = vadd.f32 %v5730_v63, %v8056_v4 }
 0x279   : > { %6356 = vmatmul.mubr.bf16.gmra.mxu1 %v4461_v62 }
 0x27a   : > { %6448 = vmatmul.mubr.bf16.gmra.mxu0 %v5220_v25  ;;  %6404 = vmatpush3.bf16.msra.mxu1 %v6716_v37  ;;  %v5014_v37 = vshll.u32 %v6720_v38, 16  ;;  %v5009_v27 = vsel %vm867_vm2, %v5004_v36, %v5008_v51  ;;  %v2377_v36 = vadd.f32 %v2343_v39, %v7883_v10 }
 0x27b   : > { %6451 = vmatprep.mubr.bf16.mxu0 %v5222_v30  ;;  %6407 = vmatprep.mubr.bf16.mxu1 %v4961_v19  ;;  %v2735_v30 = vadd.f32 %v5730_v63, %v7913_v23 }
 0x27c   : > { %6405 = vmatprep.subr.bf16.mxu1 %v6719_v20  ;;  %v5016_v11 = vrot.slane %v5014_v37, 1  ;;  %v2687_v54 = vadd.f32 %v2653_v26, %v2377_v36 }
 0x27e   : > { %6406 = vmatpush3.bf16.msra.mxu1 %v6719_v20  ;;  %v5017_v58 = vsel %vm867_vm2, %v5012_v56, %v5016_v11  ;;  %v2749_v4 = vadd.f32 %v5730_v63, %v2687_v54 }
 0x281   : > { %6408 = vmatmul.mubr.bf16.vlgmr.msra.gmra.mxu1 %v4969_v2 }
 0x282   : > { %6452 = vmatmul.mubr.bf16.gmra.mxu0 %v5224_v17  ;;  %6411 = vmatprep.mubr.bf16.mxu1 %v4977_v16  ;;  %v2739_v17 = vadd.f32 %v5730_v63, %v7991_v46 }
 0x289   : > { %6412 = vmatmul.mubr.bf16.gmra.mxu1 %v4985_v57  ;;  %v2745_v57 = vadd.f32 %v5730_v63, %v8095_v44  ;;  %v2746_v44 = vadd.f32 %v5730_v63, %v8112_v21 }
 0x28a   : > { %6415 = vmatprep.mubr.bf16.mxu1 %v4993_v35 }
 0x291   : > { %6416 = vmatmul.mubr.bf16.gmra.mxu1 %v5001_v5  ;;  %v2748_v5 = vadd.f32 %v5730_v63, %v8153_v1 }
 0x292   : > { %6419 = vmatprep.mubr.bf16.mxu1 %v5009_v27 }
 0x299   : > { %6420 = vmatmul.mubr.bf16.gmra.mxu1 %v5017_v58 }
 0x2a9   : > { %v6185_v43 = vpop.f32.mrf.mxu1 }
 0x2aa   : > { %v8454_v62 = vadd.f32 %v6185_v43, %v2736_v61  ;;  %v2747_v43 = vadd.f32 %v5730_v63, %v8131_v33 }
 0x2ab   : > { %v3267_v20 = vpop.f32.mrf.mxu1 }
 0x2ac   : > { %v8457_v25 = vadd.f32 %v3267_v20, %v2734_v45 }
 0x2ad   : > { %v6186_v38 = vpop.f32.mrf.mxu1 }
 0x2ae   : > { %v8460_v34 = vadd.f32 %v6186_v38, %v2737_v53 }
 0x2af   : > { %v3270_v19 = vpop.f32.mrf.mxu1 }
 0x2b0   : > { %v8463_v8 = vadd.f32 %v3270_v19, %v2735_v30 }
 0x2b8   : > { %v6249_v52 = vpop.f32.mrf.mxu0 }
 0x2b9   : > { %v6189_v47 = vpop.f32.mrf.mxu1 }
 0x2ba   : > { %v8466_v49 = vadd.f32 %v6189_v47, %v2740_v13  ;;  %v3789_v2 = vpop.f32.mrf.mxu0 }
 0x2bb   : > { %v3283_v59 = vpop.f32.mrf.mxu1 }
 0x2bc   : > { %v8469_v29 = vadd.f32 %v3283_v59, %v2738_v31  ;;  %v6250_v24 = vpop.f32.mrf.mxu0 }
 0x2bd   : > { %v6190_v55 = vpop.f32.mrf.mxu1 }
 0x2be   : > { %v8472_v23 = vadd.f32 %v6190_v55, %v2741_v22  ;;  %v3792_v6 = vpop.f32.mrf.mxu0 }
 0x2bf   : > { %v3286_v16 = vpop.f32.mrf.mxu1 }
 0x2c0   : > { %v8475_v42 = vadd.f32 %v3286_v16, %v2739_v17 }
 0x2c6   : > { %v6253_v3 = vpop.f32.mrf.mxu0 }
 0x2c8   : > { %v3805_v18 = vpop.f32.mrf.mxu0 }
 0x2c9   : > { %v6193_v9 = vpop.f32.mrf.mxu1 }
 0x2ca   : > { %v8478_v60 = vadd.f32 %v6193_v9, %v2744_v0  ;;  %v6254_v32 = vpop.f32.mrf.mxu0 }
 0x2cb   : > { %v3299_v48 = vpop.f32.mrf.mxu1 }
 0x2cc   : > { %v8481_v7 = vadd.f32 %v3299_v48, %v2742_v40  ;;  %v3808_v15 = vpop.f32.mrf.mxu0 }
 0x2cd   : > { %v6194_v46 = vpop.f32.mrf.mxu1 }
 0x2ce   : > { %v8484_v35 = vadd.f32 %v6194_v46, %v2745_v57 }
 0x2cf   : > { %v3302_v12 = vpop.f32.mrf.mxu1 }
 0x2d0   : > { %v8487_v28 = vadd.f32 %v3302_v12, %v2743_v50 }
 0x2d6   : > { %v6257_v14 = vpop.f32.mrf.mxu0 }
 0x2d8   : > { %v3821_v51 = vpop.f32.mrf.mxu0 }
 0x2d9   : > { %v6197_v37 = vpop.f32.mrf.mxu1 }
 0x2da   : > { %v3344_v27 = vadd.f32 %v6197_v37, %v2748_v5  ;;  %v6258_v41 = vpop.f32.mrf.mxu0 }
 0x2db   : > { %v3315_v56 = vpop.f32.mrf.mxu1 }
 0x2dc   : > { %v3342_v11 = vadd.f32 %v3315_v56, %v2746_v44  ;;  %v3824_v45 = vpop.f32.mrf.mxu0 }
 0x2dd   : > { %v6198_v58 = vpop.f32.mrf.mxu1 }
 0x2de   : > { %v3345_v61 = vadd.f32 %v6198_v58, %v2749_v4 }
 0x2df   : > { %v3318_v20 = vpop.f32.mrf.mxu1 }
 0x2e0   : > { %v3343_v10 = vadd.f32 %v3318_v20, %v2747_v43  ;;  %v6261_v39 = vpop.f32.mrf.mxu0 }
 0x2e1   : > { %v6217_v53 = vpop.f32.mrf.mxu1 }
 0x2e2   : > { %v3646_v38 = vadd.f32 %v6217_v53, %v8454_v62  ;;  %v3837_v1 = vpop.f32.mrf.mxu0 }
 0x2e3   : > { %v3581_v30 = vpop.f32.mrf.mxu1 }
 0x2e4   : > { %v3644_v19 = vadd.f32 %v3581_v30, %v8457_v25  ;;  %v8495_v21 = vadd.f32 %v6249_v52, %v3646_v38  ;;  %v6262_v26 = vpop.f32.mrf.mxu0 }
 0x2e5   : > { %v6218_v13 = vpop.f32.mrf.mxu1 }
 0x2e6   : > { %v3647_v47 = vadd.f32 %v6218_v13, %v8460_v34  ;;  %v8498_v31 = vadd.f32 %v3789_v2, %v3644_v19  ;;  %v3840_v33 = vpop.f32.mrf.mxu0 }
 0x2e7   : > { %v3584_v63 = vpop.f32.mrf.mxu1 }
 0x2e8   : > { %v3645_v59 = vadd.f32 %v3584_v63, %v8463_v8  ;;  %v8501_v22 = vadd.f32 %v6250_v24, %v3647_v47  ;;  %v8503_v55 = vpop.f32.mrf.mxu0 }
 0x2e9   : > { %v6221_v62 = vpop.f32.mrf.mxu1 }
 0x2ea   : > { %v3650_v17 = vadd.f32 %v6221_v62, %v8466_v49  ;;  %v8506_v25 = vadd.f32 %v3792_v6, %v3645_v59  ;;  %v8508_v52 = vpop.f32.mrf.mxu0 }
 0x2eb   : > { %v3597_v16 = vpop.f32.mrf.mxu1 }
 0x2ec   : > { %v3648_v34 = vadd.f32 %v3597_v16, %v8469_v29  ;;  %v8511_v2 = vadd.f32 %v6253_v3, %v3650_v17  ;;  %v8513_v0 = vpop.f32.mrf.mxu0 }
 0x2ed   : > { %v6222_v9 = vpop.f32.mrf.mxu1 }
 0x2ee   : > { %v3651_v8 = vadd.f32 %v6222_v9, %v8472_v23  ;;  %v8516_v24 = vadd.f32 %v3805_v18, %v3648_v34  ;;  %v8518_v40 = vpop.f32.mrf.mxu0 }
 0x2ef   : > { %v3600_v48 = vpop.f32.mrf.mxu1 }
 0x2f0   : > { %v3649_v49 = vadd.f32 %v3600_v48, %v8475_v42  ;;  %v8521_v6 = vadd.f32 %v6254_v32, %v3651_v8  ;;  %v8523_v57 = vpop.f32.mrf.mxu0 }
 0x2f1   : > { %v6225_v46 = vpop.f32.mrf.mxu1 }
 0x2f2   : > { %v3654_v29 = vadd.f32 %v6225_v46, %v8478_v60  ;;  %v8526_v3 = vadd.f32 %v3808_v15, %v3649_v49  ;;  %v8528_v50 = vpop.f32.mrf.mxu0 }
 0x2f3   : > { %v3613_v12 = vpop.f32.mrf.mxu1 }
 0x2f4   : > { %v3652_v23 = vadd.f32 %v3613_v12, %v8481_v7  ;;  %v8531_v18 = vadd.f32 %v6257_v14, %v3654_v29  ;;  %v8533_v36 = vpop.f32.mrf.mxu0 }
 0x2f5   : > { %v6226_v54 = vpop.f32.mrf.mxu1 }
 0x2f6   : > { %v3655_v42 = vadd.f32 %v6226_v54, %v8484_v35  ;;  %v8536_v32 = vadd.f32 %v3821_v51, %v3652_v23  ;;  %v8538_v5 = vpop.f32.mrf.mxu0 }
 0x2f7   : > { %v3616_v37 = vpop.f32.mrf.mxu1 }
 0x2f8   : > { %v3653_v60 = vadd.f32 %v3616_v37, %v8487_v28  ;;  %v8541_v15 = vadd.f32 %v6258_v41, %v3655_v42  ;;  %v8543_v44 = vpop.f32.mrf.mxu0 }
 0x2f9   : > { %v6229_v56 = vpop.f32.mrf.mxu1 }
 0x2fa   : > { %v3658_v7 = vadd.f32 %v6229_v56, %v3344_v27  ;;  %v8545_v14 = vadd.f32 %v3824_v45, %v3653_v60  ;;  %v8547_v4 = vpop.f32.mrf.mxu0 }
 0x2fb   : > { %v3629_v58 = vpop.f32.mrf.mxu1 }
 0x2fc   : > { %v3656_v43 = vadd.f32 %v3629_v58, %v3342_v11  ;;  %v8549_v35 = vadd.f32 %v6261_v39, %v3658_v7  ;;  %v8551_v51 = vpop.f32.mrf.mxu0 }
 0x2fd   : > { %8892 = vst [vmem:[#allocation6_spill] sm:$0xff] %v8551_v51  ;;  %v6230_v20 = vpop.f32.mrf.mxu1 }
 0x2fe   : > { %8891 = vst [vmem:[#allocation45_spill] sm:$0xff] %v8549_v35  ;;  %v3659_v53 = vadd.f32 %v6230_v20, %v3345_v61  ;;  %v8553_v38 = vadd.f32 %v3837_v1, %v3656_v43  ;;  %v8555_v28 = vpop.f32.mrf.mxu0 }
 0x2ff   : > { %8894 = vst [vmem:[#allocation31_spill] sm:$0xff] %v8555_v28  ;;  %v3632_v41 = vpop.f32.mrf.mxu1 }
 0x300   : > { %8893 = vst [vmem:[#allocation15_spill] sm:$0xff] %v8553_v38  ;;  %v3657_v30 = vadd.f32 %v3632_v41, %v3343_v10  ;;  %v8557_v19 = vadd.f32 %v6262_v26, %v3659_v53  ;;  %v8559_v27 = vpop.f32.mrf.mxu0 }
 0x301   : > { %8896 = vst [vmem:[#allocation17_spill] sm:$0xff] %v8559_v27  ;;  %v6281_v45 = vpop.f32.mrf.mxu1 }
 0x302   : > { %8895 = vst [vmem:[#allocation7_spill] sm:$0xff] %v8557_v19  ;;  %v8561_v13 = vadd.f32 %v3840_v33, %v3657_v30  ;;  %v8563_v11 = vpop.f32.mrf.mxu0 }
 0x303   : > { %8898 = vst [vmem:[#allocation8_spill] sm:$0xff] %v8563_v11  ;;  %v4031_v39 = vpop.f32.mrf.mxu1 }
 0x304   : > { %8897 = vst [vmem:[#allocation33_spill] sm:$0xff] %v8561_v13  ;;  %v8565_v47 = vpop.f32.mrf.mxu0  ;;  %v4094_v38 = vadd.f32 %v4031_v39, %v8498_v31 }
 0x305   : > { %8899 = vst [vmem:[#allocation19_spill] sm:$0xff] %v8565_v47  ;;  %v6282_v63 = vpop.f32.mrf.mxu1 }
 0x306   : > { %v8567_v61 = vpop.f32.mrf.mxu0 }
 0x307   : > { %8900 = vst [vmem:[#allocation35_spill] sm:$0xff] %v8567_v61  ;;  %v4034_v1 = vpop.f32.mrf.mxu1 }
 0x309   : > { %v6285_v59 = vpop.f32.mrf.mxu1  ;;  %v8569_v62 = vpop.f32.mrf.mxu0 }
 0x30b   : > { %v4047_v10 = vpop.f32.mrf.mxu1  ;;  %v8571_v26 = vpop.f32.mrf.mxu0 }
 0x30d   : > { %v6286_v17 = vpop.f32.mrf.mxu1  ;;  %v8573_v16 = vpop.f32.mrf.mxu0 }
 0x30f   : > { %v8575_v33 = vpop.f32.mrf.mxu1  ;;  %v8577_v34 = vpop.f32.mrf.mxu0 }
 0x311   : > { %v8579_v9 = vpop.f32.mrf.mxu1  ;;  %v8581_v8 = vpop.f32.mrf.mxu0 }
 0x313   : > { %v8583_v48 = vpop.f32.mrf.mxu1  ;;  %v8585_v49 = vpop.f32.mrf.mxu0 }
 0x315   : > { %v8587_v46 = vpop.f32.mrf.mxu1  ;;  %v8589_v29 = vpop.f32.mrf.mxu0 }
 0x316   : > { %8901 = vst [vmem:[#allocation9_spill] sm:$0xff] %v8589_v29  ;;  %v4095_v29 = vadd.f32 %v4034_v1, %v8506_v25 }
 0x317   : > { %v8591_v12 = vpop.f32.mrf.mxu1  ;;  %v8593_v23 = vpop.f32.mrf.mxu0 }
 0x318   : > { %8902 = vst [vmem:[#allocation21_spill] sm:$0xff] %v8593_v23  ;;  %v4409_v25 = vadd.f32 %v8518_v40, %v4095_v29 }
 0x319   : > { %v8595_v54 = vpop.f32.mrf.mxu1  ;;  %v8597_v42 = vpop.f32.mrf.mxu0 }
 0x31a   : > { %8903 = vst [vmem:[#allocation10_spill] sm:$0xff] %v8595_v54  ;;  %8904 = vst [vmem:[#allocation23_spill] sm:$0xff] %v8597_v42  ;;  %v4097_v54 = vadd.f32 %v6282_v63, %v8501_v22  ;;  %v4098_v22 = vadd.f32 %v4047_v10, %v8516_v24 }
 0x31b   : > { %v8599_v37 = vpop.f32.mrf.mxu1  ;;  %v8601_v60 = vpop.f32.mrf.mxu0 }
 0x31c   : > { %8905 = vst [vmem:[#allocation37_spill] sm:$0xff] %v8599_v37  ;;  %8906 = vst [vmem:[#allocation11_spill] sm:$0xff] %v8601_v60  ;;  %v4412_v40 = vadd.f32 %v8528_v50, %v4098_v22  ;;  %v4102_v50 = vadd.f32 %v8583_v48, %v8536_v32  ;;  %v8920_v22 = vld [vmem:[#allocation45_spill] sm:$0xff] }
 0x31d   : > { %v8603_v56 = vpop.f32.mrf.mxu1  ;;  %v8605_v7 = vpop.f32.mrf.mxu0 }
 0x31e   : > { %8907 = vst [vmem:[#allocation26_spill] sm:$0xff] %v8603_v56  ;;  %8908 = vst [vmem:[#allocation12_spill] sm:$0xff] %v8605_v7 }
 0x31f   : > { %v8607_v58 = vpop.f32.mrf.mxu1  ;;  %v8609_v43 = vpop.f32.mrf.mxu0 }
 0x320   : > { %8909 = vst [vmem:[#allocation28_spill] sm:$0xff] %v8607_v58  ;;  %8910 = vst [vmem:[#allocation39_spill] sm:$0xff] %v8609_v43 }
 0x321   : > { %v6345_v20 = vpop.f32.mrf.mxu1  ;;  %v8611_v53 = vpop.f32.mrf.mxu0 }
 0x322   : > { %8911 = vst [vmem:[#allocation13_spill] sm:$0xff] %v8611_v53 }
 0x323   : > { %v4552_v41 = vpop.f32.mrf.mxu1  ;;  %v8613_v30 = vpop.f32.mrf.mxu0 }
 0x324   : > { %8912 = vst [vmem:[#allocation30_spill] sm:$0xff] %v8613_v30 }
 0x325   : > { %v6346_v61 = vpop.f32.mrf.mxu1  ;;  %v8615_v47 = vpop.f32.mrf.mxu0 }
 0x326   : > { %8913 = vst [vmem:[#allocation14_spill] sm:$0xff] %v8615_v47 }
 0x327   : > { %v4555_v11 = vpop.f32.mrf.mxu1  ;;  %v8617_v13 = vpop.f32.mrf.mxu0 }
 0x328   : > { %8914 = vst [vmem:[#allocation32_spill] sm:$0xff] %v8617_v13  ;;  %v4096_v13 = vadd.f32 %v6281_v45, %v8495_v21  ;;  %v4408_v21 = vadd.f32 %v8508_v52, %v4094_v38  ;;  %v4100_v45 = vadd.f32 %v6285_v59, %v8511_v2  ;;  %v4101_v2 = vadd.f32 %v6286_v17, %v8521_v6 }
 0x329   : > { %v6349_v60 = vpop.f32.mrf.mxu1  ;;  %v4616_v1 = vadd.f32 %v4555_v11, %v4409_v25 }
 0x32a   : > { %v6441_v27 = vpop.f32.mrf.mxu0  ;;  %v4410_v35 = vadd.f32 %v8503_v55, %v4096_v13  ;;  %v4415_v10 = vadd.f32 %v8533_v36, %v4101_v2  ;;  %v8923_v2 = vld [vmem:[#allocation6_spill] sm:$0xff] }
 0x32b   : > { %v4568_v56 = vpop.f32.mrf.mxu1 }
 0x32c   : > { %v5315_v7 = vpop.f32.mrf.mxu0  ;;  %v4619_v11 = vadd.f32 %v4568_v56, %v4412_v40 }
 0x32d   : > { %v6350_v19 = vpop.f32.mrf.mxu1 }
 0x32e   : > { %v6442_v58 = vpop.f32.mrf.mxu0  ;;  %v4861_v56 = vadd.f32 %v8585_v49, %v4619_v11 }
 0x32f   : > { %v8619_v42 = vpop.f32.mrf.mxu1 }
 0x330   : > { %v8621_v43 = vpop.f32.mrf.mxu0 }
 0x331   : > { %v8623_v53 = vpop.f32.mrf.mxu1 }
 0x332   : > { %v8627_v30 = vpop.f32.mrf.mxu0 }
 0x333   : > { %v8625_v28 = vpop.f32.mrf.mxu1 }
 0x334   : > { %8915 = vst [vmem:[#allocation41_spill] sm:$0xff] %v8625_v28  ;;  %v8635_v23 = vpop.f32.mrf.mxu0 }
 0x335   : > { %v8629_v47 = vpop.f32.mrf.mxu1 }
 0x336   : > { %8916 = vst [vmem:[#allocation43_spill] sm:$0xff] %v8629_v47  ;;  %v4617_v47 = vadd.f32 %v6345_v20, %v4410_v35  ;;  %v8646_v31 = vpop.f32.mrf.mxu0  ;;  %v4414_v35 = vadd.f32 %v8523_v57, %v4100_v45 }
 0x337   : > { %v8632_v37 = vpop.f32.mrf.mxu1 }
 0x338   : > { %8917 = vst [vmem:[#allocation16_spill] sm:$0xff] %v8632_v37  ;;  %v4615_v37 = vadd.f32 %v4552_v41, %v4408_v21  ;;  %v4859_v52 = vadd.f32 %v8569_v62, %v4617_v47  ;;  %v8659_v38 = vpop.f32.mrf.mxu0  ;;  %v4104_v62 = vadd.f32 %v8579_v9, %v8531_v18  ;;  %v4622_v18 = vadd.f32 %v6350_v19, %v4415_v10 }
 0x339   : > { %v8637_v51 = vpop.f32.mrf.mxu1 }
 0x33a   : > { %8918 = vst [vmem:[#allocation34_spill] sm:$0xff] %v8637_v51  ;;  %v4411_v51 = vadd.f32 %v8513_v0, %v4097_v54  ;;  %v4857_v24 = vadd.f32 %v8571_v26, %v4615_v37  ;;  %v8671_v17 = vpop.f32.mrf.mxu0  ;;  %v4418_v32 = vadd.f32 %v8543_v44, %v4104_v62 }
 0x33b   : > { %v8641_v28 = vpop.f32.mrf.mxu1  ;;  %v8922_v25 = vld [vmem:[#allocation41_spill] sm:$0xff] }
 0x33c   : > { %v4618_v13 = vadd.f32 %v6346_v61, %v4411_v51  ;;  %v4099_v51 = vadd.f32 %v8575_v33, %v8526_v3  ;;  %v4621_v61 = vadd.f32 %v6349_v60, %v4414_v35  ;;  %v4858_v33 = vadd.f32 %v8577_v34, %v4616_v1  ;;  %v5347_v48 = vpop.f32.mrf.mxu0  ;;  %v8924_v1 = vld [vmem:[#allocation21_spill] sm:$0xff] }
 0x33d   : > { %v8648_v39 = vpop.f32.mrf.mxu1  ;;  %v4105_v34 = vadd.f32 %v8587_v46, %v8541_v15  ;;  %v4625_v41 = vadd.f32 %v8623_v53, %v4418_v32  ;;  %v4416_v15 = vadd.f32 %v8547_v4, %v4102_v50  ;;  %v8936_v32 = vld [vmem:[#allocation28_spill] sm:$0xff] }
 0x33e   : > { %v4860_v57 = vadd.f32 %v8573_v16, %v4618_v13  ;;  %v4863_v37 = vadd.f32 %v8581_v8, %v4621_v61  ;;  %v8921_v13 = vld [vmem:[#allocation10_spill] sm:$0xff]  ;;  %v8927_v61 = vld [vmem:[#allocation31_spill] sm:$0xff] }
 0x33f   : > { %v8652_v55 = vpop.f32.mrf.mxu1 }
 0x341   : > { %v6409_v63 = vpop.f32.mrf.mxu1 }
 0x342   : > { %v5173_v0 = vadd.f32 %v6409_v63, %v4859_v52  ;;  %v4623_v52 = vadd.f32 %v8922_v25, %v4416_v15  ;;  %v8941_v25 = vld [vmem:[#allocation39_spill] sm:$0xff] }
 0x343   : > { %v5108_v47 = vpop.f32.mrf.mxu1 }
 0x344   : > { %v5380_v59 = vadd.f32 %v6441_v27, %v5173_v0  ;;  %v5171_v6 = vadd.f32 %v5108_v47, %v4857_v24  ;;  %v4413_v27 = vadd.f32 %v8538_v5, %v4099_v51  ;;  %v8925_v0 = vld [vmem:[#allocation15_spill] sm:$0xff]  ;;  %v8926_v24 = vld [vmem:[#allocation37_spill] sm:$0xff] }
 0x345   : > { %v6410_v26 = vpop.f32.mrf.mxu1  ;;  %v4106_v51 = vadd.f32 %v8926_v24, %v8925_v0  ;;  %v8944_v24 = vld [vmem:[#allocation30_spill] sm:$0xff] }
 0x346   : > { %v5396_v29 = vmax.f32 %v5380_v59, 0.0  ;;  %v5378_v54 = vadd.f32 %v5315_v7, %v5171_v6  ;;  %v5174_v3 = vadd.f32 %v6410_v26, %v4860_v57  ;;  %v4620_v19 = vadd.f32 %v8619_v42, %v4413_v27  ;;  %v8919_v42 = vld [vmem:[#allocation9_spill] sm:$0xff]  ;;  %v8928_v59 = vld [vmem:[#allocation23_spill] sm:$0xff] }
 0x347   : > { %v5111_v16 = vpop.f32.mrf.mxu1  ;;  %v4864_v45 = vadd.f32 %v8919_v42, %v4622_v18  ;;  %v4867_v6 = vadd.f32 %v8928_v59, %v4625_v41  ;;  %v8929_v57 = vld [vmem:[#allocation43_spill] sm:$0xff]  ;;  %v8934_v18 = vld [vmem:[#allocation16_spill] sm:$0xff] }
 0x348   : > { %5412 = vst [vmem:[%s8678_s29 + $0x10] sm:$0xff] %v5396_v29  ;;  %v5394_v36 = vmax.f32 %v5378_v54, 0.0  ;;  %v5381_v9 = vadd.f32 %v6442_v58, %v5174_v3  ;;  %v5172_v60 = vadd.f32 %v5111_v16, %v4858_v33  ;;  %v4103_v58 = vadd.f32 %v8591_v12, %v8545_v14  ;;  %v6450_v12 = vpop.f32.mrf.mxu0  ;;  %v8930_v26 = vld [vmem:[#allocation7_spill] sm:$0xff]  ;;  %v8931_v29 = vld [vmem:[#allocation26_spill] sm:$0xff]  ;;  %v8932_v3 = vld [vmem:[#allocation17_spill] sm:$0xff] }
 0x349   : > { %v6413_v5 = vpop.f32.mrf.mxu1  ;;  %v4419_v14 = vadd.f32 %v8923_v2, %v4105_v34  ;;  %v4109_v54 = vadd.f32 %v8931_v29, %v8930_v26  ;;  %v8933_v16 = vld [vmem:[#allocation11_spill] sm:$0xff]  ;;  %v8946_v29 = vld [vmem:[#allocation32_spill] sm:$0xff] }
 0x34a   : > { %5410 = vst [vmem:[%s8678_s29] sm:$0xff] %v5394_v36  ;;  %v5397_v8 = vmax.f32 %v5381_v9, 0.0  ;;  %v5379_v7 = vadd.f32 %v8621_v43, %v5172_v60  ;;  %v5177_v20 = vadd.f32 %v6413_v5, %v4863_v37  ;;  %v4108_v43 = vadd.f32 %v8921_v13, %v8920_v22  ;;  %v5350_v50 = vpop.f32.mrf.mxu0  ;;  %v8942_v2 = vld [vmem:[#allocation35_spill] sm:$0xff] }
 0x34b   : > { %v5124_v44 = vpop.f32.mrf.mxu1  ;;  %v4417_v40 = vadd.f32 %v8927_v61, %v4103_v58  ;;  %v4626_v62 = vadd.f32 %v8929_v57, %v4419_v14  ;;  %v4865_v37 = vadd.f32 %v8933_v16, %v4623_v52  ;;  %v8945_v57 = vld [vmem:[#allocation14_spill] sm:$0xff] }
 0x34c   : > { %5413 = vst [vmem:[%s8678_s29 + $0x18] sm:$0xff] %v5397_v8  ;;  %v5395_v46 = vmax.f32 %v5379_v7, 0.0  ;;  %v5384_v49 = vadd.f32 %v8627_v30, %v5177_v20  ;;  %v5175_v21 = vadd.f32 %v5124_v44, %v4861_v56  ;;  %v4862_v30 = vadd.f32 %v8924_v1, %v4620_v19  ;;  %v8937_v56 = vld [vmem:[#allocation34_spill] sm:$0xff]  ;;  %v8938_v8 = vld [vmem:[#allocation8_spill] sm:$0xff]  ;;  %v6453_v42 = vpop.f32.mrf.mxu0 }
 0x34d   : > { %v6414_v53 = vpop.f32.mrf.mxu1  ;;  %v4422_v33 = vadd.f32 %v8932_v3, %v4108_v43  ;;  %v4624_v36 = vadd.f32 %v8934_v18, %v4417_v40  ;;  %v4420_v7 = vadd.f32 %v8938_v8, %v4106_v51  ;;  %v8939_v44 = vld [vmem:[#allocation12_spill] sm:$0xff] }
 0x34e   : > { %5411 = vst [vmem:[%s8678_s29 + $0x8] sm:$0xff] %v5395_v46  ;;  %v5400_v4 = vmax.f32 %v5384_v49, 0.0  ;;  %v5382_v35 = vadd.f32 %v8635_v23, %v5175_v21  ;;  %v5178_v63 = vadd.f32 %v6414_v53, %v4864_v45  ;;  %v4868_v46 = vadd.f32 %v8939_v44, %v4626_v62  ;;  %v8943_v53 = vld [vmem:[#allocation13_spill] sm:$0xff] }
 0x34f   : > { %v5127_v47 = vpop.f32.mrf.mxu1  ;;  %v4629_v19 = vadd.f32 %v8937_v56, %v4422_v33  ;;  %v4627_v49 = vadd.f32 %v8641_v28, %v4420_v7  ;;  %v4866_v52 = vadd.f32 %v8941_v25, %v4624_v36 }
 0x350   : > { %5416 = vst [vmem:[%s8678_s29 + $0x30] sm:$0xff] %v5400_v4  ;;  %v5398_v11 = vmax.f32 %v5382_v35, 0.0  ;;  %v5385_v10 = vadd.f32 %v8646_v31, %v5178_v63  ;;  %v5176_v23 = vadd.f32 %v5127_v47, %v4862_v30  ;;  %v8935_v31 = vld [vmem:[#allocation33_spill] sm:$0xff]  ;;  %v5363_v30 = vpop.f32.mrf.mxu0 }
 0x351   : > { %v6417_v27 = vpop.f32.mrf.mxu1  ;;  %v4107_v5 = vadd.f32 %v8936_v32, %v8935_v31  ;;  %v4871_v4 = vadd.f32 %v8943_v53, %v4629_v19 }
 0x352   : > { %5414 = vst [vmem:[%s8678_s29 + $0x20] sm:$0xff] %v5398_v11  ;;  %v5401_v9 = vmax.f32 %v5385_v10, 0.0  ;;  %v5383_v60 = vadd.f32 %v8659_v38, %v5176_v23  ;;  %v5181_v34 = vadd.f32 %v6417_v27, %v4867_v6  ;;  %v8940_v38 = vld [vmem:[#allocation19_spill] sm:$0xff]  ;;  %v6454_v11 = vpop.f32.mrf.mxu0 }
 0x353   : > { %v5140_v20 = vpop.f32.mrf.mxu1  ;;  %v4423_v21 = vadd.f32 %v8940_v38, %v4109_v54  ;;  %v4421_v14 = vadd.f32 %v8942_v2, %v4107_v5 }
 0x354   : > { %5417 = vst [vmem:[%s8678_s29 + $0x38] sm:$0xff] %v5401_v9  ;;  %v5399_v58 = vmax.f32 %v5383_v60, 0.0  ;;  %v5388_v41 = vadd.f32 %v8671_v17, %v5181_v34  ;;  %v5179_v15 = vadd.f32 %v5140_v20, %v4865_v37  ;;  %v5366_v16 = vpop.f32.mrf.mxu0 }
 0x355   : > { %v6418_v45 = vpop.f32.mrf.mxu1  ;;  %v4630_v35 = vadd.f32 %v8648_v39, %v4423_v21  ;;  %v4628_v51 = vadd.f32 %v8652_v55, %v4421_v14 }
 0x356   : > { %5415 = vst [vmem:[%s8678_s29 + $0x28] sm:$0xff] %v5399_v58  ;;  %v5404_v22 = vmax.f32 %v5388_v41, 0.0  ;;  %v5386_v13 = vadd.f32 %v5347_v48, %v5179_v15  ;;  %v5182_v43 = vadd.f32 %v6418_v45, %v4868_v46  ;;  %v4869_v48 = vadd.f32 %v8944_v24, %v4627_v49 }
 0x357   : > { %v5143_v17 = vpop.f32.mrf.mxu1  ;;  %v4872_v62 = vadd.f32 %v8945_v57, %v4630_v35  ;;  %v4870_v54 = vadd.f32 %v8946_v29, %v4628_v51 }
 0x358   : > { %5420 = vst [vmem:[%s8678_s29 + $0x50] sm:$0xff] %v5404_v22  ;;  %v5402_v28 = vmax.f32 %v5386_v13, 0.0  ;;  %v5389_v63 = vadd.f32 %v6450_v12, %v5182_v43  ;;  %v5180_v1 = vadd.f32 %v5143_v17, %v4866_v52 }
 0x359   : > { %v6421_v0 = vpop.f32.mrf.mxu1 }
 0x35a   : > { %5418 = vst [vmem:[%s8678_s29 + $0x40] sm:$0xff] %v5402_v28  ;;  %v5405_v61 = vmax.f32 %v5389_v63, 0.0  ;;  %v5387_v40 = vadd.f32 %v5350_v50, %v5180_v1  ;;  %v5185_v47 = vadd.f32 %v6421_v0, %v4871_v4 }
 0x35b   : > { %v5156_v59 = vpop.f32.mrf.mxu1 }
 0x35c   : > { %5421 = vst [vmem:[%s8678_s29 + $0x58] sm:$0xff] %v5405_v61  ;;  %v5403_v6 = vmax.f32 %v5387_v40, 0.0  ;;  %v5392_v39 = vadd.f32 %v6453_v42, %v5185_v47  ;;  %v5183_v12 = vadd.f32 %v5156_v59, %v4869_v48 }
 0x35d   : > { %v6422_v10 = vpop.f32.mrf.mxu1 }
 0x35e   : > { %5419 = vst [vmem:[%s8678_s29 + $0x48] sm:$0xff] %v5403_v6  ;;  %v5408_v23 = vmax.f32 %v5392_v39, 0.0  ;;  %v5390_v55 = vadd.f32 %v5363_v30, %v5183_v12  ;;  %v5186_v26 = vadd.f32 %v6422_v10, %v4872_v62 }
 0x35f   : > { %v5159_v3 = vpop.f32.mrf.mxu1 }
 0x360   : > { %5424 = vst [vmem:[%s8678_s29 + $0x70] sm:$0xff] %v5408_v23  ;;  %v5406_v33 = vmax.f32 %v5390_v55, 0.0  ;;  %v5393_v50 = vadd.f32 %v6454_v11, %v5186_v26  ;;  %v5184_v27 = vadd.f32 %v5159_v3, %v4870_v54 }
 0x362   : > { %5422 = vst [vmem:[%s8678_s29 + $0x60] sm:$0xff] %v5406_v33  ;;  %v5409_v37 = vmax.f32 %v5393_v50, 0.0  ;;  %v5391_v18 = vadd.f32 %v5366_v16, %v5184_v27 }
 0x364   : > { %5425 = vst [vmem:[%s8678_s29 + $0x78] sm:$0xff] %v5409_v37  ;;  %v5407_v36 = vmax.f32 %v5391_v18, 0.0 }
 0x366   : > { %5423 = vst [vmem:[%s8678_s29 + $0x68] sm:$0xff] %v5407_v36 }
 0x367   : > { %6734 = shalt.err (!%p6731_p3)
}
 0x368   : > { %s6735_s25 = scalar_lea.hbm %s8745_s23, 2048  ;;  %s6739_s14 = scalar_lea.hbm %s8802_s9, 4096 }
 0x369   : > { %p6736_p4 = scmp.ne.s32.totalorder %s8745_s23, %s6735_s25  ;;  %p6740_p9 = scmp.lt.s32.totalorder %s8745_s23, %s8802_s9 }
 0x36a   : > { %p6741_p10 = scmp.lt.s32.totalorder %s6739_s14, %s6735_s25 }
 0x36b   : > { %p6737_p7 = pnand %p6736_p4, %p6875_p5 }
 0x36c   : > { %p6742_p11 = por %p6741_p10, %p6740_p9 }
 0x36d   : > { %p6738_p8 = pneg %p6737_p7 }
 0x36f   : > { %p6743_p12 = pnand %p6742_p11, %p6738_p8 }
 0x371   : > { %6746 = shalt.err (!%p6743_p12)
}
 0x372   : > { %s6785_s21 = smov 128   ;;  %s6786_s26 = smov 8  }
 0x373   : > { %6458 = dma.vmem_to_hbm [thread:$0]  (%p6875_p5), %s8747_s17, 2048, %s8745_s23, %s8753_s13, %s6785_s21, %s6785_s21, %s6786_s26  }
 0x374 PF: > { %p6464_p13 = scmp.ge.s32.totalorder %s6781_s12, 2  ;;  %s5455_s24 = sand.u32 1, %s6769_s30  }
 0x375   : > { %s5456_s28 = scalar_lea.sflag [#allocation4], %s5455_s24 }
 0x376   : > { %p6461_p0 = pnand %p6464_p13, %p6879_p6 }
 0x378   : > { %p6462_p1 = pneg %p6461_p0 }
 0x37a   : > { %6764 = dma.done.wait (%p6462_p1), %s5456_s28, 2048  }
 0x37b   : > { %6766 = vsyncadd (%p6462_p1), %s5456_s28, 4294965248  ;;  %p19_p2 = scmp.ge.s32.totalorder %s6862_s15, 4   ;;  %s8947_s30 = smov %s6773_s10 }
 0x37c   : > { %s8948_s10 = smov %s6777_s11  ;;  %s8949_s11 = smov %s6873_s18 }
 0x37d   : > { %s8950_s12 = smov %s6862_s15  ;;  %21 = sbr.rel (!%p19_p2) target bundleno = 3 (0x3), region = 116 }
 0x382   :  { %5461 = vsyncpa [#allocation4], 1 }
 0x383   :  { %5463 = vsyncpa [#allocation4 + $0x1], 1 }

</bundles_post_ra>
